<compile_context>
chip_gen: v6e
topology: v6e:2x2x1
jax: 0.10.0
libtpu: 0.0.40
codegen_flags: <defaults>
</compile_context>

<pallas_src>
import jax
import jax.numpy as jnp
import numpy as np
from jax.experimental import pallas as pl
from jax.experimental.pallas import tpu as pltpu

# ---- static model configuration (small, consistent with the module) --------
B = 2            # batch_size
T = 6            # max_len (sequence length)
E = 8            # input_size (one-hot vocab size)
H = 32           # hidden_size
D = 16           # d_size
O = 16           # output_size
N_LAYER = 2      # n_layer
IN_MAX = E + (N_LAYER - 1) * H   # widest w2h input (40)
O_PAD = 128                      # lane-dense output columns
SOS_IDX = 0                      # dataset.word2index['SOS_token']

# ---- weight blob layout: ONE bf16 (W_ROWS, W_COLS) array --------------------
W_COLS = 4 * H + D + 4 * H + D   # 288
K_PRE = 16                       # padded vocab(8) + ones(1) contraction for the precompute
R_PRE = 0                        # rows 0:16   vocab -> [l0 gates | l0 reset | l1 gates | l1 reset]
R_H = 16                         # rows 16:48  [h2h_w[0] (128) | h2h_w[1] (128) | pad]
R_L1AUX = 48                     # rows 48:80  [w2h_w[1][E:E+H] (128) | AUX0 (128) | pad]
R_AUX1 = 80                      # rows 80:112 [AUX1 (128) | pad]
R_DC = 112                       # rows 112:128 [dc_w[0] (32) | dc_w[1] (32) | pad]
R_OB = 128                       # row 128     [out_b (16) | alpha*sum(h2hr_b) (16) | 0]
W_ROWS = 136

# WPRE column layout (within the 288 columns)
C_G0 = 0                         # 128: layer-0 gates
C_R0 = 4 * H                     # 16 : layer-0 reset
C_G1 = 4 * H + D                 # 128: layer-1 gates (vocab rows only)
C_R1 = 8 * H + D                 # 16 : layer-1 reset (vocab rows only)

# ---- activation blob layout: ONE f32 (ACT_ROWS, ACT_COLS) array -------------
ACT_COLS = 32
ROW_H0 = T * B                   # rows 12:14, cols 0:H  -> last_hidden_t0
ROW_D0 = T * B + B               # rows 14:16, cols 0:D  -> last_dt_t0
ACT_ROWS = T * B + 2 * B         # 16; rows 0:12, cols 0:E = vocab_t per step, col E = 1.0


# ---------------------------- Pallas kernel ---------------------------------
def _decoder_kernel(act_ref, w_ref, out_ref, pre_ref):
    """Entire sclstm decode (all T steps, all layers) in one invocation."""
    f32, bf16 = jnp.float32, jnp.bfloat16

    def mm(lhs, rows, cols):
        # per-use weight slice straight from the blob ref (just-in-time vld),
        # bf16 x bf16 single-pass MXU with f32 accumulation.
        w = w_ref[rows[0]:rows[1], cols[0]:cols[1]]
        return jnp.dot(lhs.astype(bf16), w, preferred_element_type=f32)

    # -- all teacher-forcing / vocab contributions for every step: ONE matmul --
    # (recurrence independent; gate+reset pre-activations of both layers with
    #  every additive bias folded in via the ones column of the act blob)
    pre_ref[...] = mm(act_ref[0:T * B, 0:K_PRE], (R_PRE, R_PRE + K_PRE), (0, W_COLS))

    h0 = act_ref[ROW_H0:ROW_H0 + B, 0:H]               # last_hidden_t0 (B, H)
    d0 = act_ref[ROW_D0:ROW_D0 + B, 0:D]                # last_dt_t0     (B, D)
    ob = w_ref[R_OB:R_OB + 1, 0:O_PAD].astype(f32)      # [out_b | alpha*sum(h2hr_b) | 0]

    h = [h0, h0]     # last_hidden
    c = [h0, h0]     # last_cell (initialized from last_hidden_t0, as in the module)
    d = [d0, d0]     # last_dt

    def aux(hidden, layer):
        # hidden (B,H) -> (B,128): [out_w block | alpha*h2hr_w[layer] | (layer 0: w2h_r[1] cur_h0 rows)]
        if layer == 0:
            return mm(hidden, (R_L1AUX, R_L1AUX + H), (128, 256))
        return mm(hidden, (R_AUX1, R_AUX1 + H), (0, 128))

    # prime the shared reset term for step 0: sum_j alpha*h2h_r[j](h0) + bias
    comb = aux(h[0], 0) + aux(h[1], 1) + ob
    gr_common = comb[:, O:O + D]                         # (B, D)

    for t in range(T):                                   # T=6: static unroll
        r0 = t * B
        pre_g0 = pre_ref[r0:r0 + B, C_G0:C_G0 + 4 * H]   # layer-0 gates  (vocab + biases)
        pre_r0 = pre_ref[r0:r0 + B, C_R0:C_R0 + D]       # layer-0 reset  (vocab + bias)
        pre_g1 = pre_ref[r0:r0 + B, C_G1:C_G1 + 4 * H]   # layer-1 gates  (vocab part + biases)
        pre_r1 = pre_ref[r0:r0 + B, C_R1:C_R1 + D]       # layer-1 reset  (vocab part + bias)

        # ---------------- layer 0 ----------------
        g0 = pre_g0 + mm(h[0], (R_H, R_H + H), (0, 128))
        s0 = jax.nn.sigmoid(g0)                          # one EUP pass over all 128 gate lanes
        t0 = jnp.tanh(g0)
        gate_r0 = jax.nn.sigmoid(pre_r0 + gr_common)
        dt0 = gate_r0 * d[0]
        cell0 = (s0[:, H:2 * H] * c[0] + s0[:, 0:H] * t0[:, 3 * H:4 * H]
                 + jnp.tanh(mm(dt0, (R_DC, R_DC + D), (0, H))))
        hid0 = s0[:, 2 * H:3 * H] * jnp.tanh(cell0)

        # aux matmul on hid0: out(hid0) | alpha*h2h_r[0](hid0) | w2h_r[1] cur_h0 part
        a0 = aux(hid0, 0)

        # ---------------- layer 1 ----------------
        g1 = (pre_g1 + mm(hid0, (R_L1AUX, R_L1AUX + H), (0, 128))
              + mm(h[1], (R_H, R_H + H), (128, 256)))
        s1 = jax.nn.sigmoid(g1)
        t1 = jnp.tanh(g1)
        gate_r1 = jax.nn.sigmoid(pre_r1 + a0[:, 2 * O:2 * O + D] + gr_common)
        dt1 = gate_r1 * d[1]
        cell1 = (s1[:, H:2 * H] * c[1] + s1[:, 0:H] * t1[:, 3 * H:4 * H]
                 + jnp.tanh(mm(dt1, (R_DC, R_DC + D), (H, 2 * H))))
        hid1 = s1[:, 2 * H:3 * H] * jnp.tanh(cell1)

        a1 = aux(hid1, 1)

        # ---- output_t (lanes 0:O) + shared reset term for step t+1 ----------
        comb = a0 + a1 + ob
        out_ref[t] = comb                                # lane-dense (B, 128) store
        gr_common = comb[:, O:O + D]

        h, c, d = [hid0, hid1], [cell0, cell1], [dt0, dt1]


# ----------------------- wrapper-side weight packing --------------------------
def prepare_weights(params):
    """Pack every matmul weight / bias into ONE bf16 blob. Call once and cache."""
    alpha = 1.0 / N_LAYER
    wb = jnp.zeros((W_ROWS, W_COLS), jnp.float32)

    # WPRE: vocab/teacher input -> both layers' gate+reset pre-activations,
    # with every additive bias folded into the ones row (row E).
    wb = wb.at[0:E, C_G0:C_G0 + 4 * H].set(params["w2h_w"][0][:E])
    wb = wb.at[E, C_G0:C_G0 + 4 * H].set((params["w2h_b"][0] + params["h2h_b"][0])[0])
    wb = wb.at[0:E, C_R0:C_R0 + D].set(params["w2hr_w"][0][:E])
    wb = wb.at[E, C_R0:C_R0 + D].set(params["w2hr_b"][0][0])
    wb = wb.at[0:E, C_G1:C_G1 + 4 * H].set(params["w2h_w"][1][:E])
    wb = wb.at[E, C_G1:C_G1 + 4 * H].set((params["w2h_b"][1] + params["h2h_b"][1])[0])
    wb = wb.at[0:E, C_R1:C_R1 + D].set(params["w2hr_w"][1][:E])
    wb = wb.at[E, C_R1:C_R1 + D].set(params["w2hr_b"][1][0])

    # recurrent h2h gate weights (layer 0 | layer 1)
    wb = wb.at[R_H:R_H + H, 0:4 * H].set(params["h2h_w"][0])
    wb = wb.at[R_H:R_H + H, 4 * H:8 * H].set(params["h2h_w"][1])

    # cur_h0 consumers: layer-1 w2h rows | AUX0 = [out_w | alpha*h2hr_w[0] | w2h_r[1] cur rows]
    wb = wb.at[R_L1AUX:R_L1AUX + H, 0:4 * H].set(params["w2h_w"][1][E:E + H])
    wb = wb.at[R_L1AUX:R_L1AUX + H, 128:128 + O].set(params["out_w"][0:H])
    wb = wb.at[R_L1AUX:R_L1AUX + H, 128 + O:128 + O + D].set(alpha * params["h2hr_w"][0])
    wb = wb.at[R_L1AUX:R_L1AUX + H, 128 + 2 * O:128 + 2 * O + D].set(
        params["w2hr_w"][1][E:E + H])

    # cur_h1 consumers: AUX1 = [out_w | alpha*h2hr_w[1]]
    wb = wb.at[R_AUX1:R_AUX1 + H, 0:O].set(params["out_w"][H:2 * H])
    wb = wb.at[R_AUX1:R_AUX1 + H, O:O + D].set(alpha * params["h2hr_w"][1])

    # dt -> cell (dc, bias-free)
    wb = wb.at[R_DC:R_DC + D, 0:H].set(params["dc_w"][0])
    wb = wb.at[R_DC:R_DC + D, H:2 * H].set(params["dc_w"][1])

    # output / reset-term biases (added once per step to the aux result)
    wb = wb.at[R_OB, 0:O].set(params["out_b"][0])
    wb = wb.at[R_OB, O:O + D].set(
        (alpha * (params["h2hr_b"][0] + params["h2hr_b"][1]))[0])

    return wb.astype(jnp.bfloat16)


# ------------------------------ wrapper --------------------------------------
@jax.jit
def decoder_forward(wblob, input_seq, h0, d0):
    """input_seq: (B, T, E) batch-major (PyTorch layout). Returns output_all (B, T, O)."""
    x_tm = jnp.transpose(input_seq, (1, 0, 2))                        # (T, B, E)
    sos = jax.nn.one_hot(jnp.full((B,), SOS_IDX), E, dtype=jnp.float32)
    # teacher forcing: step t consumes SOS (t=0) then input_seq[:, t-1, :]
    vocab = jnp.concatenate([sos[None], x_tm[:T - 1]], axis=0).reshape(T * B, E)

    act = jnp.zeros((ACT_ROWS, ACT_COLS), jnp.float32)
    act = act.at[0:T * B, 0:E].set(vocab)
    act = act.at[0:T * B, E].set(1.0)                                 # bias column for WPRE
    act = act.at[ROW_H0:ROW_H0 + B, 0:H].set(h0)
    act = act.at[ROW_D0:ROW_D0 + B, 0:D].set(d0)

    raw = pl.pallas_call(
        _decoder_kernel,
        out_shape=jax.ShapeDtypeStruct((T, B, O_PAD), jnp.float32),
        in_specs=[pl.BlockSpec(memory_space=pltpu.MemorySpace.VMEM),
                  pl.BlockSpec(memory_space=pltpu.MemorySpace.VMEM)],
        out_specs=pl.BlockSpec(memory_space=pltpu.MemorySpace.VMEM),
        scratch_shapes=[pltpu.VMEM((T * B, W_COLS), jnp.float32)],
    )(act, wblob)

    return jnp.transpose(raw[:, :, :O], (1, 0, 2))                    # (B, T, O)


# ----------------------- pure-JAX f32 reference (for checking) ---------------
def reference_forward(params, input_seq, h0, d0):
    sos = jax.nn.one_hot(jnp.full((B,), SOS_IDX), E, dtype=jnp.float32)
    last_h = [h0] * N_LAYER
    last_c = [h0] * N_LAYER
    last_d = [d0] * N_LAYER
    vocab_t = sos
    alpha = 1.0 / N_LAYER
    outs = []
    for t in range(T):
        gr_common = jnp.zeros((B, D), jnp.float32)
        for j in range(N_LAYER):
            gr_common = gr_common + alpha * (
                last_h[j] @ params["h2hr_w"][j] + params["h2hr_b"][j])
        cur_h, cur_c, cur_d = [], [], []
        for i in range(N_LAYER):
            inp = vocab_t if i == 0 else jnp.concatenate([vocab_t] + cur_h[:i], axis=1)
            in_dim = E + i * H
            w = params["w2h_w"][i][:in_dim]
            wr = params["w2hr_w"][i][:in_dim]
            s = (inp @ w + params["w2h_b"][i]
                 + last_h[i] @ params["h2h_w"][i] + params["h2h_b"][i])
            gi = jax.nn.sigmoid(s[:, :H])
            gf = jax.nn.sigmoid(s[:, H:2 * H])
            go = jax.nn.sigmoid(s[:, 2 * H:3 * H])
            ch = jnp.tanh(s[:, 3 * H:])
            gr = jax.nn.sigmoid(inp @ wr + params["w2hr_b"][i] + gr_common)
            dt = gr * last_d[i]
            cell = gf * last_c[i] + gi * ch + jnp.tanh(dt @ params["dc_w"][i])
            hidden = go * jnp.tanh(cell)
            cur_h.append(hidden); cur_c.append(cell); cur_d.append(dt)
        last_h, last_c, last_d = cur_h, cur_c, cur_d
        out = jnp.concatenate(last_h, axis=1) @ params["out_w"] + params["out_b"]
        outs.append(out)
        vocab_t = input_seq[:, t, :]
    return jnp.stack(outs, axis=1)


# ----------------------- deterministic parameter init ------------------------
def init_params(key):
    ks = jax.random.split(key, 11)
    rnd = lambda k, shp: 0.1 * jax.random.normal(k, shp, dtype=jnp.float32)
    return dict(
        w2h_w=rnd(ks[0], (N_LAYER, IN_MAX, 4 * H)),   # padded; unused rows never read
        w2h_b=rnd(ks[1], (N_LAYER, 1, 4 * H)),
        w2hr_w=rnd(ks[2], (N_LAYER, IN_MAX, D)),
        w2hr_b=rnd(ks[3], (N_LAYER, 1, D)),
        h2h_w=rnd(ks[4], (N_LAYER, H, 4 * H)),
        h2h_b=rnd(ks[5], (N_LAYER, 1, 4 * H)),
        h2hr_w=rnd(ks[6], (N_LAYER, H, D)),
        h2hr_b=rnd(ks[7], (N_LAYER, 1, D)),
        dc_w=rnd(ks[8], (N_LAYER, D, H)),
        out_w=rnd(ks[9], (N_LAYER * H, O)),
        out_b=rnd(ks[10], (1, O)),
    )


if __name__ == "__main__":
    key = jax.random.PRNGKey(0)
    kp, kx, kh, kd = jax.random.split(key, 4)
    params = init_params(kp)
    input_seq = jax.random.normal(kx, (B, T, E), dtype=jnp.float32)
    h0 = jax.random.normal(kh, (B, H), dtype=jnp.float32)   # last_hidden_t0
    d0 = jax.random.normal(kd, (B, D), dtype=jnp.float32)   # last_dt_t0

    # Weight fusion is call-invariant: done ONCE (model-load time) and cached.
    wblob = jax.block_until_ready(prepare_weights(params))

    out = decoder_forward(wblob, input_seq, h0, d0)
    out = jax.block_until_ready(out)

    ref = reference_forward(params, input_seq, h0, d0)
    assert out.shape == (B, T, O)
    # bf16 weights / bf16-cast activations on the MXU -> looser tolerance than pure f32.
    np.testing.assert_allclose(np.asarray(out), np.asarray(ref), rtol=2e-2, atol=2e-2)
    print("KERNEL_OK")
</pallas_src>

<mosaic_0001>
module attributes {stable_mosaic.version = 11 : i64} {
  func.func @_decoder_kernel(%arg0: memref<16x32xf32, #tpu.memory_space<vmem>>, %arg1: memref<136x288xbf16, #tpu.memory_space<vmem>>, %arg2: memref<6x2x128xf32, #tpu.memory_space<vmem>>, %arg3: memref<12x288xf32, #tpu.memory_space<vmem>>) attributes {dimension_semantics = [], scalar_prefetch = 0 : i64, scratch_operands = 1 : i64, tpu.core_type = #tpu.core_type<tc>} {
    %c0 = arith.constant 0 : index
    %c0_0 = arith.constant 0 : index
    %0 = vector.load %arg0[%c0, %c0_0] : memref<16x32xf32, #tpu.memory_space<vmem>>, vector<12x16xf32>
    %c0_1 = arith.constant 0 : index
    %c0_2 = arith.constant 0 : index
    %1 = vector.load %arg1[%c0_1, %c0_2] : memref<136x288xbf16, #tpu.memory_space<vmem>>, vector<16x288xbf16>
    %2 = arith.truncf %0 : vector<12x16xf32> to vector<12x16xbf16>
    %cst = arith.constant dense<0.000000e+00> : vector<12x288xf32>
    %3 = tpu.matmul %2, %1, %cst {dimension_numbers = #tpu.dot_dimension_numbers<[1], [0], [0], [1], [0, 0, 1, 1], [], []>} : vector<12x16xbf16>, vector<16x288xbf16>, vector<12x288xf32> -> vector<12x288xf32>
    %c0_3 = arith.constant 0 : index
    %c0_4 = arith.constant 0 : index
    %4 = vector.load %arg3[%c0_3, %c0_4] : memref<12x288xf32, #tpu.memory_space<vmem>>, vector<12x288xf32>
    tpu.vector_store %arg3[%c0_3, %c0_4], %3 {strides = array<i32>} : memref<12x288xf32, #tpu.memory_space<vmem>>, vector<12x288xf32>,
    %c12 = arith.constant 12 : index
    %c0_5 = arith.constant 0 : index
    %5 = vector.load %arg0[%c12, %c0_5] : memref<16x32xf32, #tpu.memory_space<vmem>>, vector<2x32xf32>
    %c14 = arith.constant 14 : index
    %c0_6 = arith.constant 0 : index
    %6 = vector.load %arg0[%c14, %c0_6] : memref<16x32xf32, #tpu.memory_space<vmem>>, vector<2x16xf32>
    %c128 = arith.constant 128 : index
    %c0_7 = arith.constant 0 : index
    %7 = vector.load %arg1[%c128, %c0_7] : memref<136x288xbf16, #tpu.memory_space<vmem>>, vector<1x128xbf16>
    %8 = arith.extf %7 : vector<1x128xbf16> to vector<1x128xf32>
    %c48 = arith.constant 48 : index
    %c128_8 = arith.constant 128 : index
    %9 = vector.load %arg1[%c48, %c128_8] : memref<136x288xbf16, #tpu.memory_space<vmem>>, vector<32x128xbf16>
    %10 = arith.truncf %5 : vector<2x32xf32> to vector<2x32xbf16>
    %cst_9 = arith.constant dense<0.000000e+00> : vector<2x128xf32>
    %11 = tpu.matmul %10, %9, %cst_9 {dimension_numbers = #tpu.dot_dimension_numbers<[1], [0], [0], [1], [0, 0, 1, 1], [], []>} : vector<2x32xbf16>, vector<32x128xbf16>, vector<2x128xf32> -> vector<2x128xf32>
    %c80 = arith.constant 80 : index
    %c0_10 = arith.constant 0 : index
    %12 = vector.load %arg1[%c80, %c0_10] : memref<136x288xbf16, #tpu.memory_space<vmem>>, vector<32x128xbf16>
    %13 = arith.truncf %5 : vector<2x32xf32> to vector<2x32xbf16>
    %cst_11 = arith.constant dense<0.000000e+00> : vector<2x128xf32>
    %14 = tpu.matmul %13, %12, %cst_11 {dimension_numbers = #tpu.dot_dimension_numbers<[1], [0], [0], [1], [0, 0, 1, 1], [], []>} : vector<2x32xbf16>, vector<32x128xbf16>, vector<2x128xf32> -> vector<2x128xf32>
    %15 = arith.addf %11, %14 : vector<2x128xf32>
    %16 = vector.broadcast %8 : vector<1x128xf32> to vector<2x128xf32>
    %17 = arith.addf %15, %16 : vector<2x128xf32>
    %18 = vector.extract_strided_slice %17 {offsets = [0, 16], sizes = [2, 16], strides = [1, 1]} : vector<2x128xf32> to vector<2x16xf32>
    %c0_12 = arith.constant 0 : index
    %c0_13 = arith.constant 0 : index
    %19 = vector.load %arg3[%c0_12, %c0_13] : memref<12x288xf32, #tpu.memory_space<vmem>>, vector<2x128xf32>
    %c0_14 = arith.constant 0 : index
    %c128_15 = arith.constant 128 : index
    %20 = vector.load %arg3[%c0_14, %c128_15] : memref<12x288xf32, #tpu.memory_space<vmem>>, vector<2x16xf32>
    %c0_16 = arith.constant 0 : index
    %c144 = arith.constant 144 : index
    %21 = vector.load %arg3[%c0_16, %c144] : memref<12x288xf32, #tpu.memory_space<vmem>>, vector<2x128xf32>
    %c0_17 = arith.constant 0 : index
    %c272 = arith.constant 272 : index
    %22 = vector.load %arg3[%c0_17, %c272] : memref<12x288xf32, #tpu.memory_space<vmem>>, vector<2x16xf32>
    %c16 = arith.constant 16 : index
    %c0_18 = arith.constant 0 : index
    %23 = vector.load %arg1[%c16, %c0_18] : memref<136x288xbf16, #tpu.memory_space<vmem>>, vector<32x128xbf16>
    %24 = arith.truncf %5 : vector<2x32xf32> to vector<2x32xbf16>
    %cst_19 = arith.constant dense<0.000000e+00> : vector<2x128xf32>
    %25 = tpu.matmul %24, %23, %cst_19 {dimension_numbers = #tpu.dot_dimension_numbers<[1], [0], [0], [1], [0, 0, 1, 1], [], []>} : vector<2x32xbf16>, vector<32x128xbf16>, vector<2x128xf32> -> vector<2x128xf32>
    %26 = arith.addf %19, %25 : vector<2x128xf32>
    %27 = arith.negf %26 : vector<2x128xf32>
    %28 = math.exp %27 : vector<2x128xf32>
    %cst_20 = arith.constant 1.000000e+00 : f32
    %29 = vector.broadcast %cst_20 : f32 to vector<2x128xf32>
    %30 = arith.addf %29, %28 : vector<2x128xf32>
    %31 = arith.divf %29, %30 : vector<2x128xf32>
    %32 = math.tanh %26 : vector<2x128xf32>
    %33 = arith.addf %20, %18 : vector<2x16xf32>
    %34 = arith.negf %33 : vector<2x16xf32>
    %35 = math.exp %34 : vector<2x16xf32>
    %cst_21 = arith.constant 1.000000e+00 : f32
    %36 = vector.broadcast %cst_21 : f32 to vector<2x16xf32>
    %37 = arith.addf %36, %35 : vector<2x16xf32>
    %38 = arith.divf %36, %37 : vector<2x16xf32>
    %39 = arith.mulf %38, %6 : vector<2x16xf32>
    %40 = vector.extract_strided_slice %31 {offsets = [0, 32], sizes = [2, 32], strides = [1, 1]} : vector<2x128xf32> to vector<2x32xf32>
    %41 = arith.mulf %40, %5 : vector<2x32xf32>
    %42 = vector.extract_strided_slice %31 {offsets = [0, 0], sizes = [2, 32], strides = [1, 1]} : vector<2x128xf32> to vector<2x32xf32>
    %43 = vector.extract_strided_slice %32 {offsets = [0, 96], sizes = [2, 32], strides = [1, 1]} : vector<2x128xf32> to vector<2x32xf32>
    %44 = arith.mulf %42, %43 : vector<2x32xf32>
    %45 = arith.addf %41, %44 : vector<2x32xf32>
    %c112 = arith.constant 112 : index
    %c0_22 = arith.constant 0 : index
    %46 = vector.load %arg1[%c112, %c0_22] : memref<136x288xbf16, #tpu.memory_space<vmem>>, vector<16x32xbf16>
    %47 = arith.truncf %39 : vector<2x16xf32> to vector<2x16xbf16>
    %cst_23 = arith.constant dense<0.000000e+00> : vector<2x32xf32>
    %48 = tpu.matmul %47, %46, %cst_23 {dimension_numbers = #tpu.dot_dimension_numbers<[1], [0], [0], [1], [0, 0, 1, 1], [], []>} : vector<2x16xbf16>, vector<16x32xbf16>, vector<2x32xf32> -> vector<2x32xf32>
    %49 = math.tanh %48 : vector<2x32xf32>
    %50 = arith.addf %45, %49 : vector<2x32xf32>
    %51 = vector.extract_strided_slice %31 {offsets = [0, 64], sizes = [2, 32], strides = [1, 1]} : vector<2x128xf32> to vector<2x32xf32>
    %52 = math.tanh %50 : vector<2x32xf32>
    %53 = arith.mulf %51, %52 : vector<2x32xf32>
    %c48_24 = arith.constant 48 : index
    %c128_25 = arith.constant 128 : index
    %54 = vector.load %arg1[%c48_24, %c128_25] : memref<136x288xbf16, #tpu.memory_space<vmem>>, vector<32x128xbf16>
    %55 = arith.truncf %53 : vector<2x32xf32> to vector<2x32xbf16>
    %cst_26 = arith.constant dense<0.000000e+00> : vector<2x128xf32>
    %56 = tpu.matmul %55, %54, %cst_26 {dimension_numbers = #tpu.dot_dimension_numbers<[1], [0], [0], [1], [0, 0, 1, 1], [], []>} : vector<2x32xbf16>, vector<32x128xbf16>, vector<2x128xf32> -> vector<2x128xf32>
    %c48_27 = arith.constant 48 : index
    %c0_28 = arith.constant 0 : index
    %57 = vector.load %arg1[%c48_27, %c0_28] : memref<136x288xbf16, #tpu.memory_space<vmem>>, vector<32x128xbf16>
    %58 = arith.truncf %53 : vector<2x32xf32> to vector<2x32xbf16>
    %cst_29 = arith.constant dense<0.000000e+00> : vector<2x128xf32>
    %59 = tpu.matmul %58, %57, %cst_29 {dimension_numbers = #tpu.dot_dimension_numbers<[1], [0], [0], [1], [0, 0, 1, 1], [], []>} : vector<2x32xbf16>, vector<32x128xbf16>, vector<2x128xf32> -> vector<2x128xf32>
    %60 = arith.addf %21, %59 : vector<2x128xf32>
    %c16_30 = arith.constant 16 : index
    %c128_31 = arith.constant 128 : index
    %61 = vector.load %arg1[%c16_30, %c128_31] : memref<136x288xbf16, #tpu.memory_space<vmem>>, vector<32x128xbf16>
    %62 = arith.truncf %5 : vector<2x32xf32> to vector<2x32xbf16>
    %cst_32 = arith.constant dense<0.000000e+00> : vector<2x128xf32>
    %63 = tpu.matmul %62, %61, %cst_32 {dimension_numbers = #tpu.dot_dimension_numbers<[1], [0], [0], [1], [0, 0, 1, 1], [], []>} : vector<2x32xbf16>, vector<32x128xbf16>, vector<2x128xf32> -> vector<2x128xf32>
    %64 = arith.addf %60, %63 : vector<2x128xf32>
    %65 = arith.negf %64 : vector<2x128xf32>
    %66 = math.exp %65 : vector<2x128xf32>
    %cst_33 = arith.constant 1.000000e+00 : f32
    %67 = vector.broadcast %cst_33 : f32 to vector<2x128xf32>
    %68 = arith.addf %67, %66 : vector<2x128xf32>
    %69 = arith.divf %67, %68 : vector<2x128xf32>
    %70 = math.tanh %64 : vector<2x128xf32>
    %71 = vector.extract_strided_slice %56 {offsets = [0, 32], sizes = [2, 16], strides = [1, 1]} : vector<2x128xf32> to vector<2x16xf32>
    %72 = arith.addf %22, %71 : vector<2x16xf32>
    %73 = arith.addf %72, %18 : vector<2x16xf32>
    %74 = arith.negf %73 : vector<2x16xf32>
    %75 = math.exp %74 : vector<2x16xf32>
    %cst_34 = arith.constant 1.000000e+00 : f32
    %76 = vector.broadcast %cst_34 : f32 to vector<2x16xf32>
    %77 = arith.addf %76, %75 : vector<2x16xf32>
    %78 = arith.divf %76, %77 : vector<2x16xf32>
    %79 = arith.mulf %78, %6 : vector<2x16xf32>
    %80 = vector.extract_strided_slice %69 {offsets = [0, 32], sizes = [2, 32], strides = [1, 1]} : vector<2x128xf32> to vector<2x32xf32>
    %81 = arith.mulf %80, %5 : vector<2x32xf32>
    %82 = vector.extract_strided_slice %69 {offsets = [0, 0], sizes = [2, 32], strides = [1, 1]} : vector<2x128xf32> to vector<2x32xf32>
    %83 = vector.extract_strided_slice %70 {offsets = [0, 96], sizes = [2, 32], strides = [1, 1]} : vector<2x128xf32> to vector<2x32xf32>
    %84 = arith.mulf %82, %83 : vector<2x32xf32>
    %85 = arith.addf %81, %84 : vector<2x32xf32>
    %c112_35 = arith.constant 112 : index
    %c32 = arith.constant 32 : index
    %86 = vector.load %arg1[%c112_35, %c32] : memref<136x288xbf16, #tpu.memory_space<vmem>>, vector<16x32xbf16>
    %87 = arith.truncf %79 : vector<2x16xf32> to vector<2x16xbf16>
    %cst_36 = arith.constant dense<0.000000e+00> : vector<2x32xf32>
    %88 = tpu.matmul %87, %86, %cst_36 {dimension_numbers = #tpu.dot_dimension_numbers<[1], [0], [0], [1], [0, 0, 1, 1], [], []>} : vector<2x16xbf16>, vector<16x32xbf16>, vector<2x32xf32> -> vector<2x32xf32>
    %89 = math.tanh %88 : vector<2x32xf32>
    %90 = arith.addf %85, %89 : vector<2x32xf32>
    %91 = vector.extract_strided_slice %69 {offsets = [0, 64], sizes = [2, 32], strides = [1, 1]} : vector<2x128xf32> to vector<2x32xf32>
    %92 = math.tanh %90 : vector<2x32xf32>
    %93 = arith.mulf %91, %92 : vector<2x32xf32>
    %c80_37 = arith.constant 80 : index
    %c0_38 = arith.constant 0 : index
    %94 = vector.load %arg1[%c80_37, %c0_38] : memref<136x288xbf16, #tpu.memory_space<vmem>>, vector<32x128xbf16>
    %95 = arith.truncf %93 : vector<2x32xf32> to vector<2x32xbf16>
    %cst_39 = arith.constant dense<0.000000e+00> : vector<2x128xf32>
    %96 = tpu.matmul %95, %94, %cst_39 {dimension_numbers = #tpu.dot_dimension_numbers<[1], [0], [0], [1], [0, 0, 1, 1], [], []>} : vector<2x32xbf16>, vector<32x128xbf16>, vector<2x128xf32> -> vector<2x128xf32>
    %97 = arith.addf %56, %96 : vector<2x128xf32>
    %98 = vector.broadcast %8 : vector<1x128xf32> to vector<2x128xf32>
    %99 = arith.addf %97, %98 : vector<2x128xf32>
    %c0_40 = arith.constant 0 : index
    %c0_41 = arith.constant 0 : index
    %c0_42 = arith.constant 0 : index
    %100 = vector.load %arg2[%c0_40, %c0_41, %c0_42] : memref<6x2x128xf32, #tpu.memory_space<vmem>>, vector<1x2x128xf32>
    %101 = vector.shape_cast %100 : vector<1x2x128xf32> to vector<2x128xf32>
    %102 = vector.shape_cast %99 : vector<2x128xf32> to vector<1x2x128xf32>
    tpu.vector_store %arg2[%c0_40, %c0_41, %c0_42], %102 {strides = array<i32>} : memref<6x2x128xf32, #tpu.memory_space<vmem>>, vector<1x2x128xf32>,
    %103 = vector.extract_strided_slice %99 {offsets = [0, 16], sizes = [2, 16], strides = [1, 1]} : vector<2x128xf32> to vector<2x16xf32>
    %c2 = arith.constant 2 : index
    %c0_43 = arith.constant 0 : index
    %104 = vector.load %arg3[%c2, %c0_43] : memref<12x288xf32, #tpu.memory_space<vmem>>, vector<2x128xf32>
    %c2_44 = arith.constant 2 : index
    %c128_45 = arith.constant 128 : index
    %105 = vector.load %arg3[%c2_44, %c128_45] : memref<12x288xf32, #tpu.memory_space<vmem>>, vector<2x16xf32>
    %c2_46 = arith.constant 2 : index
    %c144_47 = arith.constant 144 : index
    %106 = vector.load %arg3[%c2_46, %c144_47] : memref<12x288xf32, #tpu.memory_space<vmem>>, vector<2x128xf32>
    %c2_48 = arith.constant 2 : index
    %c272_49 = arith.constant 272 : index
    %107 = vector.load %arg3[%c2_48, %c272_49] : memref<12x288xf32, #tpu.memory_space<vmem>>, vector<2x16xf32>
    %c16_50 = arith.constant 16 : index
    %c0_51 = arith.constant 0 : index
    %108 = vector.load %arg1[%c16_50, %c0_51] : memref<136x288xbf16, #tpu.memory_space<vmem>>, vector<32x128xbf16>
    %109 = arith.truncf %53 : vector<2x32xf32> to vector<2x32xbf16>
    %cst_52 = arith.constant dense<0.000000e+00> : vector<2x128xf32>
    %110 = tpu.matmul %109, %108, %cst_52 {dimension_numbers = #tpu.dot_dimension_numbers<[1], [0], [0], [1], [0, 0, 1, 1], [], []>} : vector<2x32xbf16>, vector<32x128xbf16>, vector<2x128xf32> -> vector<2x128xf32>
    %111 = arith.addf %104, %110 : vector<2x128xf32>
    %112 = arith.negf %111 : vector<2x128xf32>
    %113 = math.exp %112 : vector<2x128xf32>
    %cst_53 = arith.constant 1.000000e+00 : f32
    %114 = vector.broadcast %cst_53 : f32 to vector<2x128xf32>
    %115 = arith.addf %114, %113 : vector<2x128xf32>
    %116 = arith.divf %114, %115 : vector<2x128xf32>
    %117 = math.tanh %111 : vector<2x128xf32>
    %118 = arith.addf %105, %103 : vector<2x16xf32>
    %119 = arith.negf %118 : vector<2x16xf32>
    %120 = math.exp %119 : vector<2x16xf32>
    %cst_54 = arith.constant 1.000000e+00 : f32
    %121 = vector.broadcast %cst_54 : f32 to vector<2x16xf32>
    %122 = arith.addf %121, %120 : vector<2x16xf32>
    %123 = arith.divf %121, %122 : vector<2x16xf32>
    %124 = arith.mulf %123, %39 : vector<2x16xf32>
    %125 = vector.extract_strided_slice %116 {offsets = [0, 32], sizes = [2, 32], strides = [1, 1]} : vector<2x128xf32> to vector<2x32xf32>
    %126 = arith.mulf %125, %50 : vector<2x32xf32>
    %127 = vector.extract_strided_slice %116 {offsets = [0, 0], sizes = [2, 32], strides = [1, 1]} : vector<2x128xf32> to vector<2x32xf32>
    %128 = vector.extract_strided_slice %117 {offsets = [0, 96], sizes = [2, 32], strides = [1, 1]} : vector<2x128xf32> to vector<2x32xf32>
    %129 = arith.mulf %127, %128 : vector<2x32xf32>
    %130 = arith.addf %126, %129 : vector<2x32xf32>
    %c112_55 = arith.constant 112 : index
    %c0_56 = arith.constant 0 : index
    %131 = vector.load %arg1[%c112_55, %c0_56] : memref<136x288xbf16, #tpu.memory_space<vmem>>, vector<16x32xbf16>
    %132 = arith.truncf %124 : vector<2x16xf32> to vector<2x16xbf16>
    %cst_57 = arith.constant dense<0.000000e+00> : vector<2x32xf32>
    %133 = tpu.matmul %132, %131, %cst_57 {dimension_numbers = #tpu.dot_dimension_numbers<[1], [0], [0], [1], [0, 0, 1, 1], [], []>} : vector<2x16xbf16>, vector<16x32xbf16>, vector<2x32xf32> -> vector<2x32xf32>
    %134 = math.tanh %133 : vector<2x32xf32>
    %135 = arith.addf %130, %134 : vector<2x32xf32>
    %136 = vector.extract_strided_slice %116 {offsets = [0, 64], sizes = [2, 32], strides = [1, 1]} : vector<2x128xf32> to vector<2x32xf32>
    %137 = math.tanh %135 : vector<2x32xf32>
    %138 = arith.mulf %136, %137 : vector<2x32xf32>
    %c48_58 = arith.constant 48 : index
    %c128_59 = arith.constant 128 : index
    %139 = vector.load %arg1[%c48_58, %c128_59] : memref<136x288xbf16, #tpu.memory_space<vmem>>, vector<32x128xbf16>
    %140 = arith.truncf %138 : vector<2x32xf32> to vector<2x32xbf16>
    %cst_60 = arith.constant dense<0.000000e+00> : vector<2x128xf32>
    %141 = tpu.matmul %140, %139, %cst_60 {dimension_numbers = #tpu.dot_dimension_numbers<[1], [0], [0], [1], [0, 0, 1, 1], [], []>} : vector<2x32xbf16>, vector<32x128xbf16>, vector<2x128xf32> -> vector<2x128xf32>
    %c48_61 = arith.constant 48 : index
    %c0_62 = arith.constant 0 : index
    %142 = vector.load %arg1[%c48_61, %c0_62] : memref<136x288xbf16, #tpu.memory_space<vmem>>, vector<32x128xbf16>
    %143 = arith.truncf %138 : vector<2x32xf32> to vector<2x32xbf16>
    %cst_63 = arith.constant dense<0.000000e+00> : vector<2x128xf32>
    %144 = tpu.matmul %143, %142, %cst_63 {dimension_numbers = #tpu.dot_dimension_numbers<[1], [0], [0], [1], [0, 0, 1, 1], [], []>} : vector<2x32xbf16>, vector<32x128xbf16>, vector<2x128xf32> -> vector<2x128xf32>
    %145 = arith.addf %106, %144 : vector<2x128xf32>
    %c16_64 = arith.constant 16 : index
    %c128_65 = arith.constant 128 : index
    %146 = vector.load %arg1[%c16_64, %c128_65] : memref<136x288xbf16, #tpu.memory_space<vmem>>, vector<32x128xbf16>
    %147 = arith.truncf %93 : vector<2x32xf32> to vector<2x32xbf16>
    %cst_66 = arith.constant dense<0.000000e+00> : vector<2x128xf32>
    %148 = tpu.matmul %147, %146, %cst_66 {dimension_numbers = #tpu.dot_dimension_numbers<[1], [0], [0], [1], [0, 0, 1, 1], [], []>} : vector<2x32xbf16>, vector<32x128xbf16>, vector<2x128xf32> -> vector<2x128xf32>
    %149 = arith.addf %145, %148 : vector<2x128xf32>
    %150 = arith.negf %149 : vector<2x128xf32>
    %151 = math.exp %150 : vector<2x128xf32>
    %cst_67 = arith.constant 1.000000e+00 : f32
    %152 = vector.broadcast %cst_67 : f32 to vector<2x128xf32>
    %153 = arith.addf %152, %151 : vector<2x128xf32>
    %154 = arith.divf %152, %153 : vector<2x128xf32>
    %155 = math.tanh %149 : vector<2x128xf32>
    %156 = vector.extract_strided_slice %141 {offsets = [0, 32], sizes = [2, 16], strides = [1, 1]} : vector<2x128xf32> to vector<2x16xf32>
    %157 = arith.addf %107, %156 : vector<2x16xf32>
    %158 = arith.addf %157, %103 : vector<2x16xf32>
    %159 = arith.negf %158 : vector<2x16xf32>
    %160 = math.exp %159 : vector<2x16xf32>
    %cst_68 = arith.constant 1.000000e+00 : f32
    %161 = vector.broadcast %cst_68 : f32 to vector<2x16xf32>
    %162 = arith.addf %161, %160 : vector<2x16xf32>
    %163 = arith.divf %161, %162 : vector<2x16xf32>
    %164 = arith.mulf %163, %79 : vector<2x16xf32>
    %165 = vector.extract_strided_slice %154 {offsets = [0, 32], sizes = [2, 32], strides = [1, 1]} : vector<2x128xf32> to vector<2x32xf32>
    %166 = arith.mulf %165, %90 : vector<2x32xf32>
    %167 = vector.extract_strided_slice %154 {offsets = [0, 0], sizes = [2, 32], strides = [1, 1]} : vector<2x128xf32> to vector<2x32xf32>
    %168 = vector.extract_strided_slice %155 {offsets = [0, 96], sizes = [2, 32], strides = [1, 1]} : vector<2x128xf32> to vector<2x32xf32>
    %169 = arith.mulf %167, %168 : vector<2x32xf32>
    %170 = arith.addf %166, %169 : vector<2x32xf32>
    %c112_69 = arith.constant 112 : index
    %c32_70 = arith.constant 32 : index
    %171 = vector.load %arg1[%c112_69, %c32_70] : memref<136x288xbf16, #tpu.memory_space<vmem>>, vector<16x32xbf16>
    %172 = arith.truncf %164 : vector<2x16xf32> to vector<2x16xbf16>
    %cst_71 = arith.constant dense<0.000000e+00> : vector<2x32xf32>
    %173 = tpu.matmul %172, %171, %cst_71 {dimension_numbers = #tpu.dot_dimension_numbers<[1], [0], [0], [1], [0, 0, 1, 1], [], []>} : vector<2x16xbf16>, vector<16x32xbf16>, vector<2x32xf32> -> vector<2x32xf32>
    %174 = math.tanh %173 : vector<2x32xf32>
    %175 = arith.addf %170, %174 : vector<2x32xf32>
    %176 = vector.extract_strided_slice %154 {offsets = [0, 64], sizes = [2, 32], strides = [1, 1]} : vector<2x128xf32> to vector<2x32xf32>
    %177 = math.tanh %175 : vector<2x32xf32>
    %178 = arith.mulf %176, %177 : vector<2x32xf32>
    %c80_72 = arith.constant 80 : index
    %c0_73 = arith.constant 0 : index
    %179 = vector.load %arg1[%c80_72, %c0_73] : memref<136x288xbf16, #tpu.memory_space<vmem>>, vector<32x128xbf16>
    %180 = arith.truncf %178 : vector<2x32xf32> to vector<2x32xbf16>
    %cst_74 = arith.constant dense<0.000000e+00> : vector<2x128xf32>
    %181 = tpu.matmul %180, %179, %cst_74 {dimension_numbers = #tpu.dot_dimension_numbers<[1], [0], [0], [1], [0, 0, 1, 1], [], []>} : vector<2x32xbf16>, vector<32x128xbf16>, vector<2x128xf32> -> vector<2x128xf32>
    %182 = arith.addf %141, %181 : vector<2x128xf32>
    %183 = vector.broadcast %8 : vector<1x128xf32> to vector<2x128xf32>
    %184 = arith.addf %182, %183 : vector<2x128xf32>
    %c1 = arith.constant 1 : index
    %c0_75 = arith.constant 0 : index
    %c0_76 = arith.constant 0 : index
    %185 = vector.load %arg2[%c1, %c0_75, %c0_76] : memref<6x2x128xf32, #tpu.memory_space<vmem>>, vector<1x2x128xf32>
    %186 = vector.shape_cast %185 : vector<1x2x128xf32> to vector<2x128xf32>
    %187 = vector.shape_cast %184 : vector<2x128xf32> to vector<1x2x128xf32>
    tpu.vector_store %arg2[%c1, %c0_75, %c0_76], %187 {strides = array<i32>} : memref<6x2x128xf32, #tpu.memory_space<vmem>>, vector<1x2x128xf32>,
    %188 = vector.extract_strided_slice %184 {offsets = [0, 16], sizes = [2, 16], strides = [1, 1]} : vector<2x128xf32> to vector<2x16xf32>
    %c4 = arith.constant 4 : index
    %c0_77 = arith.constant 0 : index
    %189 = vector.load %arg3[%c4, %c0_77] : memref<12x288xf32, #tpu.memory_space<vmem>>, vector<2x128xf32>
    %c4_78 = arith.constant 4 : index
    %c128_79 = arith.constant 128 : index
    %190 = vector.load %arg3[%c4_78, %c128_79] : memref<12x288xf32, #tpu.memory_space<vmem>>, vector<2x16xf32>
    %c4_80 = arith.constant 4 : index
    %c144_81 = arith.constant 144 : index
    %191 = vector.load %arg3[%c4_80, %c144_81] : memref<12x288xf32, #tpu.memory_space<vmem>>, vector<2x128xf32>
    %c4_82 = arith.constant 4 : index
    %c272_83 = arith.constant 272 : index
    %192 = vector.load %arg3[%c4_82, %c272_83] : memref<12x288xf32, #tpu.memory_space<vmem>>, vector<2x16xf32>
    %c16_84 = arith.constant 16 : index
    %c0_85 = arith.constant 0 : index
    %193 = vector.load %arg1[%c16_84, %c0_85] : memref<136x288xbf16, #tpu.memory_space<vmem>>, vector<32x128xbf16>
    %194 = arith.truncf %138 : vector<2x32xf32> to vector<2x32xbf16>
    %cst_86 = arith.constant dense<0.000000e+00> : vector<2x128xf32>
    %195 = tpu.matmul %194, %193, %cst_86 {dimension_numbers = #tpu.dot_dimension_numbers<[1], [0], [0], [1], [0, 0, 1, 1], [], []>} : vector<2x32xbf16>, vector<32x128xbf16>, vector<2x128xf32> -> vector<2x128xf32>
    %196 = arith.addf %189, %195 : vector<2x128xf32>
    %197 = arith.negf %196 : vector<2x128xf32>
    %198 = math.exp %197 : vector<2x128xf32>
    %cst_87 = arith.constant 1.000000e+00 : f32
    %199 = vector.broadcast %cst_87 : f32 to vector<2x128xf32>
    %200 = arith.addf %199, %198 : vector<2x128xf32>
    %201 = arith.divf %199, %200 : vector<2x128xf32>
    %202 = math.tanh %196 : vector<2x128xf32>
    %203 = arith.addf %190, %188 : vector<2x16xf32>
    %204 = arith.negf %203 : vector<2x16xf32>
    %205 = math.exp %204 : vector<2x16xf32>
    %cst_88 = arith.constant 1.000000e+00 : f32
    %206 = vector.broadcast %cst_88 : f32 to vector<2x16xf32>
    %207 = arith.addf %206, %205 : vector<2x16xf32>
    %208 = arith.divf %206, %207 : vector<2x16xf32>
    %209 = arith.mulf %208, %124 : vector<2x16xf32>
    %210 = vector.extract_strided_slice %201 {offsets = [0, 32], sizes = [2, 32], strides = [1, 1]} : vector<2x128xf32> to vector<2x32xf32>
    %211 = arith.mulf %210, %135 : vector<2x32xf32>
    %212 = vector.extract_strided_slice %201 {offsets = [0, 0], sizes = [2, 32], strides = [1, 1]} : vector<2x128xf32> to vector<2x32xf32>
    %213 = vector.extract_strided_slice %202 {offsets = [0, 96], sizes = [2, 32], strides = [1, 1]} : vector<2x128xf32> to vector<2x32xf32>
    %214 = arith.mulf %212, %213 : vector<2x32xf32>
    %215 = arith.addf %211, %214 : vector<2x32xf32>
    %c112_89 = arith.constant 112 : index
    %c0_90 = arith.constant 0 : index
    %216 = vector.load %arg1[%c112_89, %c0_90] : memref<136x288xbf16, #tpu.memory_space<vmem>>, vector<16x32xbf16>
    %217 = arith.truncf %209 : vector<2x16xf32> to vector<2x16xbf16>
    %cst_91 = arith.constant dense<0.000000e+00> : vector<2x32xf32>
    %218 = tpu.matmul %217, %216, %cst_91 {dimension_numbers = #tpu.dot_dimension_numbers<[1], [0], [0], [1], [0, 0, 1, 1], [], []>} : vector<2x16xbf16>, vector<16x32xbf16>, vector<2x32xf32> -> vector<2x32xf32>
    %219 = math.tanh %218 : vector<2x32xf32>
    %220 = arith.addf %215, %219 : vector<2x32xf32>
    %221 = vector.extract_strided_slice %201 {offsets = [0, 64], sizes = [2, 32], strides = [1, 1]} : vector<2x128xf32> to vector<2x32xf32>
    %222 = math.tanh %220 : vector<2x32xf32>
    %223 = arith.mulf %221, %222 : vector<2x32xf32>
    %c48_92 = arith.constant 48 : index
    %c128_93 = arith.constant 128 : index
    %224 = vector.load %arg1[%c48_92, %c128_93] : memref<136x288xbf16, #tpu.memory_space<vmem>>, vector<32x128xbf16>
    %225 = arith.truncf %223 : vector<2x32xf32> to vector<2x32xbf16>
    %cst_94 = arith.constant dense<0.000000e+00> : vector<2x128xf32>
    %226 = tpu.matmul %225, %224, %cst_94 {dimension_numbers = #tpu.dot_dimension_numbers<[1], [0], [0], [1], [0, 0, 1, 1], [], []>} : vector<2x32xbf16>, vector<32x128xbf16>, vector<2x128xf32> -> vector<2x128xf32>
    %c48_95 = arith.constant 48 : index
    %c0_96 = arith.constant 0 : index
    %227 = vector.load %arg1[%c48_95, %c0_96] : memref<136x288xbf16, #tpu.memory_space<vmem>>, vector<32x128xbf16>
    %228 = arith.truncf %223 : vector<2x32xf32> to vector<2x32xbf16>
    %cst_97 = arith.constant dense<0.000000e+00> : vector<2x128xf32>
    %229 = tpu.matmul %228, %227, %cst_97 {dimension_numbers = #tpu.dot_dimension_numbers<[1], [0], [0], [1], [0, 0, 1, 1], [], []>} : vector<2x32xbf16>, vector<32x128xbf16>, vector<2x128xf32> -> vector<2x128xf32>
    %230 = arith.addf %191, %229 : vector<2x128xf32>
    %c16_98 = arith.constant 16 : index
    %c128_99 = arith.constant 128 : index
    %231 = vector.load %arg1[%c16_98, %c128_99] : memref<136x288xbf16, #tpu.memory_space<vmem>>, vector<32x128xbf16>
    %232 = arith.truncf %178 : vector<2x32xf32> to vector<2x32xbf16>
    %cst_100 = arith.constant dense<0.000000e+00> : vector<2x128xf32>
    %233 = tpu.matmul %232, %231, %cst_100 {dimension_numbers = #tpu.dot_dimension_numbers<[1], [0], [0], [1], [0, 0, 1, 1], [], []>} : vector<2x32xbf16>, vector<32x128xbf16>, vector<2x128xf32> -> vector<2x128xf32>
    %234 = arith.addf %230, %233 : vector<2x128xf32>
    %235 = arith.negf %234 : vector<2x128xf32>
    %236 = math.exp %235 : vector<2x128xf32>
    %cst_101 = arith.constant 1.000000e+00 : f32
    %237 = vector.broadcast %cst_101 : f32 to vector<2x128xf32>
    %238 = arith.addf %237, %236 : vector<2x128xf32>
    %239 = arith.divf %237, %238 : vector<2x128xf32>
    %240 = math.tanh %234 : vector<2x128xf32>
    %241 = vector.extract_strided_slice %226 {offsets = [0, 32], sizes = [2, 16], strides = [1, 1]} : vector<2x128xf32> to vector<2x16xf32>
    %242 = arith.addf %192, %241 : vector<2x16xf32>
    %243 = arith.addf %242, %188 : vector<2x16xf32>
    %244 = arith.negf %243 : vector<2x16xf32>
    %245 = math.exp %244 : vector<2x16xf32>
    %cst_102 = arith.constant 1.000000e+00 : f32
    %246 = vector.broadcast %cst_102 : f32 to vector<2x16xf32>
    %247 = arith.addf %246, %245 : vector<2x16xf32>
    %248 = arith.divf %246, %247 : vector<2x16xf32>
    %249 = arith.mulf %248, %164 : vector<2x16xf32>
    %250 = vector.extract_strided_slice %239 {offsets = [0, 32], sizes = [2, 32], strides = [1, 1]} : vector<2x128xf32> to vector<2x32xf32>
    %251 = arith.mulf %250, %175 : vector<2x32xf32>
    %252 = vector.extract_strided_slice %239 {offsets = [0, 0], sizes = [2, 32], strides = [1, 1]} : vector<2x128xf32> to vector<2x32xf32>
    %253 = vector.extract_strided_slice %240 {offsets = [0, 96], sizes = [2, 32], strides = [1, 1]} : vector<2x128xf32> to vector<2x32xf32>
    %254 = arith.mulf %252, %253 : vector<2x32xf32>
    %255 = arith.addf %251, %254 : vector<2x32xf32>
    %c112_103 = arith.constant 112 : index
    %c32_104 = arith.constant 32 : index
    %256 = vector.load %arg1[%c112_103, %c32_104] : memref<136x288xbf16, #tpu.memory_space<vmem>>, vector<16x32xbf16>
    %257 = arith.truncf %249 : vector<2x16xf32> to vector<2x16xbf16>
    %cst_105 = arith.constant dense<0.000000e+00> : vector<2x32xf32>
    %258 = tpu.matmul %257, %256, %cst_105 {dimension_numbers = #tpu.dot_dimension_numbers<[1], [0], [0], [1], [0, 0, 1, 1], [], []>} : vector<2x16xbf16>, vector<16x32xbf16>, vector<2x32xf32> -> vector<2x32xf32>
    %259 = math.tanh %258 : vector<2x32xf32>
    %260 = arith.addf %255, %259 : vector<2x32xf32>
    %261 = vector.extract_strided_slice %239 {offsets = [0, 64], sizes = [2, 32], strides = [1, 1]} : vector<2x128xf32> to vector<2x32xf32>
    %262 = math.tanh %260 : vector<2x32xf32>
    %263 = arith.mulf %261, %262 : vector<2x32xf32>
    %c80_106 = arith.constant 80 : index
    %c0_107 = arith.constant 0 : index
    %264 = vector.load %arg1[%c80_106, %c0_107] : memref<136x288xbf16, #tpu.memory_space<vmem>>, vector<32x128xbf16>
    %265 = arith.truncf %263 : vector<2x32xf32> to vector<2x32xbf16>
    %cst_108 = arith.constant dense<0.000000e+00> : vector<2x128xf32>
    %266 = tpu.matmul %265, %264, %cst_108 {dimension_numbers = #tpu.dot_dimension_numbers<[1], [0], [0], [1], [0, 0, 1, 1], [], []>} : vector<2x32xbf16>, vector<32x128xbf16>, vector<2x128xf32> -> vector<2x128xf32>
    %267 = arith.addf %226, %266 : vector<2x128xf32>
    %268 = vector.broadcast %8 : vector<1x128xf32> to vector<2x128xf32>
    %269 = arith.addf %267, %268 : vector<2x128xf32>
    %c2_109 = arith.constant 2 : index
    %c0_110 = arith.constant 0 : index
    %c0_111 = arith.constant 0 : index
    %270 = vector.load %arg2[%c2_109, %c0_110, %c0_111] : memref<6x2x128xf32, #tpu.memory_space<vmem>>, vector<1x2x128xf32>
    %271 = vector.shape_cast %270 : vector<1x2x128xf32> to vector<2x128xf32>
    %272 = vector.shape_cast %269 : vector<2x128xf32> to vector<1x2x128xf32>
    tpu.vector_store %arg2[%c2_109, %c0_110, %c0_111], %272 {strides = array<i32>} : memref<6x2x128xf32, #tpu.memory_space<vmem>>, vector<1x2x128xf32>,
    %273 = vector.extract_strided_slice %269 {offsets = [0, 16], sizes = [2, 16], strides = [1, 1]} : vector<2x128xf32> to vector<2x16xf32>
    %c6 = arith.constant 6 : index
    %c0_112 = arith.constant 0 : index
    %274 = vector.load %arg3[%c6, %c0_112] : memref<12x288xf32, #tpu.memory_space<vmem>>, vector<2x128xf32>
    %c6_113 = arith.constant 6 : index
    %c128_114 = arith.constant 128 : index
    %275 = vector.load %arg3[%c6_113, %c128_114] : memref<12x288xf32, #tpu.memory_space<vmem>>, vector<2x16xf32>
    %c6_115 = arith.constant 6 : index
    %c144_116 = arith.constant 144 : index
    %276 = vector.load %arg3[%c6_115, %c144_116] : memref<12x288xf32, #tpu.memory_space<vmem>>, vector<2x128xf32>
    %c6_117 = arith.constant 6 : index
    %c272_118 = arith.constant 272 : index
    %277 = vector.load %arg3[%c6_117, %c272_118] : memref<12x288xf32, #tpu.memory_space<vmem>>, vector<2x16xf32>
    %c16_119 = arith.constant 16 : index
    %c0_120 = arith.constant 0 : index
    %278 = vector.load %arg1[%c16_119, %c0_120] : memref<136x288xbf16, #tpu.memory_space<vmem>>, vector<32x128xbf16>
    %279 = arith.truncf %223 : vector<2x32xf32> to vector<2x32xbf16>
    %cst_121 = arith.constant dense<0.000000e+00> : vector<2x128xf32>
    %280 = tpu.matmul %279, %278, %cst_121 {dimension_numbers = #tpu.dot_dimension_numbers<[1], [0], [0], [1], [0, 0, 1, 1], [], []>} : vector<2x32xbf16>, vector<32x128xbf16>, vector<2x128xf32> -> vector<2x128xf32>
    %281 = arith.addf %274, %280 : vector<2x128xf32>
    %282 = arith.negf %281 : vector<2x128xf32>
    %283 = math.exp %282 : vector<2x128xf32>
    %cst_122 = arith.constant 1.000000e+00 : f32
    %284 = vector.broadcast %cst_122 : f32 to vector<2x128xf32>
    %285 = arith.addf %284, %283 : vector<2x128xf32>
    %286 = arith.divf %284, %285 : vector<2x128xf32>
    %287 = math.tanh %281 : vector<2x128xf32>
    %288 = arith.addf %275, %273 : vector<2x16xf32>
    %289 = arith.negf %288 : vector<2x16xf32>
    %290 = math.exp %289 : vector<2x16xf32>
    %cst_123 = arith.constant 1.000000e+00 : f32
    %291 = vector.broadcast %cst_123 : f32 to vector<2x16xf32>
    %292 = arith.addf %291, %290 : vector<2x16xf32>
    %293 = arith.divf %291, %292 : vector<2x16xf32>
    %294 = arith.mulf %293, %209 : vector<2x16xf32>
    %295 = vector.extract_strided_slice %286 {offsets = [0, 32], sizes = [2, 32], strides = [1, 1]} : vector<2x128xf32> to vector<2x32xf32>
    %296 = arith.mulf %295, %220 : vector<2x32xf32>
    %297 = vector.extract_strided_slice %286 {offsets = [0, 0], sizes = [2, 32], strides = [1, 1]} : vector<2x128xf32> to vector<2x32xf32>
    %298 = vector.extract_strided_slice %287 {offsets = [0, 96], sizes = [2, 32], strides = [1, 1]} : vector<2x128xf32> to vector<2x32xf32>
    %299 = arith.mulf %297, %298 : vector<2x32xf32>
    %300 = arith.addf %296, %299 : vector<2x32xf32>
    %c112_124 = arith.constant 112 : index
    %c0_125 = arith.constant 0 : index
    %301 = vector.load %arg1[%c112_124, %c0_125] : memref<136x288xbf16, #tpu.memory_space<vmem>>, vector<16x32xbf16>
    %302 = arith.truncf %294 : vector<2x16xf32> to vector<2x16xbf16>
    %cst_126 = arith.constant dense<0.000000e+00> : vector<2x32xf32>
    %303 = tpu.matmul %302, %301, %cst_126 {dimension_numbers = #tpu.dot_dimension_numbers<[1], [0], [0], [1], [0, 0, 1, 1], [], []>} : vector<2x16xbf16>, vector<16x32xbf16>, vector<2x32xf32> -> vector<2x32xf32>
    %304 = math.tanh %303 : vector<2x32xf32>
    %305 = arith.addf %300, %304 : vector<2x32xf32>
    %306 = vector.extract_strided_slice %286 {offsets = [0, 64], sizes = [2, 32], strides = [1, 1]} : vector<2x128xf32> to vector<2x32xf32>
    %307 = math.tanh %305 : vector<2x32xf32>
    %308 = arith.mulf %306, %307 : vector<2x32xf32>
    %c48_127 = arith.constant 48 : index
    %c128_128 = arith.constant 128 : index
    %309 = vector.load %arg1[%c48_127, %c128_128] : memref<136x288xbf16, #tpu.memory_space<vmem>>, vector<32x128xbf16>
    %310 = arith.truncf %308 : vector<2x32xf32> to vector<2x32xbf16>
    %cst_129 = arith.constant dense<0.000000e+00> : vector<2x128xf32>
    %311 = tpu.matmul %310, %309, %cst_129 {dimension_numbers = #tpu.dot_dimension_numbers<[1], [0], [0], [1], [0, 0, 1, 1], [], []>} : vector<2x32xbf16>, vector<32x128xbf16>, vector<2x128xf32> -> vector<2x128xf32>
    %c48_130 = arith.constant 48 : index
    %c0_131 = arith.constant 0 : index
    %312 = vector.load %arg1[%c48_130, %c0_131] : memref<136x288xbf16, #tpu.memory_space<vmem>>, vector<32x128xbf16>
    %313 = arith.truncf %308 : vector<2x32xf32> to vector<2x32xbf16>
    %cst_132 = arith.constant dense<0.000000e+00> : vector<2x128xf32>
    %314 = tpu.matmul %313, %312, %cst_132 {dimension_numbers = #tpu.dot_dimension_numbers<[1], [0], [0], [1], [0, 0, 1, 1], [], []>} : vector<2x32xbf16>, vector<32x128xbf16>, vector<2x128xf32> -> vector<2x128xf32>
    %315 = arith.addf %276, %314 : vector<2x128xf32>
    %c16_133 = arith.constant 16 : index
    %c128_134 = arith.constant 128 : index
    %316 = vector.load %arg1[%c16_133, %c128_134] : memref<136x288xbf16, #tpu.memory_space<vmem>>, vector<32x128xbf16>
    %317 = arith.truncf %263 : vector<2x32xf32> to vector<2x32xbf16>
    %cst_135 = arith.constant dense<0.000000e+00> : vector<2x128xf32>
    %318 = tpu.matmul %317, %316, %cst_135 {dimension_numbers = #tpu.dot_dimension_numbers<[1], [0], [0], [1], [0, 0, 1, 1], [], []>} : vector<2x32xbf16>, vector<32x128xbf16>, vector<2x128xf32> -> vector<2x128xf32>
    %319 = arith.addf %315, %318 : vector<2x128xf32>
    %320 = arith.negf %319 : vector<2x128xf32>
    %321 = math.exp %320 : vector<2x128xf32>
    %cst_136 = arith.constant 1.000000e+00 : f32
    %322 = vector.broadcast %cst_136 : f32 to vector<2x128xf32>
    %323 = arith.addf %322, %321 : vector<2x128xf32>
    %324 = arith.divf %322, %323 : vector<2x128xf32>
    %325 = math.tanh %319 : vector<2x128xf32>
    %326 = vector.extract_strided_slice %311 {offsets = [0, 32], sizes = [2, 16], strides = [1, 1]} : vector<2x128xf32> to vector<2x16xf32>
    %327 = arith.addf %277, %326 : vector<2x16xf32>
    %328 = arith.addf %327, %273 : vector<2x16xf32>
    %329 = arith.negf %328 : vector<2x16xf32>
    %330 = math.exp %329 : vector<2x16xf32>
    %cst_137 = arith.constant 1.000000e+00 : f32
    %331 = vector.broadcast %cst_137 : f32 to vector<2x16xf32>
    %332 = arith.addf %331, %330 : vector<2x16xf32>
    %333 = arith.divf %331, %332 : vector<2x16xf32>
    %334 = arith.mulf %333, %249 : vector<2x16xf32>
    %335 = vector.extract_strided_slice %324 {offsets = [0, 32], sizes = [2, 32], strides = [1, 1]} : vector<2x128xf32> to vector<2x32xf32>
    %336 = arith.mulf %335, %260 : vector<2x32xf32>
    %337 = vector.extract_strided_slice %324 {offsets = [0, 0], sizes = [2, 32], strides = [1, 1]} : vector<2x128xf32> to vector<2x32xf32>
    %338 = vector.extract_strided_slice %325 {offsets = [0, 96], sizes = [2, 32], strides = [1, 1]} : vector<2x128xf32> to vector<2x32xf32>
    %339 = arith.mulf %337, %338 : vector<2x32xf32>
    %340 = arith.addf %336, %339 : vector<2x32xf32>
    %c112_138 = arith.constant 112 : index
    %c32_139 = arith.constant 32 : index
    %341 = vector.load %arg1[%c112_138, %c32_139] : memref<136x288xbf16, #tpu.memory_space<vmem>>, vector<16x32xbf16>
    %342 = arith.truncf %334 : vector<2x16xf32> to vector<2x16xbf16>
    %cst_140 = arith.constant dense<0.000000e+00> : vector<2x32xf32>
    %343 = tpu.matmul %342, %341, %cst_140 {dimension_numbers = #tpu.dot_dimension_numbers<[1], [0], [0], [1], [0, 0, 1, 1], [], []>} : vector<2x16xbf16>, vector<16x32xbf16>, vector<2x32xf32> -> vector<2x32xf32>
    %344 = math.tanh %343 : vector<2x32xf32>
    %345 = arith.addf %340, %344 : vector<2x32xf32>
    %346 = vector.extract_strided_slice %324 {offsets = [0, 64], sizes = [2, 32], strides = [1, 1]} : vector<2x128xf32> to vector<2x32xf32>
    %347 = math.tanh %345 : vector<2x32xf32>
    %348 = arith.mulf %346, %347 : vector<2x32xf32>
    %c80_141 = arith.constant 80 : index
    %c0_142 = arith.constant 0 : index
    %349 = vector.load %arg1[%c80_141, %c0_142] : memref<136x288xbf16, #tpu.memory_space<vmem>>, vector<32x128xbf16>
    %350 = arith.truncf %348 : vector<2x32xf32> to vector<2x32xbf16>
    %cst_143 = arith.constant dense<0.000000e+00> : vector<2x128xf32>
    %351 = tpu.matmul %350, %349, %cst_143 {dimension_numbers = #tpu.dot_dimension_numbers<[1], [0], [0], [1], [0, 0, 1, 1], [], []>} : vector<2x32xbf16>, vector<32x128xbf16>, vector<2x128xf32> -> vector<2x128xf32>
    %352 = arith.addf %311, %351 : vector<2x128xf32>
    %353 = vector.broadcast %8 : vector<1x128xf32> to vector<2x128xf32>
    %354 = arith.addf %352, %353 : vector<2x128xf32>
    %c3 = arith.constant 3 : index
    %c0_144 = arith.constant 0 : index
    %c0_145 = arith.constant 0 : index
    %355 = vector.load %arg2[%c3, %c0_144, %c0_145] : memref<6x2x128xf32, #tpu.memory_space<vmem>>, vector<1x2x128xf32>
    %356 = vector.shape_cast %355 : vector<1x2x128xf32> to vector<2x128xf32>
    %357 = vector.shape_cast %354 : vector<2x128xf32> to vector<1x2x128xf32>
    tpu.vector_store %arg2[%c3, %c0_144, %c0_145], %357 {strides = array<i32>} : memref<6x2x128xf32, #tpu.memory_space<vmem>>, vector<1x2x128xf32>,
    %358 = vector.extract_strided_slice %354 {offsets = [0, 16], sizes = [2, 16], strides = [1, 1]} : vector<2x128xf32> to vector<2x16xf32>
    %c8 = arith.constant 8 : index
    %c0_146 = arith.constant 0 : index
    %359 = vector.load %arg3[%c8, %c0_146] : memref<12x288xf32, #tpu.memory_space<vmem>>, vector<2x128xf32>
    %c8_147 = arith.constant 8 : index
    %c128_148 = arith.constant 128 : index
    %360 = vector.load %arg3[%c8_147, %c128_148] : memref<12x288xf32, #tpu.memory_space<vmem>>, vector<2x16xf32>
    %c8_149 = arith.constant 8 : index
    %c144_150 = arith.constant 144 : index
    %361 = vector.load %arg3[%c8_149, %c144_150] : memref<12x288xf32, #tpu.memory_space<vmem>>, vector<2x128xf32>
    %c8_151 = arith.constant 8 : index
    %c272_152 = arith.constant 272 : index
    %362 = vector.load %arg3[%c8_151, %c272_152] : memref<12x288xf32, #tpu.memory_space<vmem>>, vector<2x16xf32>
    %c16_153 = arith.constant 16 : index
    %c0_154 = arith.constant 0 : index
    %363 = vector.load %arg1[%c16_153, %c0_154] : memref<136x288xbf16, #tpu.memory_space<vmem>>, vector<32x128xbf16>
    %364 = arith.truncf %308 : vector<2x32xf32> to vector<2x32xbf16>
    %cst_155 = arith.constant dense<0.000000e+00> : vector<2x128xf32>
    %365 = tpu.matmul %364, %363, %cst_155 {dimension_numbers = #tpu.dot_dimension_numbers<[1], [0], [0], [1], [0, 0, 1, 1], [], []>} : vector<2x32xbf16>, vector<32x128xbf16>, vector<2x128xf32> -> vector<2x128xf32>
    %366 = arith.addf %359, %365 : vector<2x128xf32>
    %367 = arith.negf %366 : vector<2x128xf32>
    %368 = math.exp %367 : vector<2x128xf32>
    %cst_156 = arith.constant 1.000000e+00 : f32
    %369 = vector.broadcast %cst_156 : f32 to vector<2x128xf32>
    %370 = arith.addf %369, %368 : vector<2x128xf32>
    %371 = arith.divf %369, %370 : vector<2x128xf32>
    %372 = math.tanh %366 : vector<2x128xf32>
    %373 = arith.addf %360, %358 : vector<2x16xf32>
    %374 = arith.negf %373 : vector<2x16xf32>
    %375 = math.exp %374 : vector<2x16xf32>
    %cst_157 = arith.constant 1.000000e+00 : f32
    %376 = vector.broadcast %cst_157 : f32 to vector<2x16xf32>
    %377 = arith.addf %376, %375 : vector<2x16xf32>
    %378 = arith.divf %376, %377 : vector<2x16xf32>
    %379 = arith.mulf %378, %294 : vector<2x16xf32>
    %380 = vector.extract_strided_slice %371 {offsets = [0, 32], sizes = [2, 32], strides = [1, 1]} : vector<2x128xf32> to vector<2x32xf32>
    %381 = arith.mulf %380, %305 : vector<2x32xf32>
    %382 = vector.extract_strided_slice %371 {offsets = [0, 0], sizes = [2, 32], strides = [1, 1]} : vector<2x128xf32> to vector<2x32xf32>
    %383 = vector.extract_strided_slice %372 {offsets = [0, 96], sizes = [2, 32], strides = [1, 1]} : vector<2x128xf32> to vector<2x32xf32>
    %384 = arith.mulf %382, %383 : vector<2x32xf32>
    %385 = arith.addf %381, %384 : vector<2x32xf32>
    %c112_158 = arith.constant 112 : index
    %c0_159 = arith.constant 0 : index
    %386 = vector.load %arg1[%c112_158, %c0_159] : memref<136x288xbf16, #tpu.memory_space<vmem>>, vector<16x32xbf16>
    %387 = arith.truncf %379 : vector<2x16xf32> to vector<2x16xbf16>
    %cst_160 = arith.constant dense<0.000000e+00> : vector<2x32xf32>
    %388 = tpu.matmul %387, %386, %cst_160 {dimension_numbers = #tpu.dot_dimension_numbers<[1], [0], [0], [1], [0, 0, 1, 1], [], []>} : vector<2x16xbf16>, vector<16x32xbf16>, vector<2x32xf32> -> vector<2x32xf32>
    %389 = math.tanh %388 : vector<2x32xf32>
    %390 = arith.addf %385, %389 : vector<2x32xf32>
    %391 = vector.extract_strided_slice %371 {offsets = [0, 64], sizes = [2, 32], strides = [1, 1]} : vector<2x128xf32> to vector<2x32xf32>
    %392 = math.tanh %390 : vector<2x32xf32>
    %393 = arith.mulf %391, %392 : vector<2x32xf32>
    %c48_161 = arith.constant 48 : index
    %c128_162 = arith.constant 128 : index
    %394 = vector.load %arg1[%c48_161, %c128_162] : memref<136x288xbf16, #tpu.memory_space<vmem>>, vector<32x128xbf16>
    %395 = arith.truncf %393 : vector<2x32xf32> to vector<2x32xbf16>
    %cst_163 = arith.constant dense<0.000000e+00> : vector<2x128xf32>
    %396 = tpu.matmul %395, %394, %cst_163 {dimension_numbers = #tpu.dot_dimension_numbers<[1], [0], [0], [1], [0, 0, 1, 1], [], []>} : vector<2x32xbf16>, vector<32x128xbf16>, vector<2x128xf32> -> vector<2x128xf32>
    %c48_164 = arith.constant 48 : index
    %c0_165 = arith.constant 0 : index
    %397 = vector.load %arg1[%c48_164, %c0_165] : memref<136x288xbf16, #tpu.memory_space<vmem>>, vector<32x128xbf16>
    %398 = arith.truncf %393 : vector<2x32xf32> to vector<2x32xbf16>
    %cst_166 = arith.constant dense<0.000000e+00> : vector<2x128xf32>
    %399 = tpu.matmul %398, %397, %cst_166 {dimension_numbers = #tpu.dot_dimension_numbers<[1], [0], [0], [1], [0, 0, 1, 1], [], []>} : vector<2x32xbf16>, vector<32x128xbf16>, vector<2x128xf32> -> vector<2x128xf32>
    %400 = arith.addf %361, %399 : vector<2x128xf32>
    %c16_167 = arith.constant 16 : index
    %c128_168 = arith.constant 128 : index
    %401 = vector.load %arg1[%c16_167, %c128_168] : memref<136x288xbf16, #tpu.memory_space<vmem>>, vector<32x128xbf16>
    %402 = arith.truncf %348 : vector<2x32xf32> to vector<2x32xbf16>
    %cst_169 = arith.constant dense<0.000000e+00> : vector<2x128xf32>
    %403 = tpu.matmul %402, %401, %cst_169 {dimension_numbers = #tpu.dot_dimension_numbers<[1], [0], [0], [1], [0, 0, 1, 1], [], []>} : vector<2x32xbf16>, vector<32x128xbf16>, vector<2x128xf32> -> vector<2x128xf32>
    %404 = arith.addf %400, %403 : vector<2x128xf32>
    %405 = arith.negf %404 : vector<2x128xf32>
    %406 = math.exp %405 : vector<2x128xf32>
    %cst_170 = arith.constant 1.000000e+00 : f32
    %407 = vector.broadcast %cst_170 : f32 to vector<2x128xf32>
    %408 = arith.addf %407, %406 : vector<2x128xf32>
    %409 = arith.divf %407, %408 : vector<2x128xf32>
    %410 = math.tanh %404 : vector<2x128xf32>
    %411 = vector.extract_strided_slice %396 {offsets = [0, 32], sizes = [2, 16], strides = [1, 1]} : vector<2x128xf32> to vector<2x16xf32>
    %412 = arith.addf %362, %411 : vector<2x16xf32>
    %413 = arith.addf %412, %358 : vector<2x16xf32>
    %414 = arith.negf %413 : vector<2x16xf32>
    %415 = math.exp %414 : vector<2x16xf32>
    %cst_171 = arith.constant 1.000000e+00 : f32
    %416 = vector.broadcast %cst_171 : f32 to vector<2x16xf32>
    %417 = arith.addf %416, %415 : vector<2x16xf32>
    %418 = arith.divf %416, %417 : vector<2x16xf32>
    %419 = arith.mulf %418, %334 : vector<2x16xf32>
    %420 = vector.extract_strided_slice %409 {offsets = [0, 32], sizes = [2, 32], strides = [1, 1]} : vector<2x128xf32> to vector<2x32xf32>
    %421 = arith.mulf %420, %345 : vector<2x32xf32>
    %422 = vector.extract_strided_slice %409 {offsets = [0, 0], sizes = [2, 32], strides = [1, 1]} : vector<2x128xf32> to vector<2x32xf32>
    %423 = vector.extract_strided_slice %410 {offsets = [0, 96], sizes = [2, 32], strides = [1, 1]} : vector<2x128xf32> to vector<2x32xf32>
    %424 = arith.mulf %422, %423 : vector<2x32xf32>
    %425 = arith.addf %421, %424 : vector<2x32xf32>
    %c112_172 = arith.constant 112 : index
    %c32_173 = arith.constant 32 : index
    %426 = vector.load %arg1[%c112_172, %c32_173] : memref<136x288xbf16, #tpu.memory_space<vmem>>, vector<16x32xbf16>
    %427 = arith.truncf %419 : vector<2x16xf32> to vector<2x16xbf16>
    %cst_174 = arith.constant dense<0.000000e+00> : vector<2x32xf32>
    %428 = tpu.matmul %427, %426, %cst_174 {dimension_numbers = #tpu.dot_dimension_numbers<[1], [0], [0], [1], [0, 0, 1, 1], [], []>} : vector<2x16xbf16>, vector<16x32xbf16>, vector<2x32xf32> -> vector<2x32xf32>
    %429 = math.tanh %428 : vector<2x32xf32>
    %430 = arith.addf %425, %429 : vector<2x32xf32>
    %431 = vector.extract_strided_slice %409 {offsets = [0, 64], sizes = [2, 32], strides = [1, 1]} : vector<2x128xf32> to vector<2x32xf32>
    %432 = math.tanh %430 : vector<2x32xf32>
    %433 = arith.mulf %431, %432 : vector<2x32xf32>
    %c80_175 = arith.constant 80 : index
    %c0_176 = arith.constant 0 : index
    %434 = vector.load %arg1[%c80_175, %c0_176] : memref<136x288xbf16, #tpu.memory_space<vmem>>, vector<32x128xbf16>
    %435 = arith.truncf %433 : vector<2x32xf32> to vector<2x32xbf16>
    %cst_177 = arith.constant dense<0.000000e+00> : vector<2x128xf32>
    %436 = tpu.matmul %435, %434, %cst_177 {dimension_numbers = #tpu.dot_dimension_numbers<[1], [0], [0], [1], [0, 0, 1, 1], [], []>} : vector<2x32xbf16>, vector<32x128xbf16>, vector<2x128xf32> -> vector<2x128xf32>
    %437 = arith.addf %396, %436 : vector<2x128xf32>
    %438 = vector.broadcast %8 : vector<1x128xf32> to vector<2x128xf32>
    %439 = arith.addf %437, %438 : vector<2x128xf32>
    %c4_178 = arith.constant 4 : index
    %c0_179 = arith.constant 0 : index
    %c0_180 = arith.constant 0 : index
    %440 = vector.load %arg2[%c4_178, %c0_179, %c0_180] : memref<6x2x128xf32, #tpu.memory_space<vmem>>, vector<1x2x128xf32>
    %441 = vector.shape_cast %440 : vector<1x2x128xf32> to vector<2x128xf32>
    %442 = vector.shape_cast %439 : vector<2x128xf32> to vector<1x2x128xf32>
    tpu.vector_store %arg2[%c4_178, %c0_179, %c0_180], %442 {strides = array<i32>} : memref<6x2x128xf32, #tpu.memory_space<vmem>>, vector<1x2x128xf32>,
    %443 = vector.extract_strided_slice %439 {offsets = [0, 16], sizes = [2, 16], strides = [1, 1]} : vector<2x128xf32> to vector<2x16xf32>
    %c10 = arith.constant 10 : index
    %c0_181 = arith.constant 0 : index
    %444 = vector.load %arg3[%c10, %c0_181] : memref<12x288xf32, #tpu.memory_space<vmem>>, vector<2x128xf32>
    %c10_182 = arith.constant 10 : index
    %c128_183 = arith.constant 128 : index
    %445 = vector.load %arg3[%c10_182, %c128_183] : memref<12x288xf32, #tpu.memory_space<vmem>>, vector<2x16xf32>
    %c10_184 = arith.constant 10 : index
    %c144_185 = arith.constant 144 : index
    %446 = vector.load %arg3[%c10_184, %c144_185] : memref<12x288xf32, #tpu.memory_space<vmem>>, vector<2x128xf32>
    %c10_186 = arith.constant 10 : index
    %c272_187 = arith.constant 272 : index
    %447 = vector.load %arg3[%c10_186, %c272_187] : memref<12x288xf32, #tpu.memory_space<vmem>>, vector<2x16xf32>
    %c16_188 = arith.constant 16 : index
    %c0_189 = arith.constant 0 : index
    %448 = vector.load %arg1[%c16_188, %c0_189] : memref<136x288xbf16, #tpu.memory_space<vmem>>, vector<32x128xbf16>
    %449 = arith.truncf %393 : vector<2x32xf32> to vector<2x32xbf16>
    %cst_190 = arith.constant dense<0.000000e+00> : vector<2x128xf32>
    %450 = tpu.matmul %449, %448, %cst_190 {dimension_numbers = #tpu.dot_dimension_numbers<[1], [0], [0], [1], [0, 0, 1, 1], [], []>} : vector<2x32xbf16>, vector<32x128xbf16>, vector<2x128xf32> -> vector<2x128xf32>
    %451 = arith.addf %444, %450 : vector<2x128xf32>
    %452 = arith.negf %451 : vector<2x128xf32>
    %453 = math.exp %452 : vector<2x128xf32>
    %cst_191 = arith.constant 1.000000e+00 : f32
    %454 = vector.broadcast %cst_191 : f32 to vector<2x128xf32>
    %455 = arith.addf %454, %453 : vector<2x128xf32>
    %456 = arith.divf %454, %455 : vector<2x128xf32>
    %457 = math.tanh %451 : vector<2x128xf32>
    %458 = arith.addf %445, %443 : vector<2x16xf32>
    %459 = arith.negf %458 : vector<2x16xf32>
    %460 = math.exp %459 : vector<2x16xf32>
    %cst_192 = arith.constant 1.000000e+00 : f32
    %461 = vector.broadcast %cst_192 : f32 to vector<2x16xf32>
    %462 = arith.addf %461, %460 : vector<2x16xf32>
    %463 = arith.divf %461, %462 : vector<2x16xf32>
    %464 = arith.mulf %463, %379 : vector<2x16xf32>
    %465 = vector.extract_strided_slice %456 {offsets = [0, 32], sizes = [2, 32], strides = [1, 1]} : vector<2x128xf32> to vector<2x32xf32>
    %466 = arith.mulf %465, %390 : vector<2x32xf32>
    %467 = vector.extract_strided_slice %456 {offsets = [0, 0], sizes = [2, 32], strides = [1, 1]} : vector<2x128xf32> to vector<2x32xf32>
    %468 = vector.extract_strided_slice %457 {offsets = [0, 96], sizes = [2, 32], strides = [1, 1]} : vector<2x128xf32> to vector<2x32xf32>
    %469 = arith.mulf %467, %468 : vector<2x32xf32>
    %470 = arith.addf %466, %469 : vector<2x32xf32>
    %c112_193 = arith.constant 112 : index
    %c0_194 = arith.constant 0 : index
    %471 = vector.load %arg1[%c112_193, %c0_194] : memref<136x288xbf16, #tpu.memory_space<vmem>>, vector<16x32xbf16>
    %472 = arith.truncf %464 : vector<2x16xf32> to vector<2x16xbf16>
    %cst_195 = arith.constant dense<0.000000e+00> : vector<2x32xf32>
    %473 = tpu.matmul %472, %471, %cst_195 {dimension_numbers = #tpu.dot_dimension_numbers<[1], [0], [0], [1], [0, 0, 1, 1], [], []>} : vector<2x16xbf16>, vector<16x32xbf16>, vector<2x32xf32> -> vector<2x32xf32>
    %474 = math.tanh %473 : vector<2x32xf32>
    %475 = arith.addf %470, %474 : vector<2x32xf32>
    %476 = vector.extract_strided_slice %456 {offsets = [0, 64], sizes = [2, 32], strides = [1, 1]} : vector<2x128xf32> to vector<2x32xf32>
    %477 = math.tanh %475 : vector<2x32xf32>
    %478 = arith.mulf %476, %477 : vector<2x32xf32>
    %c48_196 = arith.constant 48 : index
    %c128_197 = arith.constant 128 : index
    %479 = vector.load %arg1[%c48_196, %c128_197] : memref<136x288xbf16, #tpu.memory_space<vmem>>, vector<32x128xbf16>
    %480 = arith.truncf %478 : vector<2x32xf32> to vector<2x32xbf16>
    %cst_198 = arith.constant dense<0.000000e+00> : vector<2x128xf32>
    %481 = tpu.matmul %480, %479, %cst_198 {dimension_numbers = #tpu.dot_dimension_numbers<[1], [0], [0], [1], [0, 0, 1, 1], [], []>} : vector<2x32xbf16>, vector<32x128xbf16>, vector<2x128xf32> -> vector<2x128xf32>
    %c48_199 = arith.constant 48 : index
    %c0_200 = arith.constant 0 : index
    %482 = vector.load %arg1[%c48_199, %c0_200] : memref<136x288xbf16, #tpu.memory_space<vmem>>, vector<32x128xbf16>
    %483 = arith.truncf %478 : vector<2x32xf32> to vector<2x32xbf16>
    %cst_201 = arith.constant dense<0.000000e+00> : vector<2x128xf32>
    %484 = tpu.matmul %483, %482, %cst_201 {dimension_numbers = #tpu.dot_dimension_numbers<[1], [0], [0], [1], [0, 0, 1, 1], [], []>} : vector<2x32xbf16>, vector<32x128xbf16>, vector<2x128xf32> -> vector<2x128xf32>
    %485 = arith.addf %446, %484 : vector<2x128xf32>
    %c16_202 = arith.constant 16 : index
    %c128_203 = arith.constant 128 : index
    %486 = vector.load %arg1[%c16_202, %c128_203] : memref<136x288xbf16, #tpu.memory_space<vmem>>, vector<32x128xbf16>
    %487 = arith.truncf %433 : vector<2x32xf32> to vector<2x32xbf16>
    %cst_204 = arith.constant dense<0.000000e+00> : vector<2x128xf32>
    %488 = tpu.matmul %487, %486, %cst_204 {dimension_numbers = #tpu.dot_dimension_numbers<[1], [0], [0], [1], [0, 0, 1, 1], [], []>} : vector<2x32xbf16>, vector<32x128xbf16>, vector<2x128xf32> -> vector<2x128xf32>
    %489 = arith.addf %485, %488 : vector<2x128xf32>
    %490 = arith.negf %489 : vector<2x128xf32>
    %491 = math.exp %490 : vector<2x128xf32>
    %cst_205 = arith.constant 1.000000e+00 : f32
    %492 = vector.broadcast %cst_205 : f32 to vector<2x128xf32>
    %493 = arith.addf %492, %491 : vector<2x128xf32>
    %494 = arith.divf %492, %493 : vector<2x128xf32>
    %495 = math.tanh %489 : vector<2x128xf32>
    %496 = vector.extract_strided_slice %481 {offsets = [0, 32], sizes = [2, 16], strides = [1, 1]} : vector<2x128xf32> to vector<2x16xf32>
    %497 = arith.addf %447, %496 : vector<2x16xf32>
    %498 = arith.addf %497, %443 : vector<2x16xf32>
    %499 = arith.negf %498 : vector<2x16xf32>
    %500 = math.exp %499 : vector<2x16xf32>
    %cst_206 = arith.constant 1.000000e+00 : f32
    %501 = vector.broadcast %cst_206 : f32 to vector<2x16xf32>
    %502 = arith.addf %501, %500 : vector<2x16xf32>
    %503 = arith.divf %501, %502 : vector<2x16xf32>
    %504 = arith.mulf %503, %419 : vector<2x16xf32>
    %505 = vector.extract_strided_slice %494 {offsets = [0, 32], sizes = [2, 32], strides = [1, 1]} : vector<2x128xf32> to vector<2x32xf32>
    %506 = arith.mulf %505, %430 : vector<2x32xf32>
    %507 = vector.extract_strided_slice %494 {offsets = [0, 0], sizes = [2, 32], strides = [1, 1]} : vector<2x128xf32> to vector<2x32xf32>
    %508 = vector.extract_strided_slice %495 {offsets = [0, 96], sizes = [2, 32], strides = [1, 1]} : vector<2x128xf32> to vector<2x32xf32>
    %509 = arith.mulf %507, %508 : vector<2x32xf32>
    %510 = arith.addf %506, %509 : vector<2x32xf32>
    %c112_207 = arith.constant 112 : index
    %c32_208 = arith.constant 32 : index
    %511 = vector.load %arg1[%c112_207, %c32_208] : memref<136x288xbf16, #tpu.memory_space<vmem>>, vector<16x32xbf16>
    %512 = arith.truncf %504 : vector<2x16xf32> to vector<2x16xbf16>
    %cst_209 = arith.constant dense<0.000000e+00> : vector<2x32xf32>
    %513 = tpu.matmul %512, %511, %cst_209 {dimension_numbers = #tpu.dot_dimension_numbers<[1], [0], [0], [1], [0, 0, 1, 1], [], []>} : vector<2x16xbf16>, vector<16x32xbf16>, vector<2x32xf32> -> vector<2x32xf32>
    %514 = math.tanh %513 : vector<2x32xf32>
    %515 = arith.addf %510, %514 : vector<2x32xf32>
    %516 = vector.extract_strided_slice %494 {offsets = [0, 64], sizes = [2, 32], strides = [1, 1]} : vector<2x128xf32> to vector<2x32xf32>
    %517 = math.tanh %515 : vector<2x32xf32>
    %518 = arith.mulf %516, %517 : vector<2x32xf32>
    %c80_210 = arith.constant 80 : index
    %c0_211 = arith.constant 0 : index
    %519 = vector.load %arg1[%c80_210, %c0_211] : memref<136x288xbf16, #tpu.memory_space<vmem>>, vector<32x128xbf16>
    %520 = arith.truncf %518 : vector<2x32xf32> to vector<2x32xbf16>
    %cst_212 = arith.constant dense<0.000000e+00> : vector<2x128xf32>
    %521 = tpu.matmul %520, %519, %cst_212 {dimension_numbers = #tpu.dot_dimension_numbers<[1], [0], [0], [1], [0, 0, 1, 1], [], []>} : vector<2x32xbf16>, vector<32x128xbf16>, vector<2x128xf32> -> vector<2x128xf32>
    %522 = arith.addf %481, %521 : vector<2x128xf32>
    %523 = vector.broadcast %8 : vector<1x128xf32> to vector<2x128xf32>
    %524 = arith.addf %522, %523 : vector<2x128xf32>
    %c5 = arith.constant 5 : index
    %c0_213 = arith.constant 0 : index
    %c0_214 = arith.constant 0 : index
    %525 = vector.load %arg2[%c5, %c0_213, %c0_214] : memref<6x2x128xf32, #tpu.memory_space<vmem>>, vector<1x2x128xf32>
    %526 = vector.shape_cast %525 : vector<1x2x128xf32> to vector<2x128xf32>
    %527 = vector.shape_cast %524 : vector<2x128xf32> to vector<1x2x128xf32>
    tpu.vector_store %arg2[%c5, %c0_213, %c0_214], %527 {strides = array<i32>} : memref<6x2x128xf32, #tpu.memory_space<vmem>>, vector<1x2x128xf32>,
    return
  }
}

</mosaic_0001>

<bundles_post_ra>
// kernel: decoder_forward.1
= control target key start
LH: loop header
LB: loop body
LE: loop exit
PB: predicated region body
PF: predicated region fallthrough
CT: control target
= control target key end

     0   :  { %v4253_v0 = vmov 0.0   ;;  %vm4254_vm0 = vmmov 0   ;;  %v4255_v3 = vmov 0   ;;  %vm35_vm1 = vcmask 130048   ;;  %s4256_s3 = smov 32   ;;  %s4257_s8 = smov 112   ;;  %s5094_s1 = inlined_call_operand.vmem [shape: bf16[136,288], index: 1, kind: input, shape index: {}]   ;;  %s5095_s0 = inlined_call_operand.vmem [shape: f32[16,32], index: 0, kind: input, shape index: {}]   ;;  %s5096_s2 = inlined_call_operand.vmem [shape: f32[6,2,128], index: 2, kind: output, shape index: {}]  }
   0x1   :  { %3660 = vmatprep.subr.bf16.mxu1 %v4253_v0  ;;  %v4003_v1 = vld [vmem:[%s5094_s1 + $0x4] ss:$12 sps:$4 sm:$0xff]   ;;  %3662 = vmatprep.mubr.msk.bf16.mxu1 %vm4254_vm0, %v4253_v0  ;;  %v4005_v2 = vld [vmem:[%s5094_s1 + $0x8] ss:$12 sps:$4 sm:$0xff]   ;;  %v4006_v4 = vld [vmem:[%s5094_s1] ss:$12 sps:$4 sm:$0xff]   ;;  %v251_v16 = vlaneseq }
   0x2   :  { %71 = vmatprep.mubr.bf16.mxu0 %v4255_v3  ;;  %53 = vmatprep.subr.bf16.mxu0 %v4003_v1  ;;  %v12_v5 = vld [vmem:[%s5095_s0] sm:$0xff]  ;;  %v13_v6 = vld [vmem:[%s5095_s0 + $0x8] sm:$0xf]  ;;  %v4302_v9 = vld [vmem:[%s5094_s1 + $0x90] ss:$12 sps:$4 sm:$0xff]   ;;  %vm125_vm2 = vcmask 261120  }
   0x3   :  { %3661 = vmatpush3.bf16.msra.mxu1 %v4005_v2  ;;  %v18_v7 = vpack.c.bf16 %v13_v6, %v12_v5  ;;  %v4007_v8 = vld [vmem:[%s5094_s1 + $0x64] ss:$12 sps:$4 sm:$0xff]   ;;  %54 = vmatpush1.bf16.msra.mxu0 %v4006_v4  ;;  %v4009_v10 = vld [vmem:[%s5094_s1 + $0x4c] ss:$12 sps:$4 sm:$0xff]   ;;  %v252_v18 = vshrl.u32 %v251_v16, 7  ;;  %vm129_vm3 = vcmask 257024  }
   0x4   :  { %3674 = vmatprep.subr.bf16.mxu1 %v4253_v0  ;;  %3666 = vmatprep.subr.bf16.mxu0 %v4253_v0  ;;  %v4313_v11 = vld [vmem:[%s5095_s0 + $0xc] sm:$0x3]  ;;  %v4320_v12 = vld [vmem:[%s5094_s1 + $0x78] ss:$12 sps:$4 sm:$0xff]   ;;  %v4011_v14 = vld [vmem:[%s5094_s1 + $0x30] ss:$12 sps:$4 sm:$0xff]  }
   0x5   :  { %v4329_v13 = vpack.c.bf16 %v4313_v11, %v4313_v11  ;;  %336 = vrot.lane.b32.xlu1 %v4313_v11, %s4256_s3  ;;  %v4012_v15 = vld [vmem:[%s5094_s1 + $0x18] ss:$12 sps:$4 sm:$0xff]   ;;  %v133_v20 = vld [vmem:[%s5094_s1 + $0xc0] sm:$0x1]  ;;  %v253_v25 = vsub.s32 0, %v252_v18  ;;  %s4258_s16 = smov 64  }
   0x6   :  { %3663 = vmatmul.mubr.msk.bf16.vlgmr.msra.gmra.mxu1 %vm35_vm1, %v18_v7  ;;  %3397 = vmatmul.mubr.msk.bf16.vlgmr.msra.gmra.mxu0 %vm35_vm1, %v18_v7  ;;  %v134_v24 = vunpack.c.l.bf16 %v133_v20  ;;  %v4372_v45 = vld [vmem:[%s5094_s1 + $0xa8] ss:$12 sps:$4 sm:$0xff]   ;;  %v132_v60 = vld [vmem:[%s5095_s0 + $0xe] sm:$0x3]  ;;  %s4259_s21 = smov 16   ;;  %s4260_s22 = smov 96  }
   0x7   :  { %3675 = vmatpush3.bf16.msra.mxu1 %v4007_v8  ;;  %3667 = vmatpush3.bf16.msra.mxu0 %v4302_v9  ;;  %v4014_v16 = vld [vmem:[%s5094_s1 + $0x60] ss:$12 sps:$4 sm:$0xff]   ;;  %s4261_s27 = smov 48  }
   0x8   :  { %3676 = vmatprep.subr.bf16.mxu1 %v4253_v0  ;;  %3668 = vmatprep.subr.bf16.mxu0 %v4253_v0  ;;  %v4362_v30 = vrot.slane %v134_v24, %v253_v25  ;;  %v4017_v24 = vld [vmem:[%s5094_s1 + $0x1c] ss:$12 sps:$4 sm:$0xff]  }
   0x9   :  { %3678 = vmatprep.mubr.msk.bf16.mxu1 %vm4254_vm0, %v4253_v0  ;;  %3670 = vmatprep.mubr.msk.bf16.mxu0 %vm4254_vm0, %v4253_v0 }
   0xb   :  { %3677 = vmatpush3.bf16.msra.mxu1 %v4009_v10  ;;  %3669 = vmatpush3.bf16.msra.mxu0 %v4320_v12 }
   0xc   :  { %3690 = vmatprep.subr.bf16.mxu1 %v4253_v0  ;;  %3682 = vmatprep.subr.bf16.mxu0 %v4253_v0 }
   0xe   :  { %3679 = vmatmul.mubr.msk.bf16.vlgmr.msra.gmra.mxu1 %vm125_vm2, %v4329_v13  ;;  %3671 = vmatmul.mubr.msk.bf16.vlgmr.msra.gmra.mxu0 %vm125_vm2, %v4329_v13 }
   0xf   :  { %3692 = vmatprep.mubr.msk.bf16.mxu1 %vm4254_vm0, %v4253_v0  ;;  %3683 = vmatpush3.bf16.msra.mxu0 %v4011_v14 }
  0x10   :  { %3686 = vmatprep.mubr.msk.bf16.mxu0 %vm4254_vm0, %v4253_v0  ;;  %3684 = vmatprep.subr.bf16.mxu0 %v4253_v0 }
  0x11   :  { %3691 = vmatpush3.bf16.msra.mxu1 %v4372_v45 }
  0x12   :  { %3704 = vmatprep.subr.bf16.mxu1 %v4253_v0 }
  0x13   :  { %3685 = vmatpush3.bf16.msra.mxu0 %v4012_v15 }
  0x14   :  { %3696 = vmatprep.subr.bf16.mxu0 %v4253_v0 }
  0x16   :  { %3687 = vmatmul.mubr.msk.bf16.vlgmr.msra.gmra.mxu0 %vm125_vm2, %v4329_v13 }
  0x17   :  { %3697 = vmatpush3.bf16.msra.mxu0 %v4007_v8  ;;  %3700 = vmatprep.mubr.msk.bf16.mxu0 %vm4254_vm0, %v4253_v0 }
  0x18   :  { %3698 = vmatprep.subr.bf16.mxu0 %v4253_v0 }
  0x1b   :  { %3699 = vmatpush3.bf16.msra.mxu0 %v4009_v10 }
  0x1c   :  { %3712 = vmatprep.subr.bf16.mxu0 %v4253_v0 }
  0x77   :  { %v337_v6 = vpop.permute.xlu1 %336 }
  0xc6   :  { %v116_v17 = vpop.f32.mrf.mxu1  ;;  %v73_v19 = vpop.f32.mrf.mxu0 }
  0xc7   :  { %126 = vst.msk [vmem:[#allocation2 + $0x10] sm:$0xff] %vm125_vm2, %v116_v17  ;;  %123 = vst [vmem:[#allocation2] sm:$0xff] %v73_v19  ;;  %v4015_v17 = vld [vmem:[%s5094_s1 + $0x48] ss:$12 sps:$4 sm:$0xff]  }
  0xc8   :  { %v3664_v21 = vpop.f32.mrf.mxu1  ;;  %v75_v22 = vpop.f32.mrf.mxu0 }
  0xc9   :  { %124 = vst [vmem:[#allocation2 + $0x8] sm:$0xff] %v75_v22  ;;  %v4016_v22 = vld [vmem:[%s5094_s1 + $0x34] ss:$12 sps:$4 sm:$0xff]  }
  0xca   :  { %v119_v23 = vpop.f32.mrf.mxu1  ;;  %v77_v26 = vpop.f32.mrf.mxu0 }
  0xcb   :  { %130 = vst.msk [vmem:[#allocation2 + $0x28] sm:$0xf] %vm129_vm3, %v119_v23  ;;  %127 = vst [vmem:[#allocation2 + $0x18] sm:$0xf] %v77_v26 }
  0xcc   :  { %v3665_v27 = vpop.f32.mrf.mxu1  ;;  %v79_v28 = vpop.f32.mrf.mxu0 }
  0xcd   :  { %128 = vst [vmem:[#allocation2 + $0x20] sm:$0xf] %v79_v28 }
  0xce   :  { %v245_v29 = vpop.f32.mrf.mxu1  ;;  %v193_v31 = vpop.f32.mrf.mxu0  ;;  %v256_v40 = vld [vmem:[#allocation2] sm:$0x3] }
  0xcf   :  { %v246_v32 = vadd.f32 %v245_v29, %v193_v31 }
  0xd0   :  { %v3680_v33 = vpop.f32.mrf.mxu1  ;;  %v3672_v34 = vpop.f32.mrf.mxu0  ;;  %v4377_v50 = vld [vmem:[#allocation2 + $0x8] sm:$0x3] }
  0xd1   :  { %v4365_v36 = vadd.f32 %v4362_v30, %v246_v32 }
  0xd2   :  { %v248_v35 = vpop.f32.mrf.mxu1  ;;  %v196_v37 = vpop.f32.mrf.mxu0 }
  0xd3   :  { %324 = vrot.lane.b32.xlu0 %v4365_v36, %s4257_s8  ;;  %v258_v35 = vld [vmem:[#allocation2 + $0x10] sm:$0x3] }
  0xd4   :  { %v3681_v38 = vpop.f32.mrf.mxu1  ;;  %v3673_v39 = vpop.f32.mrf.mxu0 }
  0xd6   :  { %v309_v41 = vpop.f32.mrf.mxu0 }
  0xd7   :  { %v315_v42 = vadd.f32 %v309_v41, %v256_v40 }
  0xd8   :  { %v3688_v43 = vpop.f32.mrf.mxu0 }
  0xd9   :  { %4073 = vtanh.f32 %v315_v42  ;;  %v3408_v48 = vmul.f32 -1.442695, %v315_v42 }
  0xda   :  { %v312_v44 = vpop.f32.mrf.mxu0 }
  0xdb   :  { %4075 = vpow2.f32 %v3408_v48 }
  0xdc   :  { %v3689_v46 = vpop.f32.mrf.mxu0 }
  0xe6   :  { %v4074_v47 = vpop.eup %4073 }
  0xe7   :  { %341 = vrot.lane.b32.xlu0 %v4074_v47, %s4256_s3 }
  0xe8   :  { %v4076_v49 = vpop.eup %4075 }
  0xe9   :  { %v319_v53 = vadd.f32 1.0, %v4076_v49 }
 0x145   :  { %v325_v51 = vpop.permute.xlu0 %324 }
 0x146   :  { %v327_v52 = vadd.f32 %v325_v51, %v4377_v50  ;;  %v4019_v51 = vld [vmem:[%s5094_s1 + $0x18] ss:$12 sps:$4 sm:$0xff]  }
 0x148   :  { %v3409_v54 = vmul.f32 -1.442695, %v327_v52 }
 0x14a   :  { %4077 = vpow2.f32 %v3409_v54 }
 0x14b   :  { %4079 = vrcp.f32 %v319_v53 }
 0x157   :  { %v4078_v55 = vpop.eup %4077 }
 0x158   :  { %v331_v56 = vadd.f32 1.0, %v4078_v55  ;;  %v4080_v57 = vpop.eup %4079 }
 0x159   :  { %v342_v58 = vpop.permute.xlu0 %341  ;;  %v339_v8 = vmul.f32 %v4080_v57, %v337_v6 }
 0x15a   :  { %4081 = vrcp.f32 %v331_v56  ;;  %v344_v59 = vmul.f32 %v4080_v57, %v342_v58 }
 0x15c   :  { %346 = vrot.lane.b32.xlu1 %v344_v59, %s4256_s3 }
 0x167   :  { %v4082_v61 = vpop.eup %4081 }
 0x168   :  { %v4384_v62 = vmul.f32 %v4082_v61, %v132_v60 }
 0x16a   :  { %v352_v63 = vpack.c.bf16 %v4384_v62, %v4384_v62 }
 0x16c   :  { %3693 = vmatmul.mubr.msk.bf16.vlgmr.msra.gmra.mxu1 %vm35_vm1, %v352_v63 }
 0x16d   :  { %3708 = vmatprep.mubr.msk.bf16.mxu1 %vm4254_vm0, %v4253_v0  ;;  %3705 = vmatpush3.bf16.msra.mxu1 %v4014_v16 }
 0x16e   :  { %3706 = vmatprep.subr.bf16.mxu1 %v4253_v0 }
 0x171   :  { %3707 = vmatpush3.bf16.msra.mxu1 %v4015_v17 }
 0x172   :  { %3720 = vmatprep.subr.bf16.mxu1 %v4253_v0 }
 0x1ce   :  { %v347_v7 = vpop.permute.xlu1 %346 }
 0x1cf   :  { %v349_v10 = vadd.f32 %v347_v7, %v339_v8 }
 0x22c   :  { %v396_v1 = vpop.f32.mrf.mxu1 }
 0x22d   :  { %4083 = vtanh.f32 %v396_v1 }
 0x22e   :  { %v3694_v2 = vpop.f32.mrf.mxu1 }
 0x230   :  { %v399_v3 = vpop.f32.mrf.mxu1 }
 0x232   :  { %v3695_v4 = vpop.f32.mrf.mxu1 }
 0x23a   :  { %v4084_v5 = vpop.eup %4083 }
 0x23b   :  { %404 = vrot.lane.b32.xlu0 %v4084_v5, %s4256_s3 }
 0x2ad   :  { %v405_v14 = vpop.permute.xlu0 %404 }
 0x2ae   :  { %v4392_v15 = vadd.f32 %v405_v14, %v349_v10 }
 0x2b0   :  { %4085 = vtanh.f32 %v4392_v15 }
 0x2bd   :  { %v4086_v18 = vpop.eup %4085 }
 0x2be   :  { %410 = vrot.lane.b32.xlu1 %v4086_v18, %s4256_s3 }
 0x330   :  { %v411_v19 = vpop.permute.xlu1 %410 }
 0x331   :  { %v413_v20 = vmul.f32 %v4080_v57, %v411_v19 }
 0x333   :  { %v414_v21 = vpack.c.bf16 %v413_v20, %v413_v20 }
 0x335   :  { %416 = vrot.lane.b32.xlu0 %v414_v21, %s4258_s16 }
 0x339   :  { %606 = vrot.lane.b32.xlu0 %v132_v60, %s4259_s21 }
 0x3a7   :  { %v4408_v23 = vpop.permute.xlu0 %416 }
 0x3a8   :  { %3701 = vmatmul.mubr.msk.bf16.vlgmr.msra.gmra.mxu0 %vm125_vm2, %v4408_v23  ;;  %3709 = vmatmul.mubr.msk.bf16.vlgmr.msra.gmra.mxu1 %vm125_vm2, %v4408_v23 }
 0x3a9   :  { %3713 = vmatpush3.bf16.msra.mxu0 %v4016_v22  ;;  %3716 = vmatprep.mubr.msk.bf16.mxu0 %vm4254_vm0, %v4253_v0 }
 0x3aa   :  { %3714 = vmatprep.subr.bf16.mxu0 %v4253_v0  ;;  %3722 = vmatprep.mubr.msk.bf16.mxu1 %vm4254_vm0, %v4253_v0 }
 0x3ab   :  { %v607_v44 = vpop.permute.xlu0 %606 }
 0x3ad   :  { %3715 = vmatpush3.bf16.msra.mxu0 %v4017_v24 }
 0x3ae   :  { %3726 = vmatprep.subr.bf16.mxu0 %v4253_v0 }
 0x3b0   :  { %3717 = vmatmul.mubr.msk.bf16.vlgmr.msra.gmra.mxu0 %vm125_vm2, %v4329_v13 }
 0x3b1   :  { %3727 = vmatpush3.bf16.msra.mxu0 %v4302_v9  ;;  %3730 = vmatprep.mubr.msk.bf16.mxu0 %vm4254_vm0, %v4253_v0 }
 0x3b2   :  { %3728 = vmatprep.subr.bf16.mxu0 %v4253_v0 }
 0x3b5   :  { %3729 = vmatpush3.bf16.msra.mxu0 %v4320_v12 }
 0x3b6   :  { %3742 = vmatprep.subr.bf16.mxu0 %v4253_v0 }
 0x468   :  { %v4432_v25 = vpop.f32.mrf.mxu0  ;;  %v511_v26 = vpop.f32.mrf.mxu1 }
 0x469   :  { %594 = vrot.lane.b32.xlu1 %v4432_v25, %s4257_s8 }
 0x46a   :  { %v3702_v13 = vpop.f32.mrf.mxu0  ;;  %v3710_v9 = vpop.f32.mrf.mxu1 }
 0x46c   :  { %v458_v27 = vpop.f32.mrf.mxu0  ;;  %v514_v28 = vpop.f32.mrf.mxu1 }
 0x46d   :  { %632 = vrot.lane.b32.xlu1 %v4372_v45, %s4260_s22 }
 0x46e   :  { %v3703_v12 = vpop.f32.mrf.mxu0  ;;  %v3711_v29 = vpop.f32.mrf.mxu1 }
 0x470   :  { %v573_v31 = vpop.f32.mrf.mxu0 }
 0x471   :  { %518 = vrot.lane.b32.xlu1 %v511_v26, %s4259_s21  ;;  %v740_v26 = vld [vmem:[#allocation2] sm:$0xc] }
 0x472   :  { %v3718_v32 = vpop.f32.mrf.mxu0 }
 0x474   :  { %v576_v33 = vpop.f32.mrf.mxu0 }
 0x476   :  { %v3719_v34 = vpop.f32.mrf.mxu0 }
 0x4db   :  { %v595_v37 = vpop.permute.xlu1 %594 }
 0x4dc   :  { %v597_v38 = vadd.f32 %v595_v37, %v258_v35 }
 0x4de   :  { %v598_v39 = vadd.f32 %v597_v38, %v4365_v36  ;;  %v4018_v36 = vld [vmem:[%s5094_s1 + $0x30] ss:$12 sps:$4 sm:$0xff]  }
 0x4df   :  { %v633_v40 = vpop.permute.xlu1 %632 }
 0x4e0   :  { %v3420_v41 = vmul.f32 -1.442695, %v598_v39  ;;  %3721 = vmatpush3.bf16.msra.mxu1 %v633_v40 }
 0x4e1   :  { %3734 = vmatprep.subr.bf16.mxu1 %v4253_v0 }
 0x4e2   :  { %4087 = vpow2.f32 %v3420_v41 }
 0x4e3   :  { %v519_v48 = vpop.permute.xlu1 %518 }
 0x4e4   :  { %v521_v52 = vadd.f32 %v519_v48, %v4377_v50  ;;  %v522_v53 = vadd.f32 %v519_v48, %v258_v35 }
 0x4ef   :  { %v4088_v42 = vpop.eup %4087 }
 0x4f0   :  { %v602_v43 = vadd.f32 1.0, %v4088_v42 }
 0x4f2   :  { %4089 = vrcp.f32 %v602_v43 }
 0x4ff   :  { %v4090_v45 = vpop.eup %4089 }
 0x500   :  { %v4441_v46 = vmul.f32 %v4090_v45, %v607_v44  ;;  %v4020_v44 = vld [vmem:[%s5094_s1 + $0xa8] ss:$12 sps:$4 sm:$0xff]  }
 0x501   :  { %v4499_v45 = vld [vmem:[#allocation2 + $0x8] sm:$0xc] }
 0x502   :  { %v628_v47 = vpack.c.bf16 %v4441_v46, %v4441_v46 }
 0x504   :  { %630 = vrot.lane.b32.xlu0 %v628_v47, %s4257_s8 }
 0x508   :  { %580 = vrot.lane.b32.xlu0 %v573_v31, %s4259_s21 }
 0x576   :  { %v631_v49 = vpop.permute.xlu0 %630 }
 0x577   :  { %3723 = vmatmul.mubr.msk.bf16.vlgmr.msra.gmra.mxu1 %vm35_vm1, %v631_v49 }
 0x578   :  { %3735 = vmatpush3.bf16.msra.mxu1 %v4018_v36  ;;  %3738 = vmatprep.mubr.msk.bf16.mxu1 %vm4254_vm0, %v4253_v0 }
 0x579   :  { %3736 = vmatprep.subr.bf16.mxu1 %v4253_v0 }
 0x57a   :  { %v581_v54 = vpop.permute.xlu0 %580 }
 0x57b   :  { %v583_v55 = vadd.f32 %v581_v54, %v521_v52  ;;  %v584_v56 = vadd.f32 %v581_v54, %v522_v53  ;;  %v823_v52 = vrot.slane %v4384_v62, 6  ;;  %v827_v62 = vrot.slane %v4392_v15, 6  ;;  %v4023_v15 = vld [vmem:[%s5094_s1 + $0x4c] ss:$12 sps:$4 sm:$0xff]  }
 0x57c   :  { %3737 = vmatpush3.bf16.msra.mxu1 %v4019_v51 }
 0x57d   :  { %4091 = vtanh.f32 %v583_v55  ;;  %3748 = vmatprep.subr.bf16.mxu1 %v4253_v0  ;;  %v3419_v50 = vmul.f32 -1.442695, %v583_v55 }
 0x57e   :  { %4093 = vtanh.f32 %v584_v56 }
 0x57f   :  { %3739 = vmatmul.mubr.msk.bf16.vlgmr.msra.gmra.mxu1 %vm125_vm2, %v4408_v23  ;;  %4095 = vpow2.f32 %v3419_v50 }
 0x580   :  { %3752 = vmatprep.mubr.msk.bf16.mxu1 %vm4254_vm0, %v4253_v0 }
 0x58a   :  { %v4092_v57 = vpop.eup %4091 }
 0x58b   :  { %v4094_v58 = vpop.eup %4093  ;;  %616 = vrot.lane.b32.xlu1 %v4092_v57, %s4256_s3 }
 0x58c   :  { %618 = vrot.lane.b32.xlu0 %v4094_v58, %s4256_s3  ;;  %v4096_v59 = vpop.eup %4095 }
 0x58d   :  { %v588_v60 = vadd.f32 1.0, %v4096_v59 }
 0x58f   :  { %610 = vrot.lane.b32.xlu1 %v4313_v11, %s4261_s27  ;;  %4097 = vrcp.f32 %v588_v60 }
 0x59c   :  { %v4098_v1 = vpop.eup %4097 }
 0x5fd   :  { %v617_v61 = vpop.permute.xlu1 %616 }
 0x5fe   :  { %v619_v63 = vpop.permute.xlu0 %618 }
 0x5ff   :  { %v620_v2 = vsel %vm125_vm2, %v617_v61, %v619_v63 }
 0x600   :  { %v622_v3 = vmul.f32 %v4098_v1, %v620_v2 }
 0x601   :  { %v611_v17 = vpop.permute.xlu1 %610 }
 0x602   :  { %624 = vrot.lane.b32.xlu0 %v622_v3, %s4256_s3  ;;  %v613_v19 = vmul.f32 %v4098_v1, %v611_v17  ;;  %v4025_v17 = vld [vmem:[%s5094_s1 + $0x34] ss:$12 sps:$4 sm:$0xff]  }
 0x637   :  { %v672_v4 = vpop.f32.mrf.mxu1 }
 0x638   :  { %4099 = vtanh.f32 %v672_v4 }
 0x639   :  { %v3724_v5 = vpop.f32.mrf.mxu1 }
 0x63a   :  { %v4021_v5 = vld [vmem:[%s5094_s1 + $0x64] ss:$12 sps:$4 sm:$0xff]  }
 0x63b   :  { %v675_v6 = vpop.f32.mrf.mxu1  ;;  %3749 = vmatpush3.bf16.msra.mxu1 %v4021_v5 }
 0x63c   :  { %v4022_v6 = vld [vmem:[%s5094_s1 + $0x60] ss:$12 sps:$4 sm:$0xff]   ;;  %3750 = vmatprep.subr.bf16.mxu1 %v4253_v0 }
 0x63d   :  { %v3725_v7 = vpop.f32.mrf.mxu1 }
 0x63e   :  { %v4024_v7 = vld [vmem:[%s5094_s1 + $0x48] ss:$12 sps:$4 sm:$0xff]  }
 0x63f   :  { %v793_v8 = vpop.f32.mrf.mxu1  ;;  %3751 = vmatpush3.bf16.msra.mxu1 %v4023_v15 }
 0x640   :  { %v800_v24 = vrot.slane %v793_v8, 6  ;;  %3764 = vmatprep.subr.bf16.mxu1 %v4253_v0 }
 0x641   :  { %v3740_v11 = vpop.f32.mrf.mxu1 }
 0x642   :  { %v802_v13 = vadd.f32 %v800_v24, %v740_v26 }
 0x643   :  { %v796_v10 = vpop.f32.mrf.mxu1 }
 0x644   :  { %v3426_v31 = vmul.f32 -1.442695, %v802_v13 }
 0x645   :  { %v4100_v14 = vpop.eup %4099  ;;  %v3741_v16 = vpop.f32.mrf.mxu1 }
 0x646   :  { %680 = vrot.lane.b32.xlu1 %v4100_v14, %s4261_s27 }
 0x674   :  { %v625_v18 = vpop.permute.xlu0 %624 }
 0x675   :  { %v627_v20 = vadd.f32 %v625_v18, %v613_v19  ;;  %v4026_v19 = vld [vmem:[%s5094_s1 + $0x1c] ss:$12 sps:$4 sm:$0xff]  }
 0x6b8   :  { %v681_v21 = vpop.permute.xlu1 %680 }
 0x6b9   :  { %v4470_v22 = vadd.f32 %v681_v21, %v627_v20 }
 0x6bb   :  { %4101 = vtanh.f32 %v4470_v22 }
 0x6bc   :  { %4103 = vtanh.f32 %v802_v13 }
 0x6bd   :  { %4105 = vpow2.f32 %v3426_v31 }
 0x6c8   :  { %v4102_v23 = vpop.eup %4101 }
 0x6c9   :  { %686 = vrot.lane.b32.xlu0 %v4102_v23, %s4256_s3  ;;  %v4104_v12 = vpop.eup %4103 }
 0x6ca   :  { %v4106_v32 = vpop.eup %4105 }
 0x6cb   :  { %v806_v33 = vadd.f32 1.0, %v4106_v32 }
 0x6cd   :  { %4107 = vrcp.f32 %v806_v33 }
 0x6da   :  { %v4108_v43 = vpop.eup %4107 }
 0x73b   :  { %v687_v9 = vpop.permute.xlu0 %686 }
 0x73c   :  { %v689_v27 = vmul.f32 %v4098_v1, %v687_v9  ;;  %v829_v1 = vmul.f32 %v4108_v43, %v827_v62 }
 0x73e   :  { %v690_v28 = vpack.c.bf16 %v689_v27, %v689_v27 }
 0x740   :  { %692 = vrot.lane.b32.xlu1 %v690_v28, %s4261_s27 }
 0x744   :  { %831 = vrot.lane.b32.xlu1 %v4104_v12, %s4256_s3 }
 0x7b2   :  { %v4476_v29 = vpop.permute.xlu1 %692 }
 0x7b3   :  { %3731 = vmatmul.mubr.msk.bf16.vlgmr.msra.gmra.mxu0 %vm125_vm2, %v4476_v29 }
 0x7b4   :  { %3744 = vmatprep.mubr.msk.bf16.mxu0 %vm4254_vm0, %v4253_v0  ;;  %3743 = vmatpush3.bf16.msra.mxu0 %v4020_v44 }
 0x7b5   :  { %3756 = vmatprep.subr.bf16.mxu0 %v4253_v0 }
 0x7b6   :  { %v832_v41 = vpop.permute.xlu1 %831 }
 0x873   :  { %v731_v34 = vpop.f32.mrf.mxu0 }
 0x874   :  { %v737_v35 = vadd.f32 %v731_v34, %v4432_v25  ;;  %v834_v25 = vmul.f32 %v4108_v43, %v832_v41 }
 0x875   :  { %v3732_v37 = vpop.f32.mrf.mxu0 }
 0x876   :  { %v4484_v38 = vadd.f32 %v737_v35, %v4362_v30  ;;  %v742_v35 = vld [vmem:[#allocation2 + $0x10] sm:$0xc] }
 0x877   :  { %v734_v39 = vpop.f32.mrf.mxu0 }
 0x878   :  { %739 = vst [vmem:[%s5096_s2] sm:$0x3] %v4484_v38  ;;  %v811_v40 = vrot.slane %v4484_v38, 6  ;;  %v4027_v38 = vld [vmem:[%s5094_s1 + $0x30] ss:$12 sps:$4 sm:$0xff]  }
 0x879   :  { %v3733_v42 = vpop.f32.mrf.mxu0 }
 0x87a   :  { %812 = vrot.lane.b32.xlu0 %v811_v40, %s4257_s8 }
 0x87e   :  { %836 = vrot.lane.b32.xlu0 %v834_v25, %s4256_s3 }
 0x8ec   :  { %v813_v47 = vpop.permute.xlu0 %812 }
 0x8ed   :  { %v815_v36 = vadd.f32 %v813_v47, %v4499_v45 }
 0x8ef   :  { %v3427_v48 = vmul.f32 -1.442695, %v815_v36 }
 0x8f0   :  { %v837_v63 = vpop.permute.xlu0 %836 }
 0x8f1   :  { %4109 = vpow2.f32 %v3427_v48  ;;  %v839_v2 = vadd.f32 %v837_v63, %v829_v1 }
 0x8fe   :  { %v4110_v49 = vpop.eup %4109 }
 0x8ff   :  { %v819_v51 = vadd.f32 1.0, %v4110_v49 }
 0x901   :  { %4111 = vrcp.f32 %v819_v51 }
 0x90e   :  { %v4112_v53 = vpop.eup %4111 }
 0x90f   :  { %v4503_v54 = vmul.f32 %v4112_v53, %v823_v52 }
 0x911   :  { %v842_v55 = vpack.c.bf16 %v4503_v54, %v4503_v54 }
 0x913   :  { %v844_v56 = vrot.slane %v842_v55, 1 }
 0x915   :  { %3745 = vmatmul.mubr.msk.bf16.vlgmr.msra.gmra.mxu0 %vm35_vm1, %v844_v56 }
 0x916   :  { %3760 = vmatprep.mubr.msk.bf16.mxu0 %vm4254_vm0, %v4253_v0  ;;  %3757 = vmatpush3.bf16.msra.mxu0 %v4022_v6 }
 0x917   :  { %3758 = vmatprep.subr.bf16.mxu0 %v4253_v0 }
 0x91a   :  { %3759 = vmatpush3.bf16.msra.mxu0 %v4024_v7 }
 0x91b   :  { %3772 = vmatprep.subr.bf16.mxu0 %v4253_v0 }
 0x9d5   :  { %v888_v57 = vpop.f32.mrf.mxu0 }
 0x9d6   :  { %4113 = vtanh.f32 %v888_v57 }
 0x9d7   :  { %v3746_v58 = vpop.f32.mrf.mxu0 }
 0x9d9   :  { %v891_v50 = vpop.f32.mrf.mxu0 }
 0x9db   :  { %v3747_v59 = vpop.f32.mrf.mxu0 }
 0x9e3   :  { %v4114_v60 = vpop.eup %4113 }
 0x9e4   :  { %v896_v61 = vrot.slane %v4114_v60, 6 }
 0x9e6   :  { %897 = vrot.lane.b32.xlu1 %v896_v61, %s4256_s3 }
 0xa58   :  { %v898_v3 = vpop.permute.xlu1 %897 }
 0xa59   :  { %v4512_v4 = vadd.f32 %v898_v3, %v839_v2 }
 0xa5b   :  { %4115 = vtanh.f32 %v4512_v4 }
 0xa68   :  { %v4116_v8 = vpop.eup %4115 }
 0xa69   :  { %903 = vrot.lane.b32.xlu0 %v4116_v8, %s4256_s3 }
 0xadb   :  { %v904_v11 = vpop.permute.xlu0 %903 }
 0xadc   :  { %v906_v10 = vmul.f32 %v4108_v43, %v904_v11 }
 0xade   :  { %v911_v14 = vpack.c.bf16 %v906_v10, %v906_v10 }
 0xae0   :  { %v913_v16 = vrot.slane %v911_v14, 1 }
 0xae2   :  { %914 = vrot.lane.b32.xlu1 %v913_v16, %s4258_s16 }
 0xae6   :  { %1146 = vrot.lane.b32.xlu1 %v4020_v44, %s4260_s22  ;;  %v1120_v44 = vrot.slane %v4441_v46, 6  ;;  %v4028_v46 = vld [vmem:[%s5094_s1 + $0x18] ss:$12 sps:$4 sm:$0xff]  }
 0xb54   :  { %v4537_v18 = vpop.permute.xlu1 %914 }
 0xb55   :  { %3753 = vmatmul.mubr.msk.bf16.vlgmr.msra.gmra.mxu1 %vm125_vm2, %v4537_v18  ;;  %3761 = vmatmul.mubr.msk.bf16.vlgmr.msra.gmra.mxu0 %vm125_vm2, %v4537_v18 }
 0xb56   :  { %3765 = vmatpush3.bf16.msra.mxu1 %v4025_v17  ;;  %3768 = vmatprep.mubr.msk.bf16.mxu1 %vm4254_vm0, %v4253_v0 }
 0xb57   :  { %3766 = vmatprep.subr.bf16.mxu1 %v4253_v0  ;;  %3774 = vmatprep.mubr.msk.bf16.mxu0 %vm4254_vm0, %v4253_v0 }
 0xb58   :  { %v1147_v20 = vpop.permute.xlu1 %1146 }
 0xb59   :  { %3773 = vmatpush3.bf16.msra.mxu0 %v1147_v20 }
 0xb5a   :  { %3767 = vmatpush3.bf16.msra.mxu1 %v4026_v19  ;;  %3786 = vmatprep.subr.bf16.mxu0 %v4253_v0 }
 0xb5b   :  { %3778 = vmatprep.subr.bf16.mxu1 %v4253_v0 }
 0xb5d   :  { %3769 = vmatmul.mubr.msk.bf16.vlgmr.msra.gmra.mxu1 %vm125_vm2, %v4476_v29 }
 0xb5e   :  { %3782 = vmatprep.mubr.msk.bf16.mxu1 %vm4254_vm0, %v4253_v0 }
 0xc15   :  { %v4557_v21 = vpop.f32.mrf.mxu1  ;;  %v1021_v23 = vpop.f32.mrf.mxu0 }
 0xc16   :  { %v1106_v24 = vrot.slane %v4557_v21, 6  ;;  %v1028_v26 = vrot.slane %v1021_v23, 6 }
 0xc17   :  { %v3754_v13 = vpop.f32.mrf.mxu1  ;;  %v3762_v9 = vpop.f32.mrf.mxu0 }
 0xc18   :  { %1107 = vrot.lane.b32.xlu0 %v1106_v24, %s4257_s8  ;;  %1029 = vrot.lane.b32.xlu1 %v1028_v26, %s4259_s21  ;;  %v4029_v13 = vld [vmem:[%s5094_s1 + $0x90] ss:$12 sps:$4 sm:$0xff]  }
 0xc19   :  { %v968_v27 = vpop.f32.mrf.mxu1  ;;  %v1024_v28 = vpop.f32.mrf.mxu0  ;;  %3779 = vmatpush3.bf16.msra.mxu1 %v4029_v13  ;;  %v4037_v13 = vld [vmem:[%s5094_s1 + $0x1c] ss:$12 sps:$4 sm:$0xff]  }
 0xc1a   :  { %v4030_v27 = vld [vmem:[%s5094_s1 + $0x78] ss:$12 sps:$4 sm:$0xff]   ;;  %3780 = vmatprep.subr.bf16.mxu1 %v4253_v0 }
 0xc1b   :  { %v3755_v12 = vpop.f32.mrf.mxu1  ;;  %v3763_v29 = vpop.f32.mrf.mxu0  ;;  %v1273_v28 = vld [vmem:[#allocation2] sm:$0x30] }
 0xc1d   :  { %v1084_v31 = vpop.f32.mrf.mxu1  ;;  %3781 = vmatpush3.bf16.msra.mxu1 %v4030_v27 }
 0xc1e   :  { %v1091_v51 = vrot.slane %v1084_v31, 6  ;;  %3794 = vmatprep.subr.bf16.mxu1 %v4253_v0 }
 0xc1f   :  { %v3770_v32 = vpop.f32.mrf.mxu1 }
 0xc21   :  { %v1087_v33 = vpop.f32.mrf.mxu1 }
 0xc23   :  { %v3771_v34 = vpop.f32.mrf.mxu1 }
 0xc8a   :  { %v1108_v37 = vpop.permute.xlu0 %1107 }
 0xc8b   :  { %v1110_v39 = vadd.f32 %v1108_v37, %v742_v35 }
 0xc8d   :  { %v1112_v41 = vadd.f32 %v1110_v39, %v811_v40  ;;  %v1030_v40 = vpop.permute.xlu1 %1029 }
 0xc8e   :  { %v1032_v53 = vadd.f32 %v1030_v40, %v4499_v45  ;;  %v1033_v55 = vadd.f32 %v1030_v40, %v742_v35  ;;  %v4031_v40 = vld [vmem:[%s5094_s1 + $0xa8] ss:$12 sps:$4 sm:$0xff]  }
 0xc8f   :  { %v3440_v42 = vmul.f32 -1.442695, %v1112_v41 }
 0xc91   :  { %4117 = vpow2.f32 %v3440_v42 }
 0xc9e   :  { %v4118_v43 = vpop.eup %4117 }
 0xc9f   :  { %v1116_v25 = vadd.f32 1.0, %v4118_v43 }
 0xca1   :  { %4119 = vrcp.f32 %v1116_v25 }
 0xcae   :  { %v4120_v47 = vpop.eup %4119 }
 0xcaf   :  { %v4565_v36 = vmul.f32 %v4120_v47, %v1120_v44 }
 0xcb1   :  { %v1141_v48 = vpack.c.bf16 %v4565_v36, %v4565_v36 }
 0xcb3   :  { %v1143_v49 = vrot.slane %v1141_v48, 1 }
 0xcb5   :  { %1144 = vrot.lane.b32.xlu0 %v1143_v49, %s4257_s8 }
 0xcb9   :  { %1092 = vrot.lane.b32.xlu0 %v1091_v51, %s4259_s21 }
 0xd27   :  { %v1145_v52 = vpop.permute.xlu0 %1144 }
 0xd28   :  { %3775 = vmatmul.mubr.msk.bf16.vlgmr.msra.gmra.mxu0 %vm35_vm1, %v1145_v52  ;;  %v4630_v52 = vld [vmem:[#allocation2 + $0x8] sm:$0x30] }
 0xd29   :  { %3787 = vmatpush3.bf16.msra.mxu0 %v4027_v38  ;;  %3790 = vmatprep.mubr.msk.bf16.mxu0 %vm4254_vm0, %v4253_v0 }
 0xd2a   :  { %3788 = vmatprep.subr.bf16.mxu0 %v4253_v0 }
 0xd2b   :  { %v1093_v56 = vpop.permute.xlu0 %1092 }
 0xd2c   :  { %v1095_v57 = vadd.f32 %v1093_v56, %v1032_v53  ;;  %v1096_v58 = vadd.f32 %v1093_v56, %v1033_v55 }
 0xd2d   :  { %3789 = vmatpush3.bf16.msra.mxu0 %v4028_v46 }
 0xd2e   :  { %4121 = vtanh.f32 %v1095_v57  ;;  %3800 = vmatprep.subr.bf16.mxu0 %v4253_v0  ;;  %v3439_v45 = vmul.f32 -1.442695, %v1095_v57 }
 0xd2f   :  { %4123 = vtanh.f32 %v1096_v58  ;;  %v1356_v58 = vrot.slane %v4503_v54, 6  ;;  %v1360_v54 = vrot.slane %v4512_v4, 6  ;;  %v4034_v4 = vld [vmem:[%s5094_s1 + $0x4c] ss:$12 sps:$4 sm:$0xff]  }
 0xd30   :  { %3791 = vmatmul.mubr.msk.bf16.vlgmr.msra.gmra.mxu0 %vm125_vm2, %v4537_v18  ;;  %4125 = vpow2.f32 %v3439_v45  ;;  %v1124_v18 = vrot.slane %v4470_v22, 6 }
 0xd31   :  { %3804 = vmatprep.mubr.msk.bf16.mxu0 %vm4254_vm0, %v4253_v0 }
 0xd3b   :  { %v4122_v50 = vpop.eup %4121 }
 0xd3c   :  { %v4124_v59 = vpop.eup %4123  ;;  %1129 = vrot.lane.b32.xlu1 %v4122_v50, %s4256_s3 }
 0xd3d   :  { %1131 = vrot.lane.b32.xlu0 %v4124_v59, %s4256_s3  ;;  %v4126_v60 = vpop.eup %4125 }
 0xd3e   :  { %v1100_v61 = vadd.f32 1.0, %v4126_v60 }
 0xd40   :  { %4127 = vrcp.f32 %v1100_v61 }
 0xd4d   :  { %v4128_v1 = vpop.eup %4127 }
 0xd4e   :  { %v1126_v20 = vmul.f32 %v4128_v1, %v1124_v18 }
 0xdae   :  { %v1130_v62 = vpop.permute.xlu1 %1129 }
 0xdaf   :  { %v1132_v63 = vpop.permute.xlu0 %1131 }
 0xdb0   :  { %v1133_v2 = vsel %vm125_vm2, %v1130_v62, %v1132_v63 }
 0xdb1   :  { %v1135_v3 = vmul.f32 %v4128_v1, %v1133_v2 }
 0xdb3   :  { %1137 = vrot.lane.b32.xlu1 %v1135_v3, %s4256_s3 }
 0xde8   :  { %v1186_v5 = vpop.f32.mrf.mxu0 }
 0xde9   :  { %4129 = vtanh.f32 %v1186_v5 }
 0xdea   :  { %v3776_v6 = vpop.f32.mrf.mxu0 }
 0xdec   :  { %v1189_v15 = vpop.f32.mrf.mxu0 }
 0xdee   :  { %v3777_v7 = vpop.f32.mrf.mxu0 }
 0xdf0   :  { %v1326_v8 = vpop.f32.mrf.mxu0 }
 0xdf1   :  { %v1333_v22 = vrot.slane %v1326_v8, 4 }
 0xdf2   :  { %v3792_v11 = vpop.f32.mrf.mxu0 }
 0xdf3   :  { %v1335_v12 = vadd.f32 %v1333_v22, %v1273_v28  ;;  %v4032_v11 = vld [vmem:[%s5094_s1 + $0x64] ss:$12 sps:$4 sm:$0xff]  }
 0xdf4   :  { %v1329_v10 = vpop.f32.mrf.mxu0  ;;  %3801 = vmatpush3.bf16.msra.mxu0 %v4032_v11 }
 0xdf5   :  { %v3449_v37 = vmul.f32 -1.442695, %v1335_v12  ;;  %v4033_v10 = vld [vmem:[%s5094_s1 + $0x60] ss:$12 sps:$4 sm:$0xff]   ;;  %3802 = vmatprep.subr.bf16.mxu0 %v4253_v0 }
 0xdf6   :  { %v4130_v14 = vpop.eup %4129  ;;  %v3793_v16 = vpop.f32.mrf.mxu0 }
 0xdf7   :  { %v1194_v17 = vrot.slane %v4130_v14, 6  ;;  %v4035_v14 = vld [vmem:[%s5094_s1 + $0x48] ss:$12 sps:$4 sm:$0xff]  }
 0xdf8   :  { %3803 = vmatpush3.bf16.msra.mxu0 %v4034_v4 }
 0xdf9   :  { %1195 = vrot.lane.b32.xlu0 %v1194_v17, %s4261_s27  ;;  %3816 = vmatprep.subr.bf16.mxu0 %v4253_v0 }
 0xe25   :  { %v1138_v19 = vpop.permute.xlu1 %1137 }
 0xe26   :  { %v1140_v23 = vadd.f32 %v1138_v19, %v1126_v20 }
 0xe6b   :  { %v1196_v24 = vpop.permute.xlu0 %1195 }
 0xe6c   :  { %v4593_v26 = vadd.f32 %v1196_v24, %v1140_v23  ;;  %v4036_v23 = vld [vmem:[%s5094_s1 + $0x34] ss:$12 sps:$4 sm:$0xff]  }
 0xe6e   :  { %4131 = vtanh.f32 %v4593_v26 }
 0xe6f   :  { %4133 = vtanh.f32 %v1335_v12 }
 0xe70   :  { %4135 = vpow2.f32 %v3449_v37 }
 0xe7b   :  { %v4132_v9 = vpop.eup %4131 }
 0xe7c   :  { %1201 = vrot.lane.b32.xlu1 %v4132_v9, %s4256_s3  ;;  %v4134_v34 = vpop.eup %4133 }
 0xe7d   :  { %v4136_v39 = vpop.eup %4135 }
 0xe7e   :  { %v1339_v41 = vadd.f32 1.0, %v4136_v39 }
 0xe80   :  { %4137 = vrcp.f32 %v1339_v41 }
 0xe8d   :  { %v4138_v38 = vpop.eup %4137 }
 0xe8e   :  { %v1362_v6 = vmul.f32 %v4138_v38, %v1360_v54 }
 0xeee   :  { %v1202_v29 = vpop.permute.xlu1 %1201 }
 0xeef   :  { %v1204_v31 = vmul.f32 %v4128_v1, %v1202_v29 }
 0xef1   :  { %v1209_v32 = vpack.c.bf16 %v1204_v31, %v1204_v31 }
 0xef3   :  { %v1211_v33 = vrot.slane %v1209_v32, 1 }
 0xef5   :  { %1212 = vrot.lane.b32.xlu0 %v1211_v33, %s4261_s27 }
 0xef9   :  { %1364 = vrot.lane.b32.xlu0 %v4134_v34, %s4256_s3 }
 0xf67   :  { %v4607_v35 = vpop.permute.xlu0 %1212 }
 0xf68   :  { %3783 = vmatmul.mubr.msk.bf16.vlgmr.msra.gmra.mxu1 %vm125_vm2, %v4607_v35 }
 0xf69   :  { %3796 = vmatprep.mubr.msk.bf16.mxu1 %vm4254_vm0, %v4253_v0  ;;  %3795 = vmatpush3.bf16.msra.mxu1 %v4031_v40 }
 0xf6a   :  { %3808 = vmatprep.subr.bf16.mxu1 %v4253_v0 }
 0xf6b   :  { %v1365_v49 = vpop.permute.xlu0 %1364 }
0x1028   :  { %v1263_v42 = vpop.f32.mrf.mxu1 }
0x1029   :  { %v1269_v43 = vadd.f32 %v1263_v42, %v4557_v21  ;;  %v1367_v21 = vmul.f32 %v4138_v38, %v1365_v49 }
0x102a   :  { %v3784_v25 = vpop.f32.mrf.mxu1 }
0x102b   :  { %v4615_v44 = vadd.f32 %v1269_v43, %v4362_v30  ;;  %v1275_v43 = vld [vmem:[#allocation2 + $0x10] sm:$0x30] }
0x102c   :  { %v1266_v47 = vpop.f32.mrf.mxu1 }
0x102d   :  { %3445 = vst [vmem:[%s5096_s2 + $0x2] sm:$0x3] %v4615_v44  ;;  %v1344_v48 = vrot.slane %v4615_v44, 4  ;;  %v4038_v44 = vld [vmem:[%s5094_s1 + $0x30] ss:$12 sps:$4 sm:$0xff]  }
0x102e   :  { %v3785_v51 = vpop.f32.mrf.mxu1 }
0x102f   :  { %1345 = vrot.lane.b32.xlu1 %v1344_v48, %s4257_s8 }
0x1033   :  { %1369 = vrot.lane.b32.xlu1 %v1367_v21, %s4256_s3 }
0x10a1   :  { %v1346_v46 = vpop.permute.xlu1 %1345 }
0x10a2   :  { %v1348_v53 = vadd.f32 %v1346_v46, %v4630_v52 }
0x10a4   :  { %v3450_v55 = vmul.f32 -1.442695, %v1348_v53 }
0x10a5   :  { %v1370_v5 = vpop.permute.xlu1 %1369 }
0x10a6   :  { %4139 = vpow2.f32 %v3450_v55  ;;  %v1372_v15 = vadd.f32 %v1370_v5, %v1362_v6 }
0x10b3   :  { %v4140_v56 = vpop.eup %4139 }
0x10b4   :  { %v1352_v57 = vadd.f32 1.0, %v4140_v56 }
0x10b6   :  { %4141 = vrcp.f32 %v1352_v57 }
0x10c3   :  { %v4142_v50 = vpop.eup %4141 }
0x10c4   :  { %v4634_v59 = vmul.f32 %v4142_v50, %v1356_v58 }
0x10c6   :  { %v1375_v45 = vpack.c.bf16 %v4634_v59, %v4634_v59 }
0x10c8   :  { %v1377_v60 = vrot.slane %v1375_v45, 2 }
0x10ca   :  { %3797 = vmatmul.mubr.msk.bf16.vlgmr.msra.gmra.mxu1 %vm35_vm1, %v1377_v60 }
0x10cb   :  { %3812 = vmatprep.mubr.msk.bf16.mxu1 %vm4254_vm0, %v4253_v0  ;;  %3809 = vmatpush3.bf16.msra.mxu1 %v4033_v10 }
0x10cc   :  { %3810 = vmatprep.subr.bf16.mxu1 %v4253_v0 }
0x10cf   :  { %3811 = vmatpush3.bf16.msra.mxu1 %v4035_v14 }
0x10d0   :  { %3824 = vmatprep.subr.bf16.mxu1 %v4253_v0 }
0x118a   :  { %v1421_v61 = vpop.f32.mrf.mxu1 }
0x118b   :  { %4143 = vtanh.f32 %v1421_v61 }
0x118c   :  { %v3798_v62 = vpop.f32.mrf.mxu1 }
0x118e   :  { %v1424_v63 = vpop.f32.mrf.mxu1 }
0x1190   :  { %v3799_v1 = vpop.f32.mrf.mxu1 }
0x1198   :  { %v4144_v2 = vpop.eup %4143 }
0x1199   :  { %v1429_v3 = vrot.slane %v4144_v2, 4 }
0x119b   :  { %1430 = vrot.lane.b32.xlu0 %v1429_v3, %s4256_s3 }
0x120d   :  { %v1431_v7 = vpop.permute.xlu0 %1430 }
0x120e   :  { %v4643_v8 = vadd.f32 %v1431_v7, %v1372_v15 }
0x1210   :  { %4145 = vtanh.f32 %v4643_v8 }
0x121d   :  { %v4146_v16 = vpop.eup %4145 }
0x121e   :  { %1436 = vrot.lane.b32.xlu1 %v4146_v16, %s4256_s3 }
0x1290   :  { %v1437_v17 = vpop.permute.xlu1 %1436 }
0x1291   :  { %v1439_v18 = vmul.f32 %v4138_v38, %v1437_v17 }
0x1293   :  { %v1444_v19 = vpack.c.bf16 %v1439_v18, %v1439_v18 }
0x1295   :  { %v1446_v20 = vrot.slane %v1444_v19, 2 }
0x1297   :  { %1447 = vrot.lane.b32.xlu0 %v1446_v20, %s4258_s16 }
0x129b   :  { %1679 = vrot.lane.b32.xlu0 %v4031_v40, %s4260_s22  ;;  %v1653_v40 = vrot.slane %v4565_v36, 6  ;;  %v4039_v36 = vld [vmem:[%s5094_s1 + $0x18] ss:$12 sps:$4 sm:$0xff]  }
0x1309   :  { %v4668_v24 = vpop.permute.xlu0 %1447 }
0x130a   :  { %3805 = vmatmul.mubr.msk.bf16.vlgmr.msra.gmra.mxu0 %vm125_vm2, %v4668_v24  ;;  %3813 = vmatmul.mubr.msk.bf16.vlgmr.msra.gmra.mxu1 %vm125_vm2, %v4668_v24 }
0x130b   :  { %3817 = vmatpush3.bf16.msra.mxu0 %v4036_v23  ;;  %3820 = vmatprep.mubr.msk.bf16.mxu0 %vm4254_vm0, %v4253_v0 }
0x130c   :  { %3818 = vmatprep.subr.bf16.mxu0 %v4253_v0  ;;  %3826 = vmatprep.mubr.msk.bf16.mxu1 %vm4254_vm0, %v4253_v0 }
0x130d   :  { %v1680_v9 = vpop.permute.xlu0 %1679 }
0x130e   :  { %3825 = vmatpush3.bf16.msra.mxu1 %v1680_v9 }
0x130f   :  { %3819 = vmatpush3.bf16.msra.mxu0 %v4037_v13  ;;  %3838 = vmatprep.subr.bf16.mxu1 %v4253_v0 }
0x1310   :  { %3830 = vmatprep.subr.bf16.mxu0 %v4253_v0 }
0x1312   :  { %3821 = vmatmul.mubr.msk.bf16.vlgmr.msra.gmra.mxu0 %vm125_vm2, %v4607_v35 }
0x1313   :  { %3834 = vmatprep.mubr.msk.bf16.mxu0 %vm4254_vm0, %v4253_v0 }
0x13ca   :  { %v4688_v27 = vpop.f32.mrf.mxu0  ;;  %v1554_v22 = vpop.f32.mrf.mxu1 }
0x13cb   :  { %v1639_v28 = vrot.slane %v4688_v27, 4  ;;  %v1561_v12 = vrot.slane %v1554_v22, 4 }
0x13cc   :  { %v3806_v29 = vpop.f32.mrf.mxu0  ;;  %v3814_v31 = vpop.f32.mrf.mxu1 }
0x13cd   :  { %1562 = vrot.lane.b32.xlu0 %v1561_v12, %s4259_s21  ;;  %1640 = vrot.lane.b32.xlu1 %v1639_v28, %s4257_s8  ;;  %v4040_v29 = vld [vmem:[%s5094_s1 + $0x90] ss:$12 sps:$4 sm:$0xff]  }
0x13ce   :  { %v1501_v32 = vpop.f32.mrf.mxu0  ;;  %v1557_v33 = vpop.f32.mrf.mxu1  ;;  %3831 = vmatpush3.bf16.msra.mxu0 %v4040_v29  ;;  %v4048_v29 = vld [vmem:[%s5094_s1 + $0x1c] ss:$12 sps:$4 sm:$0xff]  }
0x13cf   :  { %v4041_v32 = vld [vmem:[%s5094_s1 + $0x78] ss:$12 sps:$4 sm:$0xff]   ;;  %3832 = vmatprep.subr.bf16.mxu0 %v4253_v0 }
0x13d0   :  { %v3807_v34 = vpop.f32.mrf.mxu0  ;;  %v3815_v35 = vpop.f32.mrf.mxu1  ;;  %v1806_v33 = vld [vmem:[#allocation2] sm:$0xc0] }
0x13d2   :  { %v1617_v37 = vpop.f32.mrf.mxu0  ;;  %3833 = vmatpush3.bf16.msra.mxu0 %v4041_v32 }
0x13d3   :  { %v1624_v57 = vrot.slane %v1617_v37, 4  ;;  %3846 = vmatprep.subr.bf16.mxu0 %v4253_v0 }
0x13d4   :  { %v3822_v39 = vpop.f32.mrf.mxu0 }
0x13d6   :  { %v1620_v41 = vpop.f32.mrf.mxu0 }
0x13d8   :  { %v3823_v42 = vpop.f32.mrf.mxu0 }
0x143f   :  { %v1641_v25 = vpop.permute.xlu1 %1640 }
0x1440   :  { %v1643_v47 = vadd.f32 %v1641_v25, %v1275_v43 }
0x1442   :  { %v1645_v49 = vadd.f32 %v1643_v47, %v1344_v48  ;;  %v1563_v48 = vpop.permute.xlu0 %1562 }
0x1443   :  { %v1565_v50 = vadd.f32 %v1563_v48, %v4630_v52  ;;  %v1566_v45 = vadd.f32 %v1563_v48, %v1275_v43  ;;  %v4042_v48 = vld [vmem:[%s5094_s1 + $0xa8] ss:$12 sps:$4 sm:$0xff]  }
0x1444   :  { %v3463_v51 = vmul.f32 -1.442695, %v1645_v49 }
0x1446   :  { %4147 = vpow2.f32 %v3463_v51 }
0x1453   :  { %v4148_v38 = vpop.eup %4147 }
0x1454   :  { %v1649_v21 = vadd.f32 1.0, %v4148_v38 }
0x1456   :  { %4149 = vrcp.f32 %v1649_v21 }
0x1463   :  { %v4150_v46 = vpop.eup %4149 }
0x1464   :  { %v4696_v53 = vmul.f32 %v4150_v46, %v1653_v40 }
0x1466   :  { %v1674_v55 = vpack.c.bf16 %v4696_v53, %v4696_v53 }
0x1468   :  { %v1676_v56 = vrot.slane %v1674_v55, 2 }
0x146a   :  { %1677 = vrot.lane.b32.xlu1 %v1676_v56, %s4257_s8 }
0x146e   :  { %1625 = vrot.lane.b32.xlu1 %v1624_v57, %s4259_s21 }
0x14dc   :  { %v1678_v58 = vpop.permute.xlu1 %1677 }
0x14dd   :  { %3827 = vmatmul.mubr.msk.bf16.vlgmr.msra.gmra.mxu1 %vm35_vm1, %v1678_v58  ;;  %v4761_v58 = vld [vmem:[#allocation2 + $0x8] sm:$0xc0] }
0x14de   :  { %3839 = vmatpush3.bf16.msra.mxu1 %v4038_v44  ;;  %3842 = vmatprep.mubr.msk.bf16.mxu1 %vm4254_vm0, %v4253_v0 }
0x14df   :  { %3840 = vmatprep.subr.bf16.mxu1 %v4253_v0 }
0x14e0   :  { %v1626_v60 = vpop.permute.xlu1 %1625 }
0x14e1   :  { %v1628_v61 = vadd.f32 %v1626_v60, %v1565_v50  ;;  %v1629_v62 = vadd.f32 %v1626_v60, %v1566_v45 }
0x14e2   :  { %3841 = vmatpush3.bf16.msra.mxu1 %v4039_v36 }
0x14e3   :  { %4151 = vtanh.f32 %v1628_v61  ;;  %3852 = vmatprep.subr.bf16.mxu1 %v4253_v0  ;;  %v3462_v52 = vmul.f32 -1.442695, %v1628_v61 }
0x14e4   :  { %4153 = vtanh.f32 %v1629_v62  ;;  %v1889_v62 = vrot.slane %v4634_v59, 6  ;;  %v1893_v59 = vrot.slane %v4643_v8, 6  ;;  %v4045_v8 = vld [vmem:[%s5094_s1 + $0x4c] ss:$12 sps:$4 sm:$0xff]  }
0x14e5   :  { %3843 = vmatmul.mubr.msk.bf16.vlgmr.msra.gmra.mxu1 %vm125_vm2, %v4668_v24  ;;  %4155 = vpow2.f32 %v3462_v52  ;;  %v1657_v24 = vrot.slane %v4593_v26, 6 }
0x14e6   :  { %3856 = vmatprep.mubr.msk.bf16.mxu1 %vm4254_vm0, %v4253_v0 }
0x14f0   :  { %v4152_v63 = vpop.eup %4151 }
0x14f1   :  { %v4154_v1 = vpop.eup %4153  ;;  %1662 = vrot.lane.b32.xlu0 %v4152_v63, %s4256_s3 }
0x14f2   :  { %1664 = vrot.lane.b32.xlu1 %v4154_v1, %s4256_s3  ;;  %v4156_v2 = vpop.eup %4155 }
0x14f3   :  { %v1633_v3 = vadd.f32 1.0, %v4156_v2 }
0x14f5   :  { %4157 = vrcp.f32 %v1633_v3 }
0x1502   :  { %v4158_v6 = vpop.eup %4157 }
0x1503   :  { %v1659_v9 = vmul.f32 %v4158_v6, %v1657_v24 }
0x1563   :  { %v1663_v54 = vpop.permute.xlu0 %1662 }
0x1564   :  { %v1665_v5 = vpop.permute.xlu1 %1664 }
0x1565   :  { %v1666_v15 = vsel %vm125_vm2, %v1663_v54, %v1665_v5 }
0x1566   :  { %v1668_v7 = vmul.f32 %v4158_v6, %v1666_v15 }
0x1568   :  { %1670 = vrot.lane.b32.xlu0 %v1668_v7, %s4256_s3 }
0x159d   :  { %v1719_v11 = vpop.f32.mrf.mxu1 }
0x159e   :  { %4159 = vtanh.f32 %v1719_v11 }
0x159f   :  { %v3828_v10 = vpop.f32.mrf.mxu1 }
0x15a1   :  { %v1722_v4 = vpop.f32.mrf.mxu1 }
0x15a3   :  { %v3829_v14 = vpop.f32.mrf.mxu1 }
0x15a5   :  { %v1859_v16 = vpop.f32.mrf.mxu1 }
0x15a6   :  { %v1866_v26 = vrot.slane %v1859_v16, 2 }
0x15a7   :  { %v3844_v17 = vpop.f32.mrf.mxu1 }
0x15a8   :  { %v1868_v34 = vadd.f32 %v1866_v26, %v1806_v33  ;;  %v4043_v17 = vld [vmem:[%s5094_s1 + $0x64] ss:$12 sps:$4 sm:$0xff]  }
0x15a9   :  { %v1862_v18 = vpop.f32.mrf.mxu1  ;;  %3853 = vmatpush3.bf16.msra.mxu1 %v4043_v17 }
0x15aa   :  { %v3472_v25 = vmul.f32 -1.442695, %v1868_v34  ;;  %v4044_v18 = vld [vmem:[%s5094_s1 + $0x60] ss:$12 sps:$4 sm:$0xff]   ;;  %3854 = vmatprep.subr.bf16.mxu1 %v4253_v0 }
0x15ab   :  { %v4160_v19 = vpop.eup %4159  ;;  %v3845_v20 = vpop.f32.mrf.mxu1 }
0x15ac   :  { %v1727_v23 = vrot.slane %v4160_v19, 4  ;;  %v4046_v19 = vld [vmem:[%s5094_s1 + $0x48] ss:$12 sps:$4 sm:$0xff]  }
0x15ad   :  { %3855 = vmatpush3.bf16.msra.mxu1 %v4045_v8 }
0x15ae   :  { %1728 = vrot.lane.b32.xlu1 %v1727_v23, %s4261_s27  ;;  %3868 = vmatprep.subr.bf16.mxu1 %v4253_v0 }
0x15da   :  { %v1671_v13 = vpop.permute.xlu0 %1670 }
0x15db   :  { %v1673_v22 = vadd.f32 %v1671_v13, %v1659_v9 }
0x1620   :  { %v1729_v28 = vpop.permute.xlu1 %1728 }
0x1621   :  { %v4724_v12 = vadd.f32 %v1729_v28, %v1673_v22  ;;  %v4047_v22 = vld [vmem:[%s5094_s1 + $0x34] ss:$12 sps:$4 sm:$0xff]  }
0x1623   :  { %4161 = vtanh.f32 %v4724_v12 }
0x1624   :  { %4163 = vtanh.f32 %v1868_v34 }
0x1625   :  { %4165 = vpow2.f32 %v3472_v25 }
0x1630   :  { %v4162_v31 = vpop.eup %4161 }
0x1631   :  { %1734 = vrot.lane.b32.xlu0 %v4162_v31, %s4256_s3  ;;  %v4164_v42 = vpop.eup %4163 }
0x1632   :  { %v4166_v47 = vpop.eup %4165 }
0x1633   :  { %v1872_v49 = vadd.f32 1.0, %v4166_v47 }
0x1635   :  { %4167 = vrcp.f32 %v1872_v49 }
0x1642   :  { %v4168_v44 = vpop.eup %4167 }
0x1643   :  { %v1895_v10 = vmul.f32 %v4168_v44, %v1893_v59 }
0x16a3   :  { %v1735_v35 = vpop.permute.xlu0 %1734 }
0x16a4   :  { %v1737_v37 = vmul.f32 %v4158_v6, %v1735_v35 }
0x16a6   :  { %v1742_v39 = vpack.c.bf16 %v1737_v37, %v1737_v37 }
0x16a8   :  { %v1744_v41 = vrot.slane %v1742_v39, 2 }
0x16aa   :  { %1745 = vrot.lane.b32.xlu1 %v1744_v41, %s4261_s27 }
0x16ae   :  { %1897 = vrot.lane.b32.xlu1 %v4164_v42, %s4256_s3 }
0x171c   :  { %v4738_v43 = vpop.permute.xlu1 %1745 }
0x171d   :  { %3835 = vmatmul.mubr.msk.bf16.vlgmr.msra.gmra.mxu0 %vm125_vm2, %v4738_v43 }
0x171e   :  { %3848 = vmatprep.mubr.msk.bf16.mxu0 %vm4254_vm0, %v4253_v0  ;;  %3847 = vmatpush3.bf16.msra.mxu0 %v4042_v48 }
0x171f   :  { %3860 = vmatprep.subr.bf16.mxu0 %v4253_v0 }
0x1720   :  { %v1898_v56 = vpop.permute.xlu1 %1897 }
0x17dd   :  { %v1796_v51 = vpop.f32.mrf.mxu0 }
0x17de   :  { %v1802_v38 = vadd.f32 %v1796_v51, %v4688_v27  ;;  %v1900_v27 = vmul.f32 %v4168_v44, %v1898_v56 }
0x17df   :  { %v3836_v21 = vpop.f32.mrf.mxu0 }
0x17e0   :  { %v4746_v40 = vadd.f32 %v1802_v38, %v4362_v30  ;;  %v1808_v38 = vld [vmem:[#allocation2 + $0x10] sm:$0xc0] }
0x17e1   :  { %v1799_v46 = vpop.f32.mrf.mxu0 }
0x17e2   :  { %3468 = vst [vmem:[%s5096_s2 + $0x4] sm:$0x3] %v4746_v40  ;;  %v1877_v55 = vrot.slane %v4746_v40, 2  ;;  %v4049_v40 = vld [vmem:[%s5094_s1 + $0x30] ss:$12 sps:$4 sm:$0xff]  }
0x17e3   :  { %v3837_v57 = vpop.f32.mrf.mxu0 }
0x17e4   :  { %1878 = vrot.lane.b32.xlu0 %v1877_v55, %s4257_s8 }
0x17e8   :  { %1902 = vrot.lane.b32.xlu0 %v1900_v27, %s4256_s3 }
0x1856   :  { %v1879_v36 = vpop.permute.xlu0 %1878 }
0x1857   :  { %v1881_v50 = vadd.f32 %v1879_v36, %v4761_v58 }
0x1859   :  { %v3473_v45 = vmul.f32 -1.442695, %v1881_v50 }
0x185a   :  { %v1903_v11 = vpop.permute.xlu0 %1902 }
0x185b   :  { %4169 = vpow2.f32 %v3473_v45  ;;  %v1905_v4 = vadd.f32 %v1903_v11, %v1895_v10 }
0x1868   :  { %v4170_v60 = vpop.eup %4169 }
0x1869   :  { %v1885_v61 = vadd.f32 1.0, %v4170_v60 }
0x186b   :  { %4171 = vrcp.f32 %v1885_v61 }
0x1878   :  { %v4172_v63 = vpop.eup %4171 }
0x1879   :  { %v4765_v1 = vmul.f32 %v4172_v63, %v1889_v62 }
0x187b   :  { %v1908_v52 = vpack.c.bf16 %v4765_v1, %v4765_v1 }
0x187d   :  { %v1910_v2 = vrot.slane %v1908_v52, 3 }
0x187f   :  { %3849 = vmatmul.mubr.msk.bf16.vlgmr.msra.gmra.mxu0 %vm35_vm1, %v1910_v2 }
0x1880   :  { %3864 = vmatprep.mubr.msk.bf16.mxu0 %vm4254_vm0, %v4253_v0  ;;  %3861 = vmatpush3.bf16.msra.mxu0 %v4044_v18 }
0x1881   :  { %3862 = vmatprep.subr.bf16.mxu0 %v4253_v0 }
0x1884   :  { %3863 = vmatpush3.bf16.msra.mxu0 %v4046_v19 }
0x1885   :  { %3876 = vmatprep.subr.bf16.mxu0 %v4253_v0 }
0x193f   :  { %v1954_v3 = vpop.f32.mrf.mxu0 }
0x1940   :  { %4173 = vtanh.f32 %v1954_v3 }
0x1941   :  { %v3850_v54 = vpop.f32.mrf.mxu0 }
0x1943   :  { %v1957_v5 = vpop.f32.mrf.mxu0 }
0x1945   :  { %v3851_v6 = vpop.f32.mrf.mxu0 }
0x194d   :  { %v4174_v15 = vpop.eup %4173 }
0x194e   :  { %v1962_v7 = vrot.slane %v4174_v15, 2 }
0x1950   :  { %1963 = vrot.lane.b32.xlu1 %v1962_v7, %s4256_s3 }
0x19c2   :  { %v1964_v14 = vpop.permute.xlu1 %1963 }
0x19c3   :  { %v4774_v16 = vadd.f32 %v1964_v14, %v1905_v4 }
0x19c5   :  { %4175 = vtanh.f32 %v4774_v16 }
0x19d2   :  { %v4176_v20 = vpop.eup %4175 }
0x19d3   :  { %1969 = vrot.lane.b32.xlu0 %v4176_v20, %s4256_s3 }
0x1a45   :  { %v1970_v23 = vpop.permute.xlu0 %1969 }
0x1a46   :  { %v1972_v24 = vmul.f32 %v4168_v44, %v1970_v23 }
0x1a48   :  { %v1977_v13 = vpack.c.bf16 %v1972_v24, %v1972_v24 }
0x1a4a   :  { %v1979_v9 = vrot.slane %v1977_v13, 3 }
0x1a4c   :  { %1980 = vrot.lane.b32.xlu1 %v1979_v9, %s4258_s16 }
0x1a50   :  { %2212 = vrot.lane.b32.xlu1 %v4042_v48, %s4260_s22  ;;  %v2186_v48 = vrot.slane %v4696_v53, 6  ;;  %v4050_v53 = vld [vmem:[%s5094_s1 + $0x18] ss:$12 sps:$4 sm:$0xff]  }
0x1abe   :  { %v4799_v28 = vpop.permute.xlu1 %1980 }
0x1abf   :  { %3857 = vmatmul.mubr.msk.bf16.vlgmr.msra.gmra.mxu1 %vm125_vm2, %v4799_v28  ;;  %3865 = vmatmul.mubr.msk.bf16.vlgmr.msra.gmra.mxu0 %vm125_vm2, %v4799_v28 }
0x1ac0   :  { %3869 = vmatpush3.bf16.msra.mxu1 %v4047_v22  ;;  %3872 = vmatprep.mubr.msk.bf16.mxu1 %vm4254_vm0, %v4253_v0 }
0x1ac1   :  { %3870 = vmatprep.subr.bf16.mxu1 %v4253_v0  ;;  %3878 = vmatprep.mubr.msk.bf16.mxu0 %vm4254_vm0, %v4253_v0 }
0x1ac2   :  { %v2213_v31 = vpop.permute.xlu1 %2212 }
0x1ac3   :  { %3877 = vmatpush3.bf16.msra.mxu0 %v2213_v31 }
0x1ac4   :  { %3871 = vmatpush3.bf16.msra.mxu1 %v4048_v29  ;;  %3890 = vmatprep.subr.bf16.mxu0 %v4253_v0 }
0x1ac5   :  { %3882 = vmatprep.subr.bf16.mxu1 %v4253_v0 }
0x1ac7   :  { %3873 = vmatmul.mubr.msk.bf16.vlgmr.msra.gmra.mxu1 %vm125_vm2, %v4738_v43 }
0x1ac8   :  { %3886 = vmatprep.mubr.msk.bf16.mxu1 %vm4254_vm0, %v4253_v0 }
0x1b7f   :  { %v4819_v32 = vpop.f32.mrf.mxu1  ;;  %v2087_v26 = vpop.f32.mrf.mxu0 }
0x1b80   :  { %v2172_v33 = vrot.slane %v4819_v32, 2  ;;  %v2094_v34 = vrot.slane %v2087_v26, 2 }
0x1b81   :  { %v3858_v35 = vpop.f32.mrf.mxu1  ;;  %v3866_v37 = vpop.f32.mrf.mxu0 }
0x1b82   :  { %2173 = vrot.lane.b32.xlu0 %v2172_v33, %s4257_s8  ;;  %2095 = vrot.lane.b32.xlu1 %v2094_v34, %s4259_s21  ;;  %v4051_v35 = vld [vmem:[%s5094_s1 + $0x90] ss:$12 sps:$4 sm:$0xff]  }
0x1b83   :  { %v2034_v39 = vpop.f32.mrf.mxu1  ;;  %v2090_v41 = vpop.f32.mrf.mxu0  ;;  %3883 = vmatpush3.bf16.msra.mxu1 %v4051_v35 }
0x1b84   :  { %v4052_v39 = vld [vmem:[%s5094_s1 + $0x78] ss:$12 sps:$4 sm:$0xff]   ;;  %3884 = vmatprep.subr.bf16.mxu1 %v4253_v0 }
0x1b85   :  { %v3859_v42 = vpop.f32.mrf.mxu1  ;;  %v3867_v43 = vpop.f32.mrf.mxu0 }
0x1b87   :  { %v2150_v25 = vpop.f32.mrf.mxu1  ;;  %3885 = vmatpush3.bf16.msra.mxu1 %v4052_v39 }
0x1b88   :  { %v2157_v61 = vrot.slane %v2150_v25, 2  ;;  %3898 = vmatprep.subr.bf16.mxu1 %v4253_v0 }
0x1b89   :  { %v3874_v47 = vpop.f32.mrf.mxu1 }
0x1b8b   :  { %v2153_v49 = vpop.f32.mrf.mxu1 }
0x1b8d   :  { %v3875_v51 = vpop.f32.mrf.mxu1 }
0x1bf4   :  { %v2174_v21 = vpop.permute.xlu0 %2173 }
0x1bf5   :  { %v2176_v46 = vadd.f32 %v2174_v21, %v1808_v38 }
0x1bf7   :  { %v2178_v56 = vadd.f32 %v2176_v46, %v1877_v55  ;;  %v2096_v55 = vpop.permute.xlu1 %2095 }
0x1bf8   :  { %v2098_v63 = vadd.f32 %v2096_v55, %v4761_v58  ;;  %v2099_v52 = vadd.f32 %v2096_v55, %v1808_v38  ;;  %v4890_v55 = vld [vmem:[#allocation2 + $0x20] sm:$0x3] }
0x1bf9   :  { %v3486_v57 = vmul.f32 -1.442695, %v2178_v56 }
0x1bfb   :  { %4177 = vpow2.f32 %v3486_v57 }
0x1c08   :  { %v4178_v44 = vpop.eup %4177 }
0x1c09   :  { %v2182_v27 = vadd.f32 1.0, %v4178_v44 }
0x1c0b   :  { %4179 = vrcp.f32 %v2182_v27 }
0x1c18   :  { %v4180_v36 = vpop.eup %4179 }
0x1c19   :  { %v4827_v50 = vmul.f32 %v4180_v36, %v2186_v48 }
0x1c1b   :  { %v2207_v45 = vpack.c.bf16 %v4827_v50, %v4827_v50 }
0x1c1d   :  { %v2209_v60 = vrot.slane %v2207_v45, 3 }
0x1c1f   :  { %2210 = vrot.lane.b32.xlu0 %v2209_v60, %s4257_s8 }
0x1c23   :  { %2158 = vrot.lane.b32.xlu0 %v2157_v61, %s4259_s21 }
0x1c91   :  { %v2211_v62 = vpop.permute.xlu0 %2210 }
0x1c92   :  { %3879 = vmatmul.mubr.msk.bf16.vlgmr.msra.gmra.mxu0 %vm35_vm1, %v2211_v62 }
0x1c93   :  { %3891 = vmatpush3.bf16.msra.mxu0 %v4049_v40  ;;  %3894 = vmatprep.mubr.msk.bf16.mxu0 %vm4254_vm0, %v4253_v0 }
0x1c94   :  { %3892 = vmatprep.subr.bf16.mxu0 %v4253_v0 }
0x1c95   :  { %v2159_v2 = vpop.permute.xlu0 %2158 }
0x1c96   :  { %v2161_v3 = vadd.f32 %v2159_v2, %v2098_v63  ;;  %v2162_v54 = vadd.f32 %v2159_v2, %v2099_v52  ;;  %v2418_v2 = vrot.slane %v4765_v1, 6  ;;  %v2422_v1 = vrot.slane %v4774_v16, 6  ;;  %v4056_v16 = vld [vmem:[%s5094_s1 + $0x4c] ss:$12 sps:$4 sm:$0xff]  }
0x1c97   :  { %3893 = vmatpush3.bf16.msra.mxu0 %v4050_v53 }
0x1c98   :  { %4181 = vtanh.f32 %v2161_v3  ;;  %3904 = vmatprep.subr.bf16.mxu0 %v4253_v0  ;;  %v3485_v58 = vmul.f32 -1.442695, %v2161_v3 }
0x1c99   :  { %4183 = vtanh.f32 %v2162_v54 }
0x1c9a   :  { %3895 = vmatmul.mubr.msk.bf16.vlgmr.msra.gmra.mxu0 %vm125_vm2, %v4799_v28  ;;  %4185 = vpow2.f32 %v3485_v58  ;;  %v2190_v28 = vrot.slane %v4724_v12, 6  ;;  %v2339_v12 = vld [vmem:[#allocation2 + $0x18] sm:$0x3] }
0x1c9b   :  { %3908 = vmatprep.mubr.msk.bf16.mxu0 %vm4254_vm0, %v4253_v0 }
0x1ca5   :  { %v4182_v5 = vpop.eup %4181 }
0x1ca6   :  { %v4184_v6 = vpop.eup %4183  ;;  %2195 = vrot.lane.b32.xlu1 %v4182_v5, %s4256_s3 }
0x1ca7   :  { %2197 = vrot.lane.b32.xlu0 %v4184_v6, %s4256_s3  ;;  %v4186_v15 = vpop.eup %4185 }
0x1ca8   :  { %v2166_v7 = vadd.f32 1.0, %v4186_v15 }
0x1caa   :  { %4187 = vrcp.f32 %v2166_v7 }
0x1cb7   :  { %v4188_v10 = vpop.eup %4187 }
0x1cb8   :  { %v2192_v31 = vmul.f32 %v4188_v10, %v2190_v28  ;;  %v4059_v28 = vld [vmem:[%s5094_s1 + $0x1c] ss:$12 sps:$4 sm:$0xff]  }
0x1d18   :  { %v2196_v59 = vpop.permute.xlu1 %2195 }
0x1d19   :  { %v2198_v11 = vpop.permute.xlu0 %2197 }
0x1d1a   :  { %v2199_v4 = vsel %vm125_vm2, %v2196_v59, %v2198_v11 }
0x1d1b   :  { %v2201_v14 = vmul.f32 %v4188_v10, %v2199_v4 }
0x1d1d   :  { %2203 = vrot.lane.b32.xlu1 %v2201_v14, %s4256_s3 }
0x1d52   :  { %v2252_v17 = vpop.f32.mrf.mxu0 }
0x1d53   :  { %4189 = vtanh.f32 %v2252_v17 }
0x1d54   :  { %v3880_v18 = vpop.f32.mrf.mxu0 }
0x1d55   :  { %v4054_v18 = vld [vmem:[%s5094_s1 + $0x64] ss:$12 sps:$4 sm:$0xff]  }
0x1d56   :  { %v2255_v8 = vpop.f32.mrf.mxu0  ;;  %3905 = vmatpush3.bf16.msra.mxu0 %v4054_v18 }
0x1d57   :  { %v4055_v8 = vld [vmem:[%s5094_s1 + $0x60] ss:$12 sps:$4 sm:$0xff]   ;;  %3906 = vmatprep.subr.bf16.mxu0 %v4253_v0 }
0x1d58   :  { %v3881_v19 = vpop.f32.mrf.mxu0 }
0x1d59   :  { %v4057_v19 = vld [vmem:[%s5094_s1 + $0x48] ss:$12 sps:$4 sm:$0xff]  }
0x1d5a   :  { %v2392_v20 = vpop.f32.mrf.mxu0  ;;  %3907 = vmatpush3.bf16.msra.mxu0 %v4056_v16 }
0x1d5b   :  { %v2398_v41 = vadd.f32 %v2392_v20, %v2339_v12  ;;  %3920 = vmatprep.subr.bf16.mxu0 %v4253_v0 }
0x1d5c   :  { %v3896_v23 = vpop.f32.mrf.mxu0 }
0x1d5d   :  { %v3495_v38 = vmul.f32 -1.442695, %v2398_v41 }
0x1d5e   :  { %v2395_v24 = vpop.f32.mrf.mxu0 }
0x1d60   :  { %v4190_v13 = vpop.eup %4189  ;;  %v3897_v9 = vpop.f32.mrf.mxu0 }
0x1d61   :  { %v2260_v22 = vrot.slane %v4190_v13, 2  ;;  %v4058_v9 = vld [vmem:[%s5094_s1 + $0x34] ss:$12 sps:$4 sm:$0xff]  }
0x1d63   :  { %2261 = vrot.lane.b32.xlu0 %v2260_v22, %s4261_s27 }
0x1d8f   :  { %v2204_v29 = vpop.permute.xlu1 %2203 }
0x1d90   :  { %v2206_v26 = vadd.f32 %v2204_v29, %v2192_v31 }
0x1dd5   :  { %v2262_v33 = vpop.permute.xlu0 %2261 }
0x1dd6   :  { %v4855_v34 = vadd.f32 %v2262_v33, %v2206_v26 }
0x1dd8   :  { %4191 = vtanh.f32 %v4855_v34 }
0x1dd9   :  { %4193 = vtanh.f32 %v2398_v41 }
0x1dda   :  { %4195 = vpow2.f32 %v3495_v38 }
0x1de5   :  { %v4192_v37 = vpop.eup %4191 }
0x1de6   :  { %2267 = vrot.lane.b32.xlu1 %v4192_v37, %s4256_s3  ;;  %v4194_v49 = vpop.eup %4193 }
0x1de7   :  { %v4196_v21 = vpop.eup %4195 }
0x1de8   :  { %v2402_v46 = vadd.f32 1.0, %v4196_v21 }
0x1dea   :  { %4197 = vrcp.f32 %v2402_v46 }
0x1df7   :  { %v4198_v45 = vpop.eup %4197 }
0x1e58   :  { %v2268_v42 = vpop.permute.xlu1 %2267 }
0x1e59   :  { %v2270_v43 = vmul.f32 %v4188_v10, %v2268_v42  ;;  %v2424_v10 = vmul.f32 %v4198_v45, %v2422_v1 }
0x1e5b   :  { %v2275_v25 = vpack.c.bf16 %v2270_v43, %v2270_v43 }
0x1e5d   :  { %v2277_v47 = vrot.slane %v2275_v25, 3 }
0x1e5f   :  { %2278 = vrot.lane.b32.xlu0 %v2277_v47, %s4261_s27 }
0x1e63   :  { %2426 = vrot.lane.b32.xlu0 %v4194_v49, %s4256_s3  ;;  %v2341_v49 = vld [vmem:[#allocation2 + $0x28] sm:$0x3] }
0x1ed1   :  { %v4869_v51 = vpop.permute.xlu0 %2278 }
0x1ed2   :  { %3887 = vmatmul.mubr.msk.bf16.vlgmr.msra.gmra.mxu1 %vm125_vm2, %v4869_v51 }
0x1ed3   :  { %3900 = vmatprep.mubr.msk.bf16.mxu1 %vm4254_vm0, %v4253_v0 }
0x1ed5   :  { %v2427_v48 = vpop.permute.xlu0 %2426 }
0x1ed6   :  { %v2429_v61 = vmul.f32 %v4198_v45, %v2427_v48 }
0x1f92   :  { %v2329_v56 = vpop.f32.mrf.mxu1 }
0x1f93   :  { %v2335_v57 = vadd.f32 %v2329_v56, %v4819_v32  ;;  %v4053_v32 = vld [vmem:[%s5094_s1 + $0xa8] ss:$12 sps:$4 sm:$0xff]  }
0x1f94   :  { %v3888_v44 = vpop.f32.mrf.mxu1  ;;  %3899 = vmatpush3.bf16.msra.mxu1 %v4053_v32 }
0x1f95   :  { %v4877_v27 = vadd.f32 %v2335_v57, %v4362_v30  ;;  %3912 = vmatprep.subr.bf16.mxu1 %v4253_v0  ;;  %v2707_v44 = vrot.slane %v4827_v50, 6  ;;  %v4061_v50 = vld [vmem:[%s5094_s1 + $0x18] ss:$12 sps:$4 sm:$0xff]  }
0x1f96   :  { %v2332_v36 = vpop.f32.mrf.mxu1 }
0x1f97   :  { %3491 = vst [vmem:[%s5096_s2 + $0x6] sm:$0x3] %v4877_v27  ;;  %2407 = vrot.lane.b32.xlu1 %v4877_v27, %s4257_s8 }
0x1f98   :  { %v3889_v60 = vpop.f32.mrf.mxu1 }
0x1f9b   :  { %2431 = vrot.lane.b32.xlu1 %v2429_v61, %s4256_s3 }
0x2009   :  { %v2408_v40 = vpop.permute.xlu1 %2407 }
0x200a   :  { %v2410_v62 = vadd.f32 %v2408_v40, %v4890_v55 }
0x200c   :  { %v3496_v53 = vmul.f32 -1.442695, %v2410_v62 }
0x200d   :  { %v2432_v11 = vpop.permute.xlu1 %2431 }
0x200e   :  { %4199 = vpow2.f32 %v3496_v53  ;;  %v2434_v4 = vadd.f32 %v2432_v11, %v2424_v10 }
0x201b   :  { %v4200_v63 = vpop.eup %4199 }
0x201c   :  { %v2414_v52 = vadd.f32 1.0, %v4200_v63 }
0x201e   :  { %4201 = vrcp.f32 %v2414_v52 }
0x202b   :  { %v4202_v3 = vpop.eup %4201 }
0x202c   :  { %v4894_v54 = vmul.f32 %v4202_v3, %v2418_v2 }
0x202e   :  { %v2437_v5 = vpack.c.bf16 %v4894_v54, %v4894_v54 }
0x2030   :  { %3901 = vmatmul.mubr.msk.bf16.vlgmr.msra.gmra.mxu1 %vm35_vm1, %v2437_v5 }
0x2031   :  { %3916 = vmatprep.mubr.msk.bf16.mxu1 %vm4254_vm0, %v4253_v0  ;;  %3913 = vmatpush3.bf16.msra.mxu1 %v4055_v8 }
0x2032   :  { %3914 = vmatprep.subr.bf16.mxu1 %v4253_v0 }
0x2035   :  { %3915 = vmatpush3.bf16.msra.mxu1 %v4057_v19 }
0x2036   :  { %3928 = vmatprep.subr.bf16.mxu1 %v4253_v0 }
0x20f0   :  { %v2481_v6 = vpop.f32.mrf.mxu1 }
0x20f1   :  { %4203 = vtanh.f32 %v2481_v6 }
0x20f2   :  { %v3902_v58 = vpop.f32.mrf.mxu1 }
0x20f4   :  { %v2484_v15 = vpop.f32.mrf.mxu1 }
0x20f6   :  { %v3903_v7 = vpop.f32.mrf.mxu1 }
0x20fe   :  { %v4204_v59 = vpop.eup %4203 }
0x20ff   :  { %2489 = vrot.lane.b32.xlu0 %v4204_v59, %s4256_s3 }
0x2171   :  { %v2490_v14 = vpop.permute.xlu0 %2489 }
0x2172   :  { %v4903_v17 = vadd.f32 %v2490_v14, %v2434_v4 }
0x2174   :  { %4205 = vtanh.f32 %v4903_v17 }
0x2181   :  { %v4206_v20 = vpop.eup %4205 }
0x2182   :  { %2495 = vrot.lane.b32.xlu1 %v4206_v20, %s4256_s3  ;;  %v2711_v20 = vrot.slane %v4855_v34, 6 }
0x21f4   :  { %v2496_v23 = vpop.permute.xlu1 %2495 }
0x21f5   :  { %v2498_v24 = vmul.f32 %v4198_v45, %v2496_v23 }
0x21f7   :  { %v2503_v13 = vpack.c.bf16 %v2498_v24, %v2498_v24 }
0x21f9   :  { %2505 = vrot.lane.b32.xlu0 %v2503_v13, %s4258_s16 }
0x21fd   :  { %2732 = vrot.lane.b32.xlu0 %v4053_v32, %s4260_s22 }
0x226b   :  { %v2506_v22 = vpop.permute.xlu0 %2505 }
0x226c   :  { %3909 = vmatmul.mubr.msk.bf16.vlgmr.msra.gmra.mxu0 %vm125_vm2, %v2506_v22  ;;  %3917 = vmatmul.mubr.msk.bf16.vlgmr.msra.gmra.mxu1 %vm125_vm2, %v2506_v22 }
0x226d   :  { %3921 = vmatpush3.bf16.msra.mxu0 %v4058_v9  ;;  %3924 = vmatprep.mubr.msk.bf16.mxu0 %vm4254_vm0, %v4253_v0 }
0x226e   :  { %3922 = vmatprep.subr.bf16.mxu0 %v4253_v0  ;;  %3930 = vmatprep.mubr.msk.bf16.mxu1 %vm4254_vm0, %v4253_v0 }
0x226f   :  { %v2733_v29 = vpop.permute.xlu0 %2732 }
0x2270   :  { %3929 = vmatpush3.bf16.msra.mxu1 %v2733_v29  ;;  %v4063_v29 = vld [vmem:[%s5094_s1 + $0x78] ss:$12 sps:$4 sm:$0xff]  }
0x2271   :  { %3923 = vmatpush3.bf16.msra.mxu0 %v4059_v28  ;;  %3942 = vmatprep.subr.bf16.mxu1 %v4253_v0  ;;  %v4062_v28 = vld [vmem:[%s5094_s1 + $0x90] ss:$12 sps:$4 sm:$0xff]  }
0x2272   :  { %3934 = vmatprep.subr.bf16.mxu0 %v4253_v0 }
0x2274   :  { %3925 = vmatmul.mubr.msk.bf16.vlgmr.msra.gmra.mxu0 %vm125_vm2, %v4869_v51 }
0x2275   :  { %3938 = vmatprep.mubr.msk.bf16.mxu0 %vm4254_vm0, %v4253_v0  ;;  %3935 = vmatpush3.bf16.msra.mxu0 %v4062_v28 }
0x2276   :  { %3936 = vmatprep.subr.bf16.mxu0 %v4253_v0 }
0x2279   :  { %3937 = vmatpush3.bf16.msra.mxu0 %v4063_v29 }
0x227a   :  { %3950 = vmatprep.subr.bf16.mxu0 %v4253_v0 }
0x232c   :  { %v4944_v31 = vpop.f32.mrf.mxu0  ;;  %v2612_v26 = vpop.f32.mrf.mxu1 }
0x232d   :  { %2695 = vrot.lane.b32.xlu1 %v4944_v31, %s4257_s8  ;;  %2619 = vrot.lane.b32.xlu0 %v2612_v26, %s4259_s21 }
0x232e   :  { %v3910_v33 = vpop.f32.mrf.mxu0  ;;  %v3918_v35 = vpop.f32.mrf.mxu1 }
0x232f   :  { %v2857_v33 = vld [vmem:[#allocation2 + $0x18] sm:$0xc] }
0x2330   :  { %v2559_v37 = vpop.f32.mrf.mxu0  ;;  %v2615_v39 = vpop.f32.mrf.mxu1 }
0x2332   :  { %v3911_v12 = vpop.f32.mrf.mxu0  ;;  %v3919_v41 = vpop.f32.mrf.mxu1 }
0x2334   :  { %v2674_v42 = vpop.f32.mrf.mxu0 }
0x2336   :  { %v3926_v43 = vpop.f32.mrf.mxu0 }
0x2338   :  { %v2677_v25 = vpop.f32.mrf.mxu0 }
0x233a   :  { %v3927_v47 = vpop.f32.mrf.mxu0 }
0x239f   :  { %v2696_v51 = vpop.permute.xlu1 %2695  ;;  %v2620_v60 = vpop.permute.xlu0 %2619 }
0x23a0   :  { %v2698_v38 = vadd.f32 %v2696_v51, %v2341_v49  ;;  %v2622_v32 = vadd.f32 %v2620_v60, %v4890_v55  ;;  %v2623_v40 = vadd.f32 %v2620_v60, %v2341_v49 }
0x23a2   :  { %v2699_v21 = vadd.f32 %v2698_v38, %v4877_v27  ;;  %v4060_v27 = vld [vmem:[%s5094_s1 + $0x30] ss:$12 sps:$4 sm:$0xff]  }
0x23a4   :  { %v3509_v46 = vmul.f32 -1.442695, %v2699_v21 }
0x23a6   :  { %4207 = vpow2.f32 %v3509_v46 }
0x23b3   :  { %v4208_v56 = vpop.eup %4207 }
0x23b4   :  { %v2703_v57 = vadd.f32 1.0, %v4208_v56 }
0x23b6   :  { %4209 = vrcp.f32 %v2703_v57 }
0x23c3   :  { %v4210_v48 = vpop.eup %4209 }
0x23c4   :  { %v4951_v36 = vmul.f32 %v4210_v48, %v2707_v44 }
0x23c6   :  { %v2728_v45 = vpack.c.bf16 %v4951_v36, %v4951_v36 }
0x23c8   :  { %2730 = vrot.lane.b32.xlu1 %v2728_v45, %s4257_s8  ;;  %v4064_v45 = vld [vmem:[%s5094_s1 + $0xa8] ss:$12 sps:$4 sm:$0xff]  }
0x23cc   :  { %2681 = vrot.lane.b32.xlu1 %v2674_v42, %s4259_s21 }
0x243a   :  { %v2731_v61 = vpop.permute.xlu1 %2730 }
0x243b   :  { %3931 = vmatmul.mubr.msk.bf16.vlgmr.msra.gmra.mxu1 %vm35_vm1, %v2731_v61 }
0x243c   :  { %3943 = vmatpush3.bf16.msra.mxu1 %v4060_v27  ;;  %3946 = vmatprep.mubr.msk.bf16.mxu1 %vm4254_vm0, %v4253_v0  ;;  %v5015_v27 = vld [vmem:[#allocation2 + $0x20] sm:$0xc] }
0x243d   :  { %3944 = vmatprep.subr.bf16.mxu1 %v4253_v0 }
0x243e   :  { %v2682_v62 = vpop.permute.xlu1 %2681 }
0x243f   :  { %v2684_v53 = vadd.f32 %v2682_v62, %v2622_v32  ;;  %v2685_v63 = vadd.f32 %v2682_v62, %v2623_v40  ;;  %v2940_v62 = vrot.slane %v4894_v54, 6  ;;  %v2944_v54 = vrot.slane %v4903_v17, 6  ;;  %v4067_v17 = vld [vmem:[%s5094_s1 + $0x4c] ss:$12 sps:$4 sm:$0xff]  }
0x2440   :  { %3945 = vmatpush3.bf16.msra.mxu1 %v4061_v50 }
0x2441   :  { %4211 = vtanh.f32 %v2684_v53  ;;  %3956 = vmatprep.subr.bf16.mxu1 %v4253_v0  ;;  %v3508_v55 = vmul.f32 -1.442695, %v2684_v53 }
0x2442   :  { %4213 = vtanh.f32 %v2685_v63 }
0x2443   :  { %3947 = vmatmul.mubr.msk.bf16.vlgmr.msra.gmra.mxu1 %vm125_vm2, %v2506_v22  ;;  %4215 = vpow2.f32 %v3508_v55 }
0x2444   :  { %3960 = vmatprep.mubr.msk.bf16.mxu1 %vm4254_vm0, %v4253_v0 }
0x244e   :  { %v4212_v52 = vpop.eup %4211 }
0x244f   :  { %v4214_v2 = vpop.eup %4213  ;;  %2716 = vrot.lane.b32.xlu0 %v4212_v52, %s4256_s3 }
0x2450   :  { %2718 = vrot.lane.b32.xlu1 %v4214_v2, %s4256_s3  ;;  %v4216_v3 = vpop.eup %4215 }
0x2451   :  { %v2689_v5 = vadd.f32 1.0, %v4216_v3 }
0x2453   :  { %4217 = vrcp.f32 %v2689_v5 }
0x2460   :  { %v4218_v15 = vpop.eup %4217 }
0x2461   :  { %v2713_v24 = vmul.f32 %v4218_v15, %v2711_v20 }
0x24c1   :  { %v2717_v6 = vpop.permute.xlu0 %2716 }
0x24c2   :  { %v2719_v58 = vpop.permute.xlu1 %2718 }
0x24c3   :  { %v2720_v7 = vsel %vm125_vm2, %v2717_v6, %v2719_v58 }
0x24c4   :  { %v2722_v59 = vmul.f32 %v4218_v15, %v2720_v7 }
0x24c6   :  { %2724 = vrot.lane.b32.xlu0 %v2722_v59, %s4256_s3 }
0x24fb   :  { %v2772_v1 = vpop.f32.mrf.mxu1 }
0x24fc   :  { %4219 = vtanh.f32 %v2772_v1 }
0x24fd   :  { %v3932_v11 = vpop.f32.mrf.mxu1 }
0x24ff   :  { %v2775_v10 = vpop.f32.mrf.mxu1 }
0x2501   :  { %v3933_v4 = vpop.f32.mrf.mxu1 }
0x2502   :  { %v4065_v4 = vld [vmem:[%s5094_s1 + $0x64] ss:$12 sps:$4 sm:$0xff]  }
0x2503   :  { %v2910_v14 = vpop.f32.mrf.mxu1  ;;  %3957 = vmatpush3.bf16.msra.mxu1 %v4065_v4 }
0x2504   :  { %v2917_v26 = vrot.slane %v2910_v14, 6  ;;  %v4066_v14 = vld [vmem:[%s5094_s1 + $0x60] ss:$12 sps:$4 sm:$0xff]   ;;  %3958 = vmatprep.subr.bf16.mxu1 %v4253_v0 }
0x2505   :  { %v3948_v18 = vpop.f32.mrf.mxu1 }
0x2506   :  { %v2919_v35 = vadd.f32 %v2917_v26, %v2857_v33  ;;  %v4068_v18 = vld [vmem:[%s5094_s1 + $0x48] ss:$12 sps:$4 sm:$0xff]  }
0x2507   :  { %v2913_v8 = vpop.f32.mrf.mxu1  ;;  %3959 = vmatpush3.bf16.msra.mxu1 %v4067_v17 }
0x2508   :  { %v3518_v43 = vmul.f32 -1.442695, %v2919_v35  ;;  %3972 = vmatprep.subr.bf16.mxu1 %v4253_v0 }
0x2509   :  { %v4220_v16 = vpop.eup %4219  ;;  %v3949_v19 = vpop.f32.mrf.mxu1 }
0x250a   :  { %2780 = vrot.lane.b32.xlu1 %v4220_v16, %s4261_s27 }
0x2538   :  { %v2725_v23 = vpop.permute.xlu0 %2724 }
0x2539   :  { %v2727_v13 = vadd.f32 %v2725_v23, %v2713_v24  ;;  %v4069_v24 = vld [vmem:[%s5094_s1 + $0x34] ss:$12 sps:$4 sm:$0xff]  }
0x257c   :  { %v2781_v9 = vpop.permute.xlu1 %2780 }
0x257d   :  { %v4978_v22 = vadd.f32 %v2781_v9, %v2727_v13  ;;  %v4070_v9 = vld [vmem:[%s5094_s1 + $0x1c] ss:$12 sps:$4 sm:$0xff]  }
0x257f   :  { %4221 = vtanh.f32 %v4978_v22  ;;  %v3241_v17 = vrot.slane %v4978_v22, 6 }
0x2580   :  { %4223 = vtanh.f32 %v2919_v35 }
0x2581   :  { %4225 = vpow2.f32 %v3518_v43 }
0x258c   :  { %v4222_v34 = vpop.eup %4221 }
0x258d   :  { %2786 = vrot.lane.b32.xlu0 %v4222_v34, %s4256_s3  ;;  %v4224_v41 = vpop.eup %4223 }
0x258e   :  { %v4226_v25 = vpop.eup %4225 }
0x258f   :  { %v2923_v47 = vadd.f32 1.0, %v4226_v25 }
0x2591   :  { %4227 = vrcp.f32 %v2923_v47 }
0x259e   :  { %v4228_v48 = vpop.eup %4227 }
0x259f   :  { %v2946_v59 = vmul.f32 %v4228_v48, %v2944_v54 }
0x25ff   :  { %v2787_v37 = vpop.permute.xlu0 %2786 }
0x2600   :  { %v2789_v39 = vmul.f32 %v4218_v15, %v2787_v37 }
0x2602   :  { %v2794_v12 = vpack.c.bf16 %v2789_v39, %v2789_v39 }
0x2604   :  { %2796 = vrot.lane.b32.xlu1 %v2794_v12, %s4261_s27 }
0x2608   :  { %2948 = vrot.lane.b32.xlu1 %v4224_v41, %s4256_s3 }
0x2676   :  { %v4992_v42 = vpop.permute.xlu1 %2796 }
0x2677   :  { %3939 = vmatmul.mubr.msk.bf16.vlgmr.msra.gmra.mxu0 %vm125_vm2, %v4992_v42 }
0x2678   :  { %3952 = vmatprep.mubr.msk.bf16.mxu0 %vm4254_vm0, %v4253_v0  ;;  %3951 = vmatpush3.bf16.msra.mxu0 %v4064_v45 }
0x2679   :  { %3964 = vmatprep.subr.bf16.mxu0 %v4253_v0 }
0x267a   :  { %v2949_v57 = vpop.permute.xlu1 %2948 }
0x2737   :  { %v2847_v49 = vpop.f32.mrf.mxu0 }
0x2738   :  { %v2853_v51 = vadd.f32 %v2847_v49, %v4944_v31  ;;  %v2951_v31 = vmul.f32 %v4228_v48, %v2949_v57 }
0x2739   :  { %v3940_v38 = vpop.f32.mrf.mxu0 }
0x273a   :  { %v5000_v21 = vadd.f32 %v2853_v51, %v4362_v30  ;;  %v2859_v51 = vld [vmem:[#allocation2 + $0x28] sm:$0xc] }
0x273b   :  { %v2850_v46 = vpop.f32.mrf.mxu0 }
0x273c   :  { %3514 = vst [vmem:[%s5096_s2 + $0x8] sm:$0x3] %v5000_v21  ;;  %v2928_v56 = vrot.slane %v5000_v21, 6 }
0x273d   :  { %v3941_v44 = vpop.f32.mrf.mxu0 }
0x273e   :  { %2929 = vrot.lane.b32.xlu0 %v2928_v56, %s4257_s8 }
0x2742   :  { %2953 = vrot.lane.b32.xlu0 %v2951_v31, %s4256_s3 }
0x27b0   :  { %v2930_v60 = vpop.permute.xlu0 %2929 }
0x27b1   :  { %v2932_v61 = vadd.f32 %v2930_v60, %v5015_v27 }
0x27b3   :  { %v3519_v50 = vmul.f32 -1.442695, %v2932_v61 }
0x27b4   :  { %v2954_v7 = vpop.permute.xlu0 %2953 }
0x27b5   :  { %4229 = vpow2.f32 %v3519_v50  ;;  %v2956_v1 = vadd.f32 %v2954_v7, %v2946_v59 }
0x27c2   :  { %v4230_v32 = vpop.eup %4229 }
0x27c3   :  { %v2936_v40 = vadd.f32 1.0, %v4230_v32 }
0x27c5   :  { %4231 = vrcp.f32 %v2936_v40 }
0x27d2   :  { %v4232_v53 = vpop.eup %4231 }
0x27d3   :  { %v2942_v63 = vmul.f32 %v4232_v53, %v2940_v62 }
0x27d5   :  { %v2959_v52 = vpack.c.bf16 %v2942_v63, %v2942_v63 }
0x27d7   :  { %v2961_v2 = vrot.slane %v2959_v52, 1 }
0x27d9   :  { %3953 = vmatmul.mubr.msk.bf16.vlgmr.msra.gmra.mxu0 %vm35_vm1, %v2961_v2 }
0x27da   :  { %3968 = vmatprep.mubr.msk.bf16.mxu0 %vm4254_vm0, %v4253_v0  ;;  %3965 = vmatpush3.bf16.msra.mxu0 %v4066_v14 }
0x27db   :  { %3966 = vmatprep.subr.bf16.mxu0 %v4253_v0 }
0x27de   :  { %3967 = vmatpush3.bf16.msra.mxu0 %v4068_v18 }
0x27df   :  { %3980 = vmatprep.subr.bf16.mxu0 %v4253_v0 }
0x2899   :  { %v3005_v55 = vpop.f32.mrf.mxu0 }
0x289a   :  { %4233 = vtanh.f32 %v3005_v55 }
0x289b   :  { %v3954_v3 = vpop.f32.mrf.mxu0 }
0x289d   :  { %v3008_v5 = vpop.f32.mrf.mxu0 }
0x289f   :  { %v3955_v6 = vpop.f32.mrf.mxu0 }
0x28a7   :  { %v4234_v58 = vpop.eup %4233 }
0x28a8   :  { %v3013_v15 = vrot.slane %v4234_v58, 6 }
0x28aa   :  { %3014 = vrot.lane.b32.xlu1 %v3013_v15, %s4256_s3 }
0x291c   :  { %v3015_v11 = vpop.permute.xlu1 %3014 }
0x291d   :  { %v3017_v10 = vadd.f32 %v3015_v11, %v2956_v1 }
0x291f   :  { %4235 = vtanh.f32 %v3017_v10 }
0x292c   :  { %v4236_v8 = vpop.eup %4235 }
0x292d   :  { %3020 = vrot.lane.b32.xlu0 %v4236_v8, %s4256_s3 }
0x299f   :  { %v3021_v16 = vpop.permute.xlu0 %3020 }
0x29a0   :  { %v3023_v19 = vmul.f32 %v4228_v48, %v3021_v16 }
0x29a2   :  { %v3028_v20 = vpack.c.bf16 %v3023_v19, %v3023_v19 }
0x29a4   :  { %v3030_v23 = vrot.slane %v3028_v20, 1 }
0x29a6   :  { %3031 = vrot.lane.b32.xlu1 %v3030_v23, %s4258_s16  ;;  %v4071_v23 = vld [vmem:[%s5094_s1 + $0x90] ss:$12 sps:$4 sm:$0xff]  }
0x29aa   :  { %3263 = vrot.lane.b32.xlu1 %v4064_v45, %s4260_s22  ;;  %v3237_v45 = vrot.slane %v4951_v36, 6 }
0x2a18   :  { %v3032_v13 = vpop.permute.xlu1 %3031 }
0x2a19   :  { %3961 = vmatmul.mubr.msk.bf16.vlgmr.msra.gmra.mxu1 %vm125_vm2, %v3032_v13  ;;  %3969 = vmatmul.mubr.msk.bf16.vlgmr.msra.gmra.mxu0 %vm125_vm2, %v3032_v13 }
0x2a1a   :  { %3973 = vmatpush3.bf16.msra.mxu1 %v4069_v24  ;;  %3976 = vmatprep.mubr.msk.bf16.mxu1 %vm4254_vm0, %v4253_v0  ;;  %v4072_v24 = vld [vmem:[%s5094_s1 + $0x78] ss:$12 sps:$4 sm:$0xff]  }
0x2a1b   :  { %3974 = vmatprep.subr.bf16.mxu1 %v4253_v0  ;;  %3982 = vmatprep.mubr.msk.bf16.mxu0 %vm4254_vm0, %v4253_v0 }
0x2a1c   :  { %v3264_v28 = vpop.permute.xlu1 %3263 }
0x2a1d   :  { %3981 = vmatpush3.bf16.msra.mxu0 %v3264_v28 }
0x2a1e   :  { %3975 = vmatpush3.bf16.msra.mxu1 %v4070_v9 }
0x2a1f   :  { %3986 = vmatprep.subr.bf16.mxu1 %v4253_v0 }
0x2a21   :  { %3977 = vmatmul.mubr.msk.bf16.vlgmr.msra.gmra.mxu1 %vm125_vm2, %v4992_v42 }
0x2a22   :  { %3990 = vmatprep.mubr.msk.bf16.mxu1 %vm4254_vm0, %v4253_v0  ;;  %3987 = vmatpush3.bf16.msra.mxu1 %v4071_v23 }
0x2a23   :  { %3988 = vmatprep.subr.bf16.mxu1 %v4253_v0 }
0x2a26   :  { %3989 = vmatpush3.bf16.msra.mxu1 %v4072_v24 }
0x2ad9   :  { %v5061_v29 = vpop.f32.mrf.mxu1  ;;  %v3138_v34 = vpop.f32.mrf.mxu0 }
0x2ada   :  { %v3223_v26 = vrot.slane %v5061_v29, 6  ;;  %v3145_v33 = vrot.slane %v3138_v34, 6 }
0x2adb   :  { %v3962_v35 = vpop.f32.mrf.mxu1  ;;  %v3970_v37 = vpop.f32.mrf.mxu0 }
0x2adc   :  { %3146 = vrot.lane.b32.xlu1 %v3145_v33, %s4259_s21  ;;  %3224 = vrot.lane.b32.xlu0 %v3223_v26, %s4257_s8 }
0x2add   :  { %v3085_v39 = vpop.f32.mrf.mxu1  ;;  %v3141_v12 = vpop.f32.mrf.mxu0 }
0x2adf   :  { %v3963_v41 = vpop.f32.mrf.mxu1  ;;  %v3971_v42 = vpop.f32.mrf.mxu0 }
0x2ae1   :  { %v3201_v43 = vpop.f32.mrf.mxu1 }
0x2ae2   :  { %v3208_v40 = vrot.slane %v3201_v43, 6 }
0x2ae3   :  { %v3978_v25 = vpop.f32.mrf.mxu1 }
0x2ae5   :  { %v3204_v47 = vpop.f32.mrf.mxu1 }
0x2ae7   :  { %v3979_v49 = vpop.f32.mrf.mxu1 }
0x2b4e   :  { %v3225_v38 = vpop.permute.xlu0 %3224  ;;  %v3147_v62 = vpop.permute.xlu1 %3146 }
0x2b4f   :  { %v3227_v46 = vadd.f32 %v3225_v38, %v2859_v51  ;;  %v3149_v21 = vadd.f32 %v3147_v62, %v5015_v27 }
0x2b51   :  { %v3229_v57 = vadd.f32 %v3227_v46, %v2928_v56  ;;  %v3150_v56 = vadd.f32 %v3147_v62, %v2859_v51 }
0x2b53   :  { %v3532_v44 = vmul.f32 -1.442695, %v3229_v57 }
0x2b55   :  { %4237 = vpow2.f32 %v3532_v44 }
0x2b62   :  { %v4238_v48 = vpop.eup %4237 }
0x2b63   :  { %v3233_v31 = vadd.f32 1.0, %v4238_v48 }
0x2b65   :  { %4239 = vrcp.f32 %v3233_v31 }
0x2b72   :  { %v4240_v60 = vpop.eup %4239 }
0x2b73   :  { %v3239_v61 = vmul.f32 %v4240_v60, %v3237_v45 }
0x2b75   :  { %v3258_v50 = vpack.c.bf16 %v3239_v61, %v3239_v61 }
0x2b77   :  { %v3260_v32 = vrot.slane %v3258_v50, 1 }
0x2b79   :  { %3261 = vrot.lane.b32.xlu0 %v3260_v32, %s4257_s8 }
0x2b7d   :  { %3209 = vrot.lane.b32.xlu0 %v3208_v40, %s4259_s21 }
0x2beb   :  { %v3262_v53 = vpop.permute.xlu0 %3261 }
0x2bec   :  { %3983 = vmatmul.mubr.msk.bf16.vlgmr.msra.gmra.mxu0 %vm35_vm1, %v3262_v53 }
0x2bef   :  { %v3210_v63 = vpop.permute.xlu0 %3209 }
0x2bf0   :  { %v3212_v52 = vadd.f32 %v3210_v63, %v3149_v21  ;;  %v3213_v2 = vadd.f32 %v3210_v63, %v3150_v56 }
0x2bf2   :  { %4241 = vtanh.f32 %v3212_v52  ;;  %v3531_v3 = vmul.f32 -1.442695, %v3212_v52 }
0x2bf3   :  { %4243 = vtanh.f32 %v3213_v2 }
0x2bf4   :  { %4245 = vpow2.f32 %v3531_v3 }
0x2bff   :  { %v4242_v36 = vpop.eup %4241 }
0x2c00   :  { %v4244_v55 = vpop.eup %4243  ;;  %3246 = vrot.lane.b32.xlu1 %v4242_v36, %s4256_s3 }
0x2c01   :  { %3248 = vrot.lane.b32.xlu0 %v4244_v55, %s4256_s3  ;;  %v4246_v5 = vpop.eup %4245 }
0x2c02   :  { %v3217_v6 = vadd.f32 1.0, %v4246_v5 }
0x2c04   :  { %4247 = vrcp.f32 %v3217_v6 }
0x2c11   :  { %v4248_v27 = vpop.eup %4247 }
0x2c12   :  { %v3243_v8 = vmul.f32 %v4248_v27, %v3241_v17 }
0x2c72   :  { %v3247_v58 = vpop.permute.xlu1 %3246 }
0x2c73   :  { %v3249_v15 = vpop.permute.xlu0 %3248 }
0x2c74   :  { %v3250_v54 = vsel %vm125_vm2, %v3247_v58, %v3249_v15 }
0x2c75   :  { %v3252_v7 = vmul.f32 %v4248_v27, %v3250_v54 }
0x2c77   :  { %3254 = vrot.lane.b32.xlu1 %v3252_v7, %s4256_s3 }
0x2cac   :  { %v3303_v59 = vpop.f32.mrf.mxu0 }
0x2cad   :  { %4249 = vtanh.f32 %v3303_v59 }
0x2cae   :  { %v3984_v1 = vpop.f32.mrf.mxu0 }
0x2cb0   :  { %v3306_v11 = vpop.f32.mrf.mxu0 }
0x2cb2   :  { %v3985_v10 = vpop.f32.mrf.mxu0 }
0x2cba   :  { %v4250_v4 = vpop.eup %4249 }
0x2cbb   :  { %v3311_v14 = vrot.slane %v4250_v4, 6 }
0x2cbd   :  { %3312 = vrot.lane.b32.xlu0 %v3311_v14, %s4261_s27 }
0x2ce9   :  { %v3255_v18 = vpop.permute.xlu1 %3254 }
0x2cea   :  { %v3257_v16 = vadd.f32 %v3255_v18, %v3243_v8 }
0x2d2f   :  { %v3313_v19 = vpop.permute.xlu0 %3312 }
0x2d30   :  { %v3315_v20 = vadd.f32 %v3313_v19, %v3257_v16 }
0x2d32   :  { %4251 = vtanh.f32 %v3315_v20 }
0x2d3f   :  { %v4252_v13 = vpop.eup %4251 }
0x2d40   :  { %3318 = vrot.lane.b32.xlu1 %v4252_v13, %s4256_s3 }
0x2db2   :  { %v3319_v22 = vpop.permute.xlu1 %3318 }
0x2db3   :  { %v3321_v9 = vmul.f32 %v4248_v27, %v3319_v22 }
0x2db5   :  { %v3326_v28 = vpack.c.bf16 %v3321_v9, %v3321_v9 }
0x2db7   :  { %v3328_v34 = vrot.slane %v3326_v28, 1 }
0x2db9   :  { %3329 = vrot.lane.b32.xlu0 %v3328_v34, %s4261_s27 }
0x2e2b   :  { %v3330_v26 = vpop.permute.xlu0 %3329 }
0x2e2c   :  { %3991 = vmatmul.mubr.msk.bf16.vlgmr.msra.gmra.mxu1 %vm125_vm2, %v3330_v26 }
0x2eec   :  { %v3380_v33 = vpop.f32.mrf.mxu1 }
0x2eed   :  { %v3386_v35 = vadd.f32 %v3380_v33, %v5061_v29 }
0x2eee   :  { %v3992_v37 = vpop.f32.mrf.mxu1 }
0x2eef   :  { %v3387_v39 = vadd.f32 %v3386_v35, %v4362_v30 }
0x2ef0   :  { %v3383_v0 = vpop.f32.mrf.mxu1 }
0x2ef1   :  { %3537 = vst [vmem:[%s5096_s2 + $0xa] sm:$0x3] %v3387_v39 }
0x2ef2   :  { %v3993_v12 = vpop.f32.mrf.mxu1 }

</bundles_post_ra>
